<compile_context>
chip_gen: v6e
topology: v6e:2x2x1
jax: 0.10.0
libtpu: 0.0.40
codegen_flags: <defaults>
</compile_context>

<pallas_src>
import functools

import jax
import jax.numpy as jnp
from jax.experimental import pallas as pl
from jax.experimental.pallas import tpu as pltpu


# --------------------------------------------------------------------------- kernel A
def _prosody_gates_kernel(xp_ref, xe_ref, wc_ref, bc_ref, wi_ref, bi_ref, lens_ref,
                          gx_ref, *, taps):
    """Fused pitch+energy Conv1d ('same' padding, in_channels=1, outputs summed)
    followed by the GRU input projection (one MXU matmul) and z-gate length masking."""
    f32 = jnp.float32
    NB, T, G3 = gx_ref.shape
    H = G3 // 3
    xp = xp_ref[...]                        # (NB, T + K - 1)
    xe = xe_ref[...]
    wc = wc_ref[...]                        # (2K, ENC): rows [0:K] pitch taps, [K:2K] energy taps

    # K is tiny (3): direct tap FMAs into the narrow (NB, T, ENC) accumulator; the wide
    # per-channel work (x 3H) below goes to the MXU.
    pe = jnp.zeros((NB, T, wc.shape[1]), f32) + bc_ref[...]
    for j in range(taps):
        pe += xp[:, j:j + T][:, :, None] * wc[j][None, None, :]
        pe += xe[:, j:j + T][:, :, None] * wc[taps + j][None, None, :]
    # TODO(synk): nn.Dropout after each Conv1d is an eval-mode identity here.

    # GRU input projection hoisted out of the recurrent scan: one batched MXU matmul.
    gx = jnp.einsum("ntc,cg->ntg", pe, wi_ref[...],
                    preferred_element_type=f32) + bi_ref[...]           # (NB, T, 3H)

    # For frames beyond each sequence length, force the update gate z -> 1 so the hidden
    # state carries through unchanged; the scan's final hidden then equals the hidden at
    # the last valid frame (pack_padded_sequence semantics) with no per-step masking.
    t_idx = jax.lax.broadcasted_iota(jnp.int32, (NB, T, G3), 1)
    lane = jax.lax.broadcasted_iota(jnp.int32, (NB, T, G3), 2)
    lens = lens_ref[...][:, :, None]                                    # (NB, 1, 1)
    force_z = (t_idx >= lens) & (lane >= H) & (lane < 2 * H)
    gx_ref[...] = (gx + jnp.where(force_z, 1e4, 0.0)).astype(gx_ref.dtype)


def prosody_gates(xp_pad, xe_pad, wc, bc, wi, bi, lens):
    """xp_pad/xe_pad: (N, T + K - 1) f32, lens: (N, 1) int32 -> gates_x (N, T, 3H)."""
    N, Tp = xp_pad.shape
    K2, ENC = wc.shape
    K = K2 // 2
    T = Tp - (K - 1)
    G3 = wi.shape[1]
    nb = 8 if N % 8 == 0 else N           # row block (multiple of 8, or the full dim)
    grid = (N // nb,)
    return pl.pallas_call(
        functools.partial(_prosody_gates_kernel, taps=K),
        out_shape=jax.ShapeDtypeStruct((N, T, G3), jnp.float32),
        grid=grid,
        in_specs=[
            pl.BlockSpec((nb, Tp), lambda i: (i, 0)),
            pl.BlockSpec((nb, Tp), lambda i: (i, 0)),
            pl.BlockSpec((K2, ENC), lambda i: (0, 0)),
            pl.BlockSpec((1, ENC), lambda i: (0, 0)),
            pl.BlockSpec((ENC, G3), lambda i: (0, 0)),
            pl.BlockSpec((1, G3), lambda i: (0, 0)),
            pl.BlockSpec((nb, 1), lambda i: (i, 0)),
        ],
        out_specs=pl.BlockSpec((nb, T, G3), lambda i: (i, 0, 0)),
        compiler_params=pltpu.CompilerParams(dimension_semantics=("parallel",)),
    )(xp_pad, xe_pad, wc, bc, wi, bi, lens)


# --------------------------------------------------------------------------- kernel B
def _gru_scan_kernel(gx_ref, wh_ref, bh_ref, hlast_ref, h_scr, *, steps):
    """Recurrent GRU scan over precomputed input-gate activations.
    One fused h_prev @ (H, 3H) matmul per step, `steps` steps unrolled per grid
    iteration; only the final hidden is written out."""
    tb = pl.program_id(0)

    @pl.when(tb == 0)
    def _():
        h_scr[...] = jnp.zeros_like(h_scr)

    H = h_scr.shape[-1]
    wh = wh_ref[...]                      # (H, 3H)  fused [r|z|n]
    bh = bh_ref[...]                      # (1, 3H)
    gx_blk = gx_ref[...]                  # (N, steps, 3H)
    h = h_scr[...]
    for s in range(steps):                # static unroll for the LLO scheduler
        gx = gx_blk[:, s, :]              # (N, 3H), bias bi already folded in
        hh = jnp.dot(h, wh, preferred_element_type=jnp.float32) + bh
        r = jax.nn.sigmoid(gx[:, :H] + hh[:, :H])
        z = jax.nn.sigmoid(gx[:, H:2 * H] + hh[:, H:2 * H])
        n = jnp.tanh(gx[:, 2 * H:] + r * hh[:, 2 * H:])
        h = (1.0 - z) * n + z * h
    h_scr[...] = h

    @pl.when(tb == pl.num_programs(0) - 1)
    def _():
        hlast_ref[...] = h.astype(hlast_ref.dtype)


def gru_last(gates_x, wh, bh):
    """gates_x: (N, T, 3H) with length masking folded into z -> final hidden (N, H)."""
    N, T, G3 = gates_x.shape
    H = G3 // 3
    tb = 8
    assert T % tb == 0, "caller pads T to a multiple of 8"
    return pl.pallas_call(
        functools.partial(_gru_scan_kernel, steps=tb),
        out_shape=jax.ShapeDtypeStruct((N, H), jnp.float32),
        grid=(T // tb,),
        in_specs=[
            pl.BlockSpec((N, tb, G3), lambda t: (0, t, 0)),
            pl.BlockSpec((H, G3), lambda t: (0, 0)),
            pl.BlockSpec((1, G3), lambda t: (0, 0)),
        ],
        out_specs=pl.BlockSpec((N, H), lambda t: (0, 0)),
        scratch_shapes=[pltpu.VMEM((N, H), jnp.float32)],
        compiler_params=pltpu.CompilerParams(dimension_semantics=("arbitrary",)),
    )(gates_x, wh, bh)


# --------------------------------------------------------------------------- kernel C
def _context_tail_kernel(
        c_txt_ref, spk_cur_ref, h_txt_ref, spk_hist_ref, pros_ref, lens_ref,
        w_cur_txt_ref, w_cur_spk_ref, b_cur_ref,
        w_hist_txt_ref, w_hist_spk_ref, w_hist_pros_ref, b_hist_ref,
        gru_wi_ref, gru_bi_ref, gru_wh_ref, gru_bh_ref,
        attn_wg_ref, attn_wc_ref, attn_b_ref, attn_v_ref,
        w_out_cur_ref, w_out_att_ref, b_out_ref,
        mlp_w1_ref, mlp_b1_ref, mlp_w2_ref, mlp_b2_ref, mlp_w3_ref, mlp_b3_ref,
        out_ref, *, hist):
    """Fused context-encoder tail: current/history linears (concat fused as split
    matmuls), history GRU (input projection batched), length-masked additive attention,
    combine linear and 3-layer output MLP — one kernel, everything resident in VMEM."""
    f32 = jnp.float32
    B = c_txt_ref.shape[0]
    CTX = w_cur_txt_ref.shape[1]

    # current-utterance encoding: ReLU([c_txt ; spk_emb] @ W + b)
    cur = jnp.dot(c_txt_ref[...], w_cur_txt_ref[...], preferred_element_type=f32)
    cur = cur + jnp.dot(spk_cur_ref[...], w_cur_spk_ref[...], preferred_element_type=f32)
    cur = jnp.maximum(cur + b_cur_ref[...], 0.0)                         # (B, CTX)

    # history encoding for all turns at once: ReLU([h_txt ; spk_emb ; prosody] @ W + b)
    henc = jnp.einsum("bht,tc->bhc", h_txt_ref[...], w_hist_txt_ref[...],
                      preferred_element_type=f32)
    henc = henc + jnp.einsum("bhs,sc->bhc", spk_hist_ref[...], w_hist_spk_ref[...],
                             preferred_element_type=f32)
    henc = henc + jnp.einsum("bhp,pc->bhc", pros_ref[...], w_hist_pros_ref[...],
                             preferred_element_type=f32)
    henc = jnp.maximum(henc + b_hist_ref[...], 0.0)                      # (B, HIST, CTX)

    # GRU input projection for every history step in one batched matmul.
    gx_all = jnp.einsum("bhc,cg->bhg", henc, gru_wi_ref[...],
                        preferred_element_type=f32) + gru_bi_ref[...]    # (B, HIST, 3*CTX)

    lens = lens_ref[...]                                                 # (B, 1) int32
    gru_wh = gru_wh_ref[...]
    gru_bh = gru_bh_ref[...]
    attn_wg = attn_wg_ref[...]
    attn_v = attn_v_ref[...]
    # current-utterance part of the additive attention, precomputed once
    cW = jnp.dot(cur, attn_wc_ref[...], preferred_element_type=f32) + attn_b_ref[...]

    h = jnp.zeros((B, CTX), f32)
    g_list = []
    s_list = []
    for t in range(hist):                 # history length is small -> static unroll
        gx = gx_all[:, t, :]              # (B, 3*CTX)
        hh = jnp.dot(h, gru_wh, preferred_element_type=f32) + gru_bh
        r = jax.nn.sigmoid(gx[:, :CTX] + hh[:, :CTX])
        z = jax.nn.sigmoid(gx[:, CTX:2 * CTX] + hh[:, CTX:2 * CTX])
        n = jnp.tanh(gx[:, 2 * CTX:] + r * hh[:, 2 * CTX:])
        cand = (1.0 - z) * n + z * h
        valid = t < lens                  # (B, 1) bool
        h = jnp.where(valid, cand, h)
        g_list.append(h)
        e = jnp.tanh(jnp.dot(h, attn_wg, preferred_element_type=f32) + cW)   # (B, A)
        s = jnp.dot(e, attn_v, preferred_element_type=f32)                   # (B, 1)
        s_list.append(jnp.where(valid, s, -1e30))

    # length-masked softmax over history + weighted sum (accumulated, no (B,HIST,*) stack)
    s_max = s_list[0]
    for t in range(1, hist):
        s_max = jnp.maximum(s_max, s_list[t])
    attended = jnp.zeros((B, CTX), f32)
    denom = jnp.zeros((B, 1), f32)
    for t in range(hist):
        valid_f = (t < lens).astype(f32)
        p = jnp.exp(s_list[t] - s_max) * valid_f
        denom = denom + p
        attended = attended + p * g_list[t]
    attended = attended / (denom + 1e-9)   # eps-guard: rows with zero history give 0, not NaN

    # combine current + attended context, then output_linear: Linear-ReLU-Linear-ReLU-Linear
    ctx = jnp.dot(cur, w_out_cur_ref[...], preferred_element_type=f32)
    ctx = ctx + jnp.dot(attended, w_out_att_ref[...], preferred_element_type=f32)
    ctx = ctx + b_out_ref[...]                                           # (B, ENC)

    x = jnp.maximum(jnp.dot(ctx, mlp_w1_ref[...], preferred_element_type=f32)
                    + mlp_b1_ref[...], 0.0)
    x = jnp.maximum(jnp.dot(x, mlp_w2_ref[...], preferred_element_type=f32)
                    + mlp_b2_ref[...], 0.0)
    out_ref[...] = (jnp.dot(x, mlp_w3_ref[...], preferred_element_type=f32)
                    + mlp_b3_ref[...]).astype(out_ref.dtype)


def context_tail(c_txt, spk_cur, h_txt, spk_hist, pros, lens, p):
    B, hist, _ = h_txt.shape
    n_out = p["mlp_w3"].shape[1]
    return pl.pallas_call(
        functools.partial(_context_tail_kernel, hist=hist),
        out_shape=jax.ShapeDtypeStruct((B, n_out), jnp.float32),
    )(c_txt, spk_cur, h_txt, spk_hist, pros, lens,
      p["w_cur_txt"], p["w_cur_spk"], p["b_cur"],
      p["w_hist_txt"], p["w_hist_spk"], p["w_hist_pros"], p["b_hist"],
      p["gru_c_wi"], p["gru_c_bi"], p["gru_c_wh"], p["gru_c_bh"],
      p["attn_wg"], p["attn_wc"], p["attn_b"], p["attn_v"],
      p["w_out_cur"], p["w_out_att"], p["b_out"],
      p["mlp_w1"], p["mlp_b1"], p["mlp_w2"], p["mlp_b2"], p["mlp_w3"], p["mlp_b3"])


# --------------------------------------------------------------------------- forward
def emotion_predictor_forward(params, speakers, c_txt_embs, h_txt_embs, h_txt_emb_lens,
                              h_speakers, h_emotions, h_prosody_embs, h_prosody_embs_lens):
    B, HIST, T, _ = h_prosody_embs.shape
    N = B * HIST
    K = params["conv_w"].shape[0] // 2
    pad = (K - 1) // 2

    # ---- PEProsodyEncoder: pitch/energy Conv1d + GRU over frames (final hidden only)
    pitch = h_prosody_embs[..., 0].reshape(N, T)
    energy = h_prosody_embs[..., 1].reshape(N, T)
    # pad frames to a multiple of 8 so the recurrent kernel consumes 8-step blocks;
    # padded frames are neutralised by the z-gate forcing inside prosody_gates.
    t_pad = ((T + 7) // 8) * 8
    pitch = jnp.pad(pitch, ((0, 0), (pad, pad + (t_pad - T))))
    energy = jnp.pad(energy, ((0, 0), (pad, pad + (t_pad - T))))
    p_lens = h_prosody_embs_lens.reshape(N, 1).astype(jnp.int32)

    gates_x = prosody_gates(pitch, energy, params["conv_w"], params["conv_b"],
                            params["gru_p_wi"], params["gru_p_bi"], p_lens)  # (N, Tp, 3H)
    h_pros = gru_last(gates_x, params["gru_p_wh"], params["gru_p_bh"])       # (N, GRU)
    h_prosody_emb = h_pros.reshape(B, HIST, -1)                              # (B, HIST, GRU)

    # ---- ConversationalProsodyContextEncoder (reconstruction) + output MLP, fully fused
    spk_cur = jnp.take(params["spk_table"], speakers, axis=0)                # (B, ENC)
    spk_hist = jnp.take(params["spk_table"], h_speakers, axis=0)             # (B, HIST, ENC)
    # emotion_emb is None in this configuration -> h_emotions is unused.
    c_lens = h_txt_emb_lens.reshape(B, 1).astype(jnp.int32)
    logits = context_tail(c_txt_embs, spk_cur, h_txt_embs, spk_hist, h_prosody_emb,
                          c_lens, params)                                    # (B, n_emotions)
    return logits


# ------------------------------------------------------------------------------ main
if __name__ == "__main__":
    key = jax.random.PRNGKey(0)

    # hyper-parameters (module __init__ args, small demo sizes)
    B, HIST, T = 2, 4, 16
    ENC = 32            # encoder_hidden_dim
    CTX = 32            # context_encoder_hidden_dim
    TXT = 32            # text_emb_dim
    GRU = 32            # peprosody_encoder_gru_dim
    LIN = 32            # linear_hidden_dim
    ATTN = 32
    KP = 3              # pitch/energy_embed_kernel_size
    speakers_dict = {"pad": 0, "spk_a": 1, "spk_b": 2, "spk_c": 3}
    emotions_dict = {"neutral": 0, "happy": 1, "sad": 2, "angry": 3, "surprise": 4}
    N_SPK, N_EMO = len(speakers_dict), len(emotions_dict)

    keys = iter(jax.random.split(key, 40))

    def init(shape, scale=0.1):
        return jax.random.normal(next(keys), shape, jnp.float32) * scale

    spk_table = init((N_SPK, ENC)).at[0].set(0.0)   # nn.Embedding padding_idx=0

    # Parameter layouts (mapping from the torch module):
    #  * Conv1d(in=1, out=ENC, k=K) weight (ENC,1,K) -> (K, ENC); pitch taps in rows [0:K],
    #    energy taps in rows [K:2K]; the two conv biases are summed (outputs are added).
    #  * GRU weight_ih_l0 (3H, D) stacked [r|z|n] -> Wi = weight_ih_l0.T  (D, 3H) column
    #    blocks [r|z|n]; same for weight_hh_l0 / biases.
    #  * Linear layers over concatenated inputs are stored as row blocks of the weight:
    #    concat([a;b;c]) @ W == a@W_a + b@W_b + c@W_c.
    params = dict(
        spk_table=spk_table,
        conv_w=init((2 * KP, ENC)), conv_b=init((1, ENC)),
        gru_p_wi=init((ENC, 3 * GRU)), gru_p_bi=init((1, 3 * GRU)),
        gru_p_wh=init((GRU, 3 * GRU)), gru_p_bh=init((1, 3 * GRU)),
        w_cur_txt=init((TXT, CTX)), w_cur_spk=init((ENC, CTX)), b_cur=init((1, CTX)),
        w_hist_txt=init((TXT, CTX)), w_hist_spk=init((ENC, CTX)),
        w_hist_pros=init((GRU, CTX)), b_hist=init((1, CTX)),
        gru_c_wi=init((CTX, 3 * CTX)), gru_c_bi=init((1, 3 * CTX)),
        gru_c_wh=init((CTX, 3 * CTX)), gru_c_bh=init((1, 3 * CTX)),
        attn_wg=init((CTX, ATTN)), attn_wc=init((CTX, ATTN)),
        attn_b=init((1, ATTN)), attn_v=init((ATTN, 1)),
        w_out_cur=init((CTX, ENC)), w_out_att=init((CTX, ENC)), b_out=init((1, ENC)),
        mlp_w1=init((ENC, LIN)), mlp_b1=init((1, LIN)),
        mlp_w2=init((LIN, LIN)), mlp_b2=init((1, LIN)),
        mlp_w3=init((LIN, N_EMO)), mlp_b3=init((1, N_EMO)),
    )

    # inputs (only the arguments the forward pass actually consumes)
    speakers = jnp.array([1, 2], jnp.int32)                           # (B,)
    c_txt_embs = init((B, TXT), 1.0)                                  # (B, TXT)
    h_txt_embs = init((B, HIST, TXT), 1.0)                            # (B, HIST, TXT)
    h_txt_emb_lens = jnp.array([4, 3], jnp.int32)                     # valid history count
    h_speakers = jnp.array([[1, 2, 1, 2], [2, 1, 2, 0]], jnp.int32)   # (B, HIST)
    h_emotions = jnp.array([[0, 1, 2, 3], [1, 0, 4, 0]], jnp.int32)   # unused (emotion_emb=None)
    h_prosody_embs = init((B, HIST, T, 2), 1.0)                       # pitch/energy frames
    h_prosody_embs_lens = jnp.array([[16, 12, 8, 4], [16, 10, 6, 1]], jnp.int32)

    fwd = jax.jit(emotion_predictor_forward)
    logits = fwd(params, speakers, c_txt_embs, h_txt_embs, h_txt_emb_lens,
                 h_speakers, h_emotions, h_prosody_embs, h_prosody_embs_lens)
    jax.block_until_ready(logits)
    assert logits.shape == (B, N_EMO)
    print("KERNEL_OK")
</pallas_src>

<mosaic_0001>
module attributes {stable_mosaic.version = 11 : i64} {
  func.func @_prosody_gates_kernel(%arg0: i32, %arg1: memref<8x18xf32, #tpu.memory_space<vmem>>, %arg2: memref<8x18xf32, #tpu.memory_space<vmem>>, %arg3: memref<6x32xf32, #tpu.memory_space<vmem>>, %arg4: memref<1x32xf32, #tpu.memory_space<vmem>>, %arg5: memref<32x96xf32, #tpu.memory_space<vmem>>, %arg6: memref<1x96xf32, #tpu.memory_space<vmem>>, %arg7: memref<8x1xi32, #tpu.memory_space<vmem>>, %arg8: memref<8x16x96xf32, #tpu.memory_space<vmem>>) attributes {dimension_semantics = [#tpu.dimension_semantics<parallel>], iteration_bounds = array<i64: 1>, scalar_prefetch = 0 : i64, scratch_operands = 0 : i64, tpu.core_type = #tpu.core_type<tc>, window_params = [{transform_indices = @transform_0, window_bounds = array<i64: 8, 18>}, {transform_indices = @transform_1, window_bounds = array<i64: 8, 18>}, {pipeline_mode = #tpu.pipeline_mode<synchronous>, transform_indices = @transform_2, window_bounds = array<i64: 6, 32>}, {pipeline_mode = #tpu.pipeline_mode<synchronous>, transform_indices = @transform_3, window_bounds = array<i64: 1, 32>}, {pipeline_mode = #tpu.pipeline_mode<synchronous>, transform_indices = @transform_4, window_bounds = array<i64: 32, 96>}, {pipeline_mode = #tpu.pipeline_mode<synchronous>, transform_indices = @transform_5, window_bounds = array<i64: 1, 96>}, {transform_indices = @transform_6, window_bounds = array<i64: 8, 1>}, {transform_indices = @transform_7, window_bounds = array<i64: 8, 16, 96>}]} {
    %c0 = arith.constant 0 : index
    %c0_0 = arith.constant 0 : index
    %0 = vector.load %arg1[%c0, %c0_0] : memref<8x18xf32, #tpu.memory_space<vmem>>, vector<8x18xf32>
    %c0_1 = arith.constant 0 : index
    %c0_2 = arith.constant 0 : index
    %1 = vector.load %arg2[%c0_1, %c0_2] : memref<8x18xf32, #tpu.memory_space<vmem>>, vector<8x18xf32>
    %c0_3 = arith.constant 0 : index
    %c0_4 = arith.constant 0 : index
    %2 = vector.load %arg3[%c0_3, %c0_4] : memref<6x32xf32, #tpu.memory_space<vmem>>, vector<6x32xf32>
    %cst = arith.constant 0.000000e+00 : f32
    %3 = vector.broadcast %cst : f32 to vector<8x16x32xf32>
    %c0_5 = arith.constant 0 : index
    %c0_6 = arith.constant 0 : index
    %4 = vector.load %arg4[%c0_5, %c0_6] : memref<1x32xf32, #tpu.memory_space<vmem>>, vector<1x32xf32>
    %5 = vector.shape_cast %4 : vector<1x32xf32> to vector<1x1x32xf32>
    %6 = vector.broadcast %5 : vector<1x1x32xf32> to vector<8x16x32xf32>
    %7 = arith.addf %3, %6 : vector<8x16x32xf32>
    %8 = vector.extract_strided_slice %0 {offsets = [0, 0], sizes = [8, 16], strides = [1, 1]} : vector<8x18xf32> to vector<8x16xf32>
    %9 = vector.shape_cast %8 : vector<8x16xf32> to vector<8x16x1xf32>
    %10 = vector.extract_strided_slice %2 {offsets = [0, 0], sizes = [1, 32], strides = [1, 1]} : vector<6x32xf32> to vector<1x32xf32>
    %11 = vector.shape_cast %10 : vector<1x32xf32> to vector<32xf32>
    %12 = vector.shape_cast %11 : vector<32xf32> to vector<1x1x32xf32>
    %13 = vector.broadcast %9 : vector<8x16x1xf32> to vector<8x16x32xf32>
    %14 = vector.broadcast %12 : vector<1x1x32xf32> to vector<8x16x32xf32>
    %15 = arith.mulf %13, %14 : vector<8x16x32xf32>
    %16 = arith.addf %7, %15 : vector<8x16x32xf32>
    %17 = vector.extract_strided_slice %1 {offsets = [0, 0], sizes = [8, 16], strides = [1, 1]} : vector<8x18xf32> to vector<8x16xf32>
    %18 = vector.shape_cast %17 : vector<8x16xf32> to vector<8x16x1xf32>
    %19 = vector.extract_strided_slice %2 {offsets = [3, 0], sizes = [1, 32], strides = [1, 1]} : vector<6x32xf32> to vector<1x32xf32>
    %20 = vector.shape_cast %19 : vector<1x32xf32> to vector<32xf32>
    %21 = vector.shape_cast %20 : vector<32xf32> to vector<1x1x32xf32>
    %22 = vector.broadcast %18 : vector<8x16x1xf32> to vector<8x16x32xf32>
    %23 = vector.broadcast %21 : vector<1x1x32xf32> to vector<8x16x32xf32>
    %24 = arith.mulf %22, %23 : vector<8x16x32xf32>
    %25 = arith.addf %16, %24 : vector<8x16x32xf32>
    %26 = vector.extract_strided_slice %0 {offsets = [0, 1], sizes = [8, 16], strides = [1, 1]} : vector<8x18xf32> to vector<8x16xf32>
    %27 = vector.shape_cast %26 : vector<8x16xf32> to vector<8x16x1xf32>
    %28 = vector.extract_strided_slice %2 {offsets = [1, 0], sizes = [1, 32], strides = [1, 1]} : vector<6x32xf32> to vector<1x32xf32>
    %29 = vector.shape_cast %28 : vector<1x32xf32> to vector<32xf32>
    %30 = vector.shape_cast %29 : vector<32xf32> to vector<1x1x32xf32>
    %31 = vector.broadcast %27 : vector<8x16x1xf32> to vector<8x16x32xf32>
    %32 = vector.broadcast %30 : vector<1x1x32xf32> to vector<8x16x32xf32>
    %33 = arith.mulf %31, %32 : vector<8x16x32xf32>
    %34 = arith.addf %25, %33 : vector<8x16x32xf32>
    %35 = vector.extract_strided_slice %1 {offsets = [0, 1], sizes = [8, 16], strides = [1, 1]} : vector<8x18xf32> to vector<8x16xf32>
    %36 = vector.shape_cast %35 : vector<8x16xf32> to vector<8x16x1xf32>
    %37 = vector.extract_strided_slice %2 {offsets = [4, 0], sizes = [1, 32], strides = [1, 1]} : vector<6x32xf32> to vector<1x32xf32>
    %38 = vector.shape_cast %37 : vector<1x32xf32> to vector<32xf32>
    %39 = vector.shape_cast %38 : vector<32xf32> to vector<1x1x32xf32>
    %40 = vector.broadcast %36 : vector<8x16x1xf32> to vector<8x16x32xf32>
    %41 = vector.broadcast %39 : vector<1x1x32xf32> to vector<8x16x32xf32>
    %42 = arith.mulf %40, %41 : vector<8x16x32xf32>
    %43 = arith.addf %34, %42 : vector<8x16x32xf32>
    %44 = vector.extract_strided_slice %0 {offsets = [0, 2], sizes = [8, 16], strides = [1, 1]} : vector<8x18xf32> to vector<8x16xf32>
    %45 = vector.shape_cast %44 : vector<8x16xf32> to vector<8x16x1xf32>
    %46 = vector.extract_strided_slice %2 {offsets = [2, 0], sizes = [1, 32], strides = [1, 1]} : vector<6x32xf32> to vector<1x32xf32>
    %47 = vector.shape_cast %46 : vector<1x32xf32> to vector<32xf32>
    %48 = vector.shape_cast %47 : vector<32xf32> to vector<1x1x32xf32>
    %49 = vector.broadcast %45 : vector<8x16x1xf32> to vector<8x16x32xf32>
    %50 = vector.broadcast %48 : vector<1x1x32xf32> to vector<8x16x32xf32>
    %51 = arith.mulf %49, %50 : vector<8x16x32xf32>
    %52 = arith.addf %43, %51 : vector<8x16x32xf32>
    %53 = vector.extract_strided_slice %1 {offsets = [0, 2], sizes = [8, 16], strides = [1, 1]} : vector<8x18xf32> to vector<8x16xf32>
    %54 = vector.shape_cast %53 : vector<8x16xf32> to vector<8x16x1xf32>
    %55 = vector.extract_strided_slice %2 {offsets = [5, 0], sizes = [1, 32], strides = [1, 1]} : vector<6x32xf32> to vector<1x32xf32>
    %56 = vector.shape_cast %55 : vector<1x32xf32> to vector<32xf32>
    %57 = vector.shape_cast %56 : vector<32xf32> to vector<1x1x32xf32>
    %58 = vector.broadcast %54 : vector<8x16x1xf32> to vector<8x16x32xf32>
    %59 = vector.broadcast %57 : vector<1x1x32xf32> to vector<8x16x32xf32>
    %60 = arith.mulf %58, %59 : vector<8x16x32xf32>
    %61 = arith.addf %52, %60 : vector<8x16x32xf32>
    %c0_7 = arith.constant 0 : index
    %c0_8 = arith.constant 0 : index
    %62 = vector.load %arg5[%c0_7, %c0_8] : memref<32x96xf32, #tpu.memory_space<vmem>>, vector<32x96xf32>
    "tpu.trace_start"() <{level = 10 : i32, message = "ntc,cg->ntg"}> : () -> ()
    %cst_9 = arith.constant dense<0.000000e+00> : vector<8x16x96xf32>
    %63 = tpu.matmul %61, %62, %cst_9 {dimension_numbers = #tpu.dot_dimension_numbers<[2], [0], [0, 1], [1], [0, 0, 0, 1, 1, 1], [], []>} : vector<8x16x32xf32>, vector<32x96xf32>, vector<8x16x96xf32> -> vector<8x16x96xf32>
    "tpu.trace_stop"() : () -> ()
    %c0_10 = arith.constant 0 : index
    %c0_11 = arith.constant 0 : index
    %64 = vector.load %arg6[%c0_10, %c0_11] : memref<1x96xf32, #tpu.memory_space<vmem>>, vector<1x96xf32>
    %65 = vector.shape_cast %64 : vector<1x96xf32> to vector<1x1x96xf32>
    %66 = vector.broadcast %65 : vector<1x1x96xf32> to vector<8x16x96xf32>
    %67 = arith.addf %63, %66 : vector<8x16x96xf32>
    %68 = tpu.iota {dimensions = array<i32: 1>} : vector<8x16x96xi32>
    %69 = tpu.iota {dimensions = array<i32: 2>} : vector<8x16x96xi32>
    %c0_12 = arith.constant 0 : index
    %c0_13 = arith.constant 0 : index
    %70 = vector.load %arg7[%c0_12, %c0_13] : memref<8x1xi32, #tpu.memory_space<vmem>>, vector<8x1xi32>
    %71 = vector.shape_cast %70 : vector<8x1xi32> to vector<8x1x1xi32>
    %72 = vector.broadcast %71 : vector<8x1x1xi32> to vector<8x16x96xi32>
    %73 = arith.cmpi sge, %68, %72 : vector<8x16x96xi32>
    %c32_i32 = arith.constant 32 : i32
    %74 = vector.broadcast %c32_i32 : i32 to vector<8x16x96xi32>
    %75 = arith.cmpi sge, %69, %74 : vector<8x16x96xi32>
    %76 = arith.andi %73, %75 : vector<8x16x96xi1>
    %c64_i32 = arith.constant 64 : i32
    %77 = vector.broadcast %c64_i32 : i32 to vector<8x16x96xi32>
    %78 = arith.cmpi slt, %69, %77 : vector<8x16x96xi32>
    %79 = arith.andi %76, %78 : vector<8x16x96xi1>
    %cst_14 = arith.constant 1.000000e+04 : f32
    %cst_15 = arith.constant 0.000000e+00 : f32
    %80 = vector.broadcast %cst_14 : f32 to vector<8x16x96xf32>
    %81 = vector.broadcast %cst_15 : f32 to vector<8x16x96xf32>
    %82 = arith.select %79, %80, %81 : vector<8x16x96xi1>, vector<8x16x96xf32>
    %83 = arith.addf %67, %82 : vector<8x16x96xf32>
    %c0_16 = arith.constant 0 : index
    %c0_17 = arith.constant 0 : index
    %c0_18 = arith.constant 0 : index
    %84 = vector.load %arg8[%c0_16, %c0_17, %c0_18] : memref<8x16x96xf32, #tpu.memory_space<vmem>>, vector<8x16x96xf32>
    tpu.vector_store %arg8[%c0_16, %c0_17, %c0_18], %83 {strides = array<i32>} : memref<8x16x96xf32, #tpu.memory_space<vmem>>, vector<8x16x96xf32>,
    return
  }
  func.func @transform_0(%arg0: i32) -> (i32, i32) {
    %c0_i32 = arith.constant 0 : i32
    %c0_i32_0 = arith.constant 0 : i32
    return %arg0, %c0_i32 : i32, i32
  }
  func.func @transform_1(%arg0: i32) -> (i32, i32) {
    %c0_i32 = arith.constant 0 : i32
    %c0_i32_0 = arith.constant 0 : i32
    return %arg0, %c0_i32 : i32, i32
  }
  func.func @transform_2(%arg0: i32) -> (i32, i32) {
    %c0_i32 = arith.constant 0 : i32
    %c0_i32_0 = arith.constant 0 : i32
    %c0_i32_1 = arith.constant 0 : i32
    return %c0_i32, %c0_i32_0 : i32, i32
  }
  func.func @transform_3(%arg0: i32) -> (i32, i32) {
    %c0_i32 = arith.constant 0 : i32
    %c0_i32_0 = arith.constant 0 : i32
    %c0_i32_1 = arith.constant 0 : i32
    return %c0_i32, %c0_i32_0 : i32, i32
  }
  func.func @transform_4(%arg0: i32) -> (i32, i32) {
    %c0_i32 = arith.constant 0 : i32
    %c0_i32_0 = arith.constant 0 : i32
    %c0_i32_1 = arith.constant 0 : i32
    return %c0_i32, %c0_i32_0 : i32, i32
  }
  func.func @transform_5(%arg0: i32) -> (i32, i32) {
    %c0_i32 = arith.constant 0 : i32
    %c0_i32_0 = arith.constant 0 : i32
    %c0_i32_1 = arith.constant 0 : i32
    return %c0_i32, %c0_i32_0 : i32, i32
  }
  func.func @transform_6(%arg0: i32) -> (i32, i32) {
    %c0_i32 = arith.constant 0 : i32
    %c0_i32_0 = arith.constant 0 : i32
    return %arg0, %c0_i32 : i32, i32
  }
  func.func @transform_7(%arg0: i32) -> (i32, i32, i32) {
    %c0_i32 = arith.constant 0 : i32
    %c0_i32_0 = arith.constant 0 : i32
    %c0_i32_1 = arith.constant 0 : i32
    return %arg0, %c0_i32, %c0_i32_0 : i32, i32, i32
  }
}

module attributes {stable_mosaic.version = 11 : i64} {
  func.func @_gru_scan_kernel(%arg0: i32, %arg1: memref<8x8x96xf32, #tpu.memory_space<vmem>>, %arg2: memref<32x96xf32, #tpu.memory_space<vmem>>, %arg3: memref<1x96xf32, #tpu.memory_space<vmem>>, %arg4: memref<8x32xf32, #tpu.memory_space<vmem>>, %arg5: memref<8x32xf32, #tpu.memory_space<vmem>>) attributes {dimension_semantics = [#tpu.dimension_semantics<arbitrary>], iteration_bounds = array<i64: 2>, scalar_prefetch = 0 : i64, scratch_operands = 1 : i64, tpu.core_type = #tpu.core_type<tc>, window_params = [{transform_indices = @transform_0, window_bounds = array<i64: 8, 8, 96>}, {pipeline_mode = #tpu.pipeline_mode<synchronous>, transform_indices = @transform_1, window_bounds = array<i64: 32, 96>}, {pipeline_mode = #tpu.pipeline_mode<synchronous>, transform_indices = @transform_2, window_bounds = array<i64: 1, 96>}, {pipeline_mode = #tpu.pipeline_mode<synchronous>, transform_indices = @transform_3, window_bounds = array<i64: 8, 32>}]} {
    %c0_i32 = arith.constant 0 : i32
    %0 = arith.cmpi eq, %arg0, %c0_i32 : i32
    %1 = arith.extui %0 : i1 to i32
    %c0_i32_0 = arith.constant 0 : i32
    %2 = arith.cmpi ne, %1, %c0_i32_0 : i32
    scf.if %2 {
      %cst_43 = arith.constant 0.000000e+00 : f32
      %259 = vector.broadcast %cst_43 : f32 to vector<8x32xf32>
      %c0_44 = arith.constant 0 : index
      %c0_45 = arith.constant 0 : index
      %260 = vector.load %arg5[%c0_44, %c0_45] : memref<8x32xf32, #tpu.memory_space<vmem>>, vector<8x32xf32>
      tpu.vector_store %arg5[%c0_44, %c0_45], %259 {strides = array<i32>} : memref<8x32xf32, #tpu.memory_space<vmem>>, vector<8x32xf32>,
    } else {
    }
    %c0 = arith.constant 0 : index
    %c0_1 = arith.constant 0 : index
    %3 = vector.load %arg2[%c0, %c0_1] : memref<32x96xf32, #tpu.memory_space<vmem>>, vector<32x96xf32>
    %c0_2 = arith.constant 0 : index
    %c0_3 = arith.constant 0 : index
    %4 = vector.load %arg3[%c0_2, %c0_3] : memref<1x96xf32, #tpu.memory_space<vmem>>, vector<1x96xf32>
    %c0_4 = arith.constant 0 : index
    %c0_5 = arith.constant 0 : index
    %c0_6 = arith.constant 0 : index
    %5 = vector.load %arg1[%c0_4, %c0_5, %c0_6] : memref<8x8x96xf32, #tpu.memory_space<vmem>>, vector<8x8x96xf32>
    %c0_7 = arith.constant 0 : index
    %c0_8 = arith.constant 0 : index
    %6 = vector.load %arg5[%c0_7, %c0_8] : memref<8x32xf32, #tpu.memory_space<vmem>>, vector<8x32xf32>
    %7 = vector.extract_strided_slice %5 {offsets = [0, 0, 0], sizes = [8, 1, 96], strides = [1, 1, 1]} : vector<8x8x96xf32> to vector<8x1x96xf32>
    %8 = vector.shape_cast %7 : vector<8x1x96xf32> to vector<8x96xf32>
    %cst = arith.constant dense<0.000000e+00> : vector<8x96xf32>
    %9 = tpu.matmul %6, %3, %cst {dimension_numbers = #tpu.dot_dimension_numbers<[1], [0], [0], [1], [0, 0, 1, 1], [], []>} : vector<8x32xf32>, vector<32x96xf32>, vector<8x96xf32> -> vector<8x96xf32>
    %10 = vector.broadcast %4 : vector<1x96xf32> to vector<8x96xf32>
    %11 = arith.addf %9, %10 : vector<8x96xf32>
    %12 = vector.extract_strided_slice %8 {offsets = [0, 0], sizes = [8, 32], strides = [1, 1]} : vector<8x96xf32> to vector<8x32xf32>
    %13 = vector.extract_strided_slice %11 {offsets = [0, 0], sizes = [8, 32], strides = [1, 1]} : vector<8x96xf32> to vector<8x32xf32>
    %14 = arith.addf %12, %13 : vector<8x32xf32>
    %15 = arith.negf %14 : vector<8x32xf32>
    %16 = math.exp %15 : vector<8x32xf32>
    %cst_9 = arith.constant 1.000000e+00 : f32
    %17 = vector.broadcast %cst_9 : f32 to vector<8x32xf32>
    %18 = arith.addf %17, %16 : vector<8x32xf32>
    %19 = arith.divf %17, %18 : vector<8x32xf32>
    %20 = vector.extract_strided_slice %8 {offsets = [0, 32], sizes = [8, 32], strides = [1, 1]} : vector<8x96xf32> to vector<8x32xf32>
    %21 = vector.extract_strided_slice %11 {offsets = [0, 32], sizes = [8, 32], strides = [1, 1]} : vector<8x96xf32> to vector<8x32xf32>
    %22 = arith.addf %20, %21 : vector<8x32xf32>
    %23 = arith.negf %22 : vector<8x32xf32>
    %24 = math.exp %23 : vector<8x32xf32>
    %cst_10 = arith.constant 1.000000e+00 : f32
    %25 = vector.broadcast %cst_10 : f32 to vector<8x32xf32>
    %26 = arith.addf %25, %24 : vector<8x32xf32>
    %27 = arith.divf %25, %26 : vector<8x32xf32>
    %28 = vector.extract_strided_slice %8 {offsets = [0, 64], sizes = [8, 32], strides = [1, 1]} : vector<8x96xf32> to vector<8x32xf32>
    %29 = vector.extract_strided_slice %11 {offsets = [0, 64], sizes = [8, 32], strides = [1, 1]} : vector<8x96xf32> to vector<8x32xf32>
    %30 = arith.mulf %19, %29 : vector<8x32xf32>
    %31 = arith.addf %28, %30 : vector<8x32xf32>
    %32 = math.tanh %31 : vector<8x32xf32>
    %cst_11 = arith.constant 1.000000e+00 : f32
    %33 = vector.broadcast %cst_11 : f32 to vector<8x32xf32>
    %34 = arith.subf %33, %27 : vector<8x32xf32>
    %35 = arith.mulf %34, %32 : vector<8x32xf32>
    %36 = arith.mulf %27, %6 : vector<8x32xf32>
    %37 = arith.addf %35, %36 : vector<8x32xf32>
    %38 = vector.extract_strided_slice %5 {offsets = [0, 1, 0], sizes = [8, 1, 96], strides = [1, 1, 1]} : vector<8x8x96xf32> to vector<8x1x96xf32>
    %39 = vector.shape_cast %38 : vector<8x1x96xf32> to vector<8x96xf32>
    %cst_12 = arith.constant dense<0.000000e+00> : vector<8x96xf32>
    %40 = tpu.matmul %37, %3, %cst_12 {dimension_numbers = #tpu.dot_dimension_numbers<[1], [0], [0], [1], [0, 0, 1, 1], [], []>} : vector<8x32xf32>, vector<32x96xf32>, vector<8x96xf32> -> vector<8x96xf32>
    %41 = vector.broadcast %4 : vector<1x96xf32> to vector<8x96xf32>
    %42 = arith.addf %40, %41 : vector<8x96xf32>
    %43 = vector.extract_strided_slice %39 {offsets = [0, 0], sizes = [8, 32], strides = [1, 1]} : vector<8x96xf32> to vector<8x32xf32>
    %44 = vector.extract_strided_slice %42 {offsets = [0, 0], sizes = [8, 32], strides = [1, 1]} : vector<8x96xf32> to vector<8x32xf32>
    %45 = arith.addf %43, %44 : vector<8x32xf32>
    %46 = arith.negf %45 : vector<8x32xf32>
    %47 = math.exp %46 : vector<8x32xf32>
    %cst_13 = arith.constant 1.000000e+00 : f32
    %48 = vector.broadcast %cst_13 : f32 to vector<8x32xf32>
    %49 = arith.addf %48, %47 : vector<8x32xf32>
    %50 = arith.divf %48, %49 : vector<8x32xf32>
    %51 = vector.extract_strided_slice %39 {offsets = [0, 32], sizes = [8, 32], strides = [1, 1]} : vector<8x96xf32> to vector<8x32xf32>
    %52 = vector.extract_strided_slice %42 {offsets = [0, 32], sizes = [8, 32], strides = [1, 1]} : vector<8x96xf32> to vector<8x32xf32>
    %53 = arith.addf %51, %52 : vector<8x32xf32>
    %54 = arith.negf %53 : vector<8x32xf32>
    %55 = math.exp %54 : vector<8x32xf32>
    %cst_14 = arith.constant 1.000000e+00 : f32
    %56 = vector.broadcast %cst_14 : f32 to vector<8x32xf32>
    %57 = arith.addf %56, %55 : vector<8x32xf32>
    %58 = arith.divf %56, %57 : vector<8x32xf32>
    %59 = vector.extract_strided_slice %39 {offsets = [0, 64], sizes = [8, 32], strides = [1, 1]} : vector<8x96xf32> to vector<8x32xf32>
    %60 = vector.extract_strided_slice %42 {offsets = [0, 64], sizes = [8, 32], strides = [1, 1]} : vector<8x96xf32> to vector<8x32xf32>
    %61 = arith.mulf %50, %60 : vector<8x32xf32>
    %62 = arith.addf %59, %61 : vector<8x32xf32>
    %63 = math.tanh %62 : vector<8x32xf32>
    %cst_15 = arith.constant 1.000000e+00 : f32
    %64 = vector.broadcast %cst_15 : f32 to vector<8x32xf32>
    %65 = arith.subf %64, %58 : vector<8x32xf32>
    %66 = arith.mulf %65, %63 : vector<8x32xf32>
    %67 = arith.mulf %58, %37 : vector<8x32xf32>
    %68 = arith.addf %66, %67 : vector<8x32xf32>
    %69 = vector.extract_strided_slice %5 {offsets = [0, 2, 0], sizes = [8, 1, 96], strides = [1, 1, 1]} : vector<8x8x96xf32> to vector<8x1x96xf32>
    %70 = vector.shape_cast %69 : vector<8x1x96xf32> to vector<8x96xf32>
    %cst_16 = arith.constant dense<0.000000e+00> : vector<8x96xf32>
    %71 = tpu.matmul %68, %3, %cst_16 {dimension_numbers = #tpu.dot_dimension_numbers<[1], [0], [0], [1], [0, 0, 1, 1], [], []>} : vector<8x32xf32>, vector<32x96xf32>, vector<8x96xf32> -> vector<8x96xf32>
    %72 = vector.broadcast %4 : vector<1x96xf32> to vector<8x96xf32>
    %73 = arith.addf %71, %72 : vector<8x96xf32>
    %74 = vector.extract_strided_slice %70 {offsets = [0, 0], sizes = [8, 32], strides = [1, 1]} : vector<8x96xf32> to vector<8x32xf32>
    %75 = vector.extract_strided_slice %73 {offsets = [0, 0], sizes = [8, 32], strides = [1, 1]} : vector<8x96xf32> to vector<8x32xf32>
    %76 = arith.addf %74, %75 : vector<8x32xf32>
    %77 = arith.negf %76 : vector<8x32xf32>
    %78 = math.exp %77 : vector<8x32xf32>
    %cst_17 = arith.constant 1.000000e+00 : f32
    %79 = vector.broadcast %cst_17 : f32 to vector<8x32xf32>
    %80 = arith.addf %79, %78 : vector<8x32xf32>
    %81 = arith.divf %79, %80 : vector<8x32xf32>
    %82 = vector.extract_strided_slice %70 {offsets = [0, 32], sizes = [8, 32], strides = [1, 1]} : vector<8x96xf32> to vector<8x32xf32>
    %83 = vector.extract_strided_slice %73 {offsets = [0, 32], sizes = [8, 32], strides = [1, 1]} : vector<8x96xf32> to vector<8x32xf32>
    %84 = arith.addf %82, %83 : vector<8x32xf32>
    %85 = arith.negf %84 : vector<8x32xf32>
    %86 = math.exp %85 : vector<8x32xf32>
    %cst_18 = arith.constant 1.000000e+00 : f32
    %87 = vector.broadcast %cst_18 : f32 to vector<8x32xf32>
    %88 = arith.addf %87, %86 : vector<8x32xf32>
    %89 = arith.divf %87, %88 : vector<8x32xf32>
    %90 = vector.extract_strided_slice %70 {offsets = [0, 64], sizes = [8, 32], strides = [1, 1]} : vector<8x96xf32> to vector<8x32xf32>
    %91 = vector.extract_strided_slice %73 {offsets = [0, 64], sizes = [8, 32], strides = [1, 1]} : vector<8x96xf32> to vector<8x32xf32>
    %92 = arith.mulf %81, %91 : vector<8x32xf32>
    %93 = arith.addf %90, %92 : vector<8x32xf32>
    %94 = math.tanh %93 : vector<8x32xf32>
    %cst_19 = arith.constant 1.000000e+00 : f32
    %95 = vector.broadcast %cst_19 : f32 to vector<8x32xf32>
    %96 = arith.subf %95, %89 : vector<8x32xf32>
    %97 = arith.mulf %96, %94 : vector<8x32xf32>
    %98 = arith.mulf %89, %68 : vector<8x32xf32>
    %99 = arith.addf %97, %98 : vector<8x32xf32>
    %100 = vector.extract_strided_slice %5 {offsets = [0, 3, 0], sizes = [8, 1, 96], strides = [1, 1, 1]} : vector<8x8x96xf32> to vector<8x1x96xf32>
    %101 = vector.shape_cast %100 : vector<8x1x96xf32> to vector<8x96xf32>
    %cst_20 = arith.constant dense<0.000000e+00> : vector<8x96xf32>
    %102 = tpu.matmul %99, %3, %cst_20 {dimension_numbers = #tpu.dot_dimension_numbers<[1], [0], [0], [1], [0, 0, 1, 1], [], []>} : vector<8x32xf32>, vector<32x96xf32>, vector<8x96xf32> -> vector<8x96xf32>
    %103 = vector.broadcast %4 : vector<1x96xf32> to vector<8x96xf32>
    %104 = arith.addf %102, %103 : vector<8x96xf32>
    %105 = vector.extract_strided_slice %101 {offsets = [0, 0], sizes = [8, 32], strides = [1, 1]} : vector<8x96xf32> to vector<8x32xf32>
    %106 = vector.extract_strided_slice %104 {offsets = [0, 0], sizes = [8, 32], strides = [1, 1]} : vector<8x96xf32> to vector<8x32xf32>
    %107 = arith.addf %105, %106 : vector<8x32xf32>
    %108 = arith.negf %107 : vector<8x32xf32>
    %109 = math.exp %108 : vector<8x32xf32>
    %cst_21 = arith.constant 1.000000e+00 : f32
    %110 = vector.broadcast %cst_21 : f32 to vector<8x32xf32>
    %111 = arith.addf %110, %109 : vector<8x32xf32>
    %112 = arith.divf %110, %111 : vector<8x32xf32>
    %113 = vector.extract_strided_slice %101 {offsets = [0, 32], sizes = [8, 32], strides = [1, 1]} : vector<8x96xf32> to vector<8x32xf32>
    %114 = vector.extract_strided_slice %104 {offsets = [0, 32], sizes = [8, 32], strides = [1, 1]} : vector<8x96xf32> to vector<8x32xf32>
    %115 = arith.addf %113, %114 : vector<8x32xf32>
    %116 = arith.negf %115 : vector<8x32xf32>
    %117 = math.exp %116 : vector<8x32xf32>
    %cst_22 = arith.constant 1.000000e+00 : f32
    %118 = vector.broadcast %cst_22 : f32 to vector<8x32xf32>
    %119 = arith.addf %118, %117 : vector<8x32xf32>
    %120 = arith.divf %118, %119 : vector<8x32xf32>
    %121 = vector.extract_strided_slice %101 {offsets = [0, 64], sizes = [8, 32], strides = [1, 1]} : vector<8x96xf32> to vector<8x32xf32>
    %122 = vector.extract_strided_slice %104 {offsets = [0, 64], sizes = [8, 32], strides = [1, 1]} : vector<8x96xf32> to vector<8x32xf32>
    %123 = arith.mulf %112, %122 : vector<8x32xf32>
    %124 = arith.addf %121, %123 : vector<8x32xf32>
    %125 = math.tanh %124 : vector<8x32xf32>
    %cst_23 = arith.constant 1.000000e+00 : f32
    %126 = vector.broadcast %cst_23 : f32 to vector<8x32xf32>
    %127 = arith.subf %126, %120 : vector<8x32xf32>
    %128 = arith.mulf %127, %125 : vector<8x32xf32>
    %129 = arith.mulf %120, %99 : vector<8x32xf32>
    %130 = arith.addf %128, %129 : vector<8x32xf32>
    %131 = vector.extract_strided_slice %5 {offsets = [0, 4, 0], sizes = [8, 1, 96], strides = [1, 1, 1]} : vector<8x8x96xf32> to vector<8x1x96xf32>
    %132 = vector.shape_cast %131 : vector<8x1x96xf32> to vector<8x96xf32>
    %cst_24 = arith.constant dense<0.000000e+00> : vector<8x96xf32>
    %133 = tpu.matmul %130, %3, %cst_24 {dimension_numbers = #tpu.dot_dimension_numbers<[1], [0], [0], [1], [0, 0, 1, 1], [], []>} : vector<8x32xf32>, vector<32x96xf32>, vector<8x96xf32> -> vector<8x96xf32>
    %134 = vector.broadcast %4 : vector<1x96xf32> to vector<8x96xf32>
    %135 = arith.addf %133, %134 : vector<8x96xf32>
    %136 = vector.extract_strided_slice %132 {offsets = [0, 0], sizes = [8, 32], strides = [1, 1]} : vector<8x96xf32> to vector<8x32xf32>
    %137 = vector.extract_strided_slice %135 {offsets = [0, 0], sizes = [8, 32], strides = [1, 1]} : vector<8x96xf32> to vector<8x32xf32>
    %138 = arith.addf %136, %137 : vector<8x32xf32>
    %139 = arith.negf %138 : vector<8x32xf32>
    %140 = math.exp %139 : vector<8x32xf32>
    %cst_25 = arith.constant 1.000000e+00 : f32
    %141 = vector.broadcast %cst_25 : f32 to vector<8x32xf32>
    %142 = arith.addf %141, %140 : vector<8x32xf32>
    %143 = arith.divf %141, %142 : vector<8x32xf32>
    %144 = vector.extract_strided_slice %132 {offsets = [0, 32], sizes = [8, 32], strides = [1, 1]} : vector<8x96xf32> to vector<8x32xf32>
    %145 = vector.extract_strided_slice %135 {offsets = [0, 32], sizes = [8, 32], strides = [1, 1]} : vector<8x96xf32> to vector<8x32xf32>
    %146 = arith.addf %144, %145 : vector<8x32xf32>
    %147 = arith.negf %146 : vector<8x32xf32>
    %148 = math.exp %147 : vector<8x32xf32>
    %cst_26 = arith.constant 1.000000e+00 : f32
    %149 = vector.broadcast %cst_26 : f32 to vector<8x32xf32>
    %150 = arith.addf %149, %148 : vector<8x32xf32>
    %151 = arith.divf %149, %150 : vector<8x32xf32>
    %152 = vector.extract_strided_slice %132 {offsets = [0, 64], sizes = [8, 32], strides = [1, 1]} : vector<8x96xf32> to vector<8x32xf32>
    %153 = vector.extract_strided_slice %135 {offsets = [0, 64], sizes = [8, 32], strides = [1, 1]} : vector<8x96xf32> to vector<8x32xf32>
    %154 = arith.mulf %143, %153 : vector<8x32xf32>
    %155 = arith.addf %152, %154 : vector<8x32xf32>
    %156 = math.tanh %155 : vector<8x32xf32>
    %cst_27 = arith.constant 1.000000e+00 : f32
    %157 = vector.broadcast %cst_27 : f32 to vector<8x32xf32>
    %158 = arith.subf %157, %151 : vector<8x32xf32>
    %159 = arith.mulf %158, %156 : vector<8x32xf32>
    %160 = arith.mulf %151, %130 : vector<8x32xf32>
    %161 = arith.addf %159, %160 : vector<8x32xf32>
    %162 = vector.extract_strided_slice %5 {offsets = [0, 5, 0], sizes = [8, 1, 96], strides = [1, 1, 1]} : vector<8x8x96xf32> to vector<8x1x96xf32>
    %163 = vector.shape_cast %162 : vector<8x1x96xf32> to vector<8x96xf32>
    %cst_28 = arith.constant dense<0.000000e+00> : vector<8x96xf32>
    %164 = tpu.matmul %161, %3, %cst_28 {dimension_numbers = #tpu.dot_dimension_numbers<[1], [0], [0], [1], [0, 0, 1, 1], [], []>} : vector<8x32xf32>, vector<32x96xf32>, vector<8x96xf32> -> vector<8x96xf32>
    %165 = vector.broadcast %4 : vector<1x96xf32> to vector<8x96xf32>
    %166 = arith.addf %164, %165 : vector<8x96xf32>
    %167 = vector.extract_strided_slice %163 {offsets = [0, 0], sizes = [8, 32], strides = [1, 1]} : vector<8x96xf32> to vector<8x32xf32>
    %168 = vector.extract_strided_slice %166 {offsets = [0, 0], sizes = [8, 32], strides = [1, 1]} : vector<8x96xf32> to vector<8x32xf32>
    %169 = arith.addf %167, %168 : vector<8x32xf32>
    %170 = arith.negf %169 : vector<8x32xf32>
    %171 = math.exp %170 : vector<8x32xf32>
    %cst_29 = arith.constant 1.000000e+00 : f32
    %172 = vector.broadcast %cst_29 : f32 to vector<8x32xf32>
    %173 = arith.addf %172, %171 : vector<8x32xf32>
    %174 = arith.divf %172, %173 : vector<8x32xf32>
    %175 = vector.extract_strided_slice %163 {offsets = [0, 32], sizes = [8, 32], strides = [1, 1]} : vector<8x96xf32> to vector<8x32xf32>
    %176 = vector.extract_strided_slice %166 {offsets = [0, 32], sizes = [8, 32], strides = [1, 1]} : vector<8x96xf32> to vector<8x32xf32>
    %177 = arith.addf %175, %176 : vector<8x32xf32>
    %178 = arith.negf %177 : vector<8x32xf32>
    %179 = math.exp %178 : vector<8x32xf32>
    %cst_30 = arith.constant 1.000000e+00 : f32
    %180 = vector.broadcast %cst_30 : f32 to vector<8x32xf32>
    %181 = arith.addf %180, %179 : vector<8x32xf32>
    %182 = arith.divf %180, %181 : vector<8x32xf32>
    %183 = vector.extract_strided_slice %163 {offsets = [0, 64], sizes = [8, 32], strides = [1, 1]} : vector<8x96xf32> to vector<8x32xf32>
    %184 = vector.extract_strided_slice %166 {offsets = [0, 64], sizes = [8, 32], strides = [1, 1]} : vector<8x96xf32> to vector<8x32xf32>
    %185 = arith.mulf %174, %184 : vector<8x32xf32>
    %186 = arith.addf %183, %185 : vector<8x32xf32>
    %187 = math.tanh %186 : vector<8x32xf32>
    %cst_31 = arith.constant 1.000000e+00 : f32
    %188 = vector.broadcast %cst_31 : f32 to vector<8x32xf32>
    %189 = arith.subf %188, %182 : vector<8x32xf32>
    %190 = arith.mulf %189, %187 : vector<8x32xf32>
    %191 = arith.mulf %182, %161 : vector<8x32xf32>
    %192 = arith.addf %190, %191 : vector<8x32xf32>
    %193 = vector.extract_strided_slice %5 {offsets = [0, 6, 0], sizes = [8, 1, 96], strides = [1, 1, 1]} : vector<8x8x96xf32> to vector<8x1x96xf32>
    %194 = vector.shape_cast %193 : vector<8x1x96xf32> to vector<8x96xf32>
    %cst_32 = arith.constant dense<0.000000e+00> : vector<8x96xf32>
    %195 = tpu.matmul %192, %3, %cst_32 {dimension_numbers = #tpu.dot_dimension_numbers<[1], [0], [0], [1], [0, 0, 1, 1], [], []>} : vector<8x32xf32>, vector<32x96xf32>, vector<8x96xf32> -> vector<8x96xf32>
    %196 = vector.broadcast %4 : vector<1x96xf32> to vector<8x96xf32>
    %197 = arith.addf %195, %196 : vector<8x96xf32>
    %198 = vector.extract_strided_slice %194 {offsets = [0, 0], sizes = [8, 32], strides = [1, 1]} : vector<8x96xf32> to vector<8x32xf32>
    %199 = vector.extract_strided_slice %197 {offsets = [0, 0], sizes = [8, 32], strides = [1, 1]} : vector<8x96xf32> to vector<8x32xf32>
    %200 = arith.addf %198, %199 : vector<8x32xf32>
    %201 = arith.negf %200 : vector<8x32xf32>
    %202 = math.exp %201 : vector<8x32xf32>
    %cst_33 = arith.constant 1.000000e+00 : f32
    %203 = vector.broadcast %cst_33 : f32 to vector<8x32xf32>
    %204 = arith.addf %203, %202 : vector<8x32xf32>
    %205 = arith.divf %203, %204 : vector<8x32xf32>
    %206 = vector.extract_strided_slice %194 {offsets = [0, 32], sizes = [8, 32], strides = [1, 1]} : vector<8x96xf32> to vector<8x32xf32>
    %207 = vector.extract_strided_slice %197 {offsets = [0, 32], sizes = [8, 32], strides = [1, 1]} : vector<8x96xf32> to vector<8x32xf32>
    %208 = arith.addf %206, %207 : vector<8x32xf32>
    %209 = arith.negf %208 : vector<8x32xf32>
    %210 = math.exp %209 : vector<8x32xf32>
    %cst_34 = arith.constant 1.000000e+00 : f32
    %211 = vector.broadcast %cst_34 : f32 to vector<8x32xf32>
    %212 = arith.addf %211, %210 : vector<8x32xf32>
    %213 = arith.divf %211, %212 : vector<8x32xf32>
    %214 = vector.extract_strided_slice %194 {offsets = [0, 64], sizes = [8, 32], strides = [1, 1]} : vector<8x96xf32> to vector<8x32xf32>
    %215 = vector.extract_strided_slice %197 {offsets = [0, 64], sizes = [8, 32], strides = [1, 1]} : vector<8x96xf32> to vector<8x32xf32>
    %216 = arith.mulf %205, %215 : vector<8x32xf32>
    %217 = arith.addf %214, %216 : vector<8x32xf32>
    %218 = math.tanh %217 : vector<8x32xf32>
    %cst_35 = arith.constant 1.000000e+00 : f32
    %219 = vector.broadcast %cst_35 : f32 to vector<8x32xf32>
    %220 = arith.subf %219, %213 : vector<8x32xf32>
    %221 = arith.mulf %220, %218 : vector<8x32xf32>
    %222 = arith.mulf %213, %192 : vector<8x32xf32>
    %223 = arith.addf %221, %222 : vector<8x32xf32>
    %224 = vector.extract_strided_slice %5 {offsets = [0, 7, 0], sizes = [8, 1, 96], strides = [1, 1, 1]} : vector<8x8x96xf32> to vector<8x1x96xf32>
    %225 = vector.shape_cast %224 : vector<8x1x96xf32> to vector<8x96xf32>
    %cst_36 = arith.constant dense<0.000000e+00> : vector<8x96xf32>
    %226 = tpu.matmul %223, %3, %cst_36 {dimension_numbers = #tpu.dot_dimension_numbers<[1], [0], [0], [1], [0, 0, 1, 1], [], []>} : vector<8x32xf32>, vector<32x96xf32>, vector<8x96xf32> -> vector<8x96xf32>
    %227 = vector.broadcast %4 : vector<1x96xf32> to vector<8x96xf32>
    %228 = arith.addf %226, %227 : vector<8x96xf32>
    %229 = vector.extract_strided_slice %225 {offsets = [0, 0], sizes = [8, 32], strides = [1, 1]} : vector<8x96xf32> to vector<8x32xf32>
    %230 = vector.extract_strided_slice %228 {offsets = [0, 0], sizes = [8, 32], strides = [1, 1]} : vector<8x96xf32> to vector<8x32xf32>
    %231 = arith.addf %229, %230 : vector<8x32xf32>
    %232 = arith.negf %231 : vector<8x32xf32>
    %233 = math.exp %232 : vector<8x32xf32>
    %cst_37 = arith.constant 1.000000e+00 : f32
    %234 = vector.broadcast %cst_37 : f32 to vector<8x32xf32>
    %235 = arith.addf %234, %233 : vector<8x32xf32>
    %236 = arith.divf %234, %235 : vector<8x32xf32>
    %237 = vector.extract_strided_slice %225 {offsets = [0, 32], sizes = [8, 32], strides = [1, 1]} : vector<8x96xf32> to vector<8x32xf32>
    %238 = vector.extract_strided_slice %228 {offsets = [0, 32], sizes = [8, 32], strides = [1, 1]} : vector<8x96xf32> to vector<8x32xf32>
    %239 = arith.addf %237, %238 : vector<8x32xf32>
    %240 = arith.negf %239 : vector<8x32xf32>
    %241 = math.exp %240 : vector<8x32xf32>
    %cst_38 = arith.constant 1.000000e+00 : f32
    %242 = vector.broadcast %cst_38 : f32 to vector<8x32xf32>
    %243 = arith.addf %242, %241 : vector<8x32xf32>
    %244 = arith.divf %242, %243 : vector<8x32xf32>
    %245 = vector.extract_strided_slice %225 {offsets = [0, 64], sizes = [8, 32], strides = [1, 1]} : vector<8x96xf32> to vector<8x32xf32>
    %246 = vector.extract_strided_slice %228 {offsets = [0, 64], sizes = [8, 32], strides = [1, 1]} : vector<8x96xf32> to vector<8x32xf32>
    %247 = arith.mulf %236, %246 : vector<8x32xf32>
    %248 = arith.addf %245, %247 : vector<8x32xf32>
    %249 = math.tanh %248 : vector<8x32xf32>
    %cst_39 = arith.constant 1.000000e+00 : f32
    %250 = vector.broadcast %cst_39 : f32 to vector<8x32xf32>
    %251 = arith.subf %250, %244 : vector<8x32xf32>
    %252 = arith.mulf %251, %249 : vector<8x32xf32>
    %253 = arith.mulf %244, %223 : vector<8x32xf32>
    %254 = arith.addf %252, %253 : vector<8x32xf32>
    %c0_40 = arith.constant 0 : index
    %c0_41 = arith.constant 0 : index
    %255 = vector.load %arg5[%c0_40, %c0_41] : memref<8x32xf32, #tpu.memory_space<vmem>>, vector<8x32xf32>
    tpu.vector_store %arg5[%c0_40, %c0_41], %254 {strides = array<i32>} : memref<8x32xf32, #tpu.memory_space<vmem>>, vector<8x32xf32>,
    %c1_i32 = arith.constant 1 : i32
    %256 = arith.cmpi eq, %arg0, %c1_i32 : i32
    %257 = arith.extui %256 : i1 to i32
    %c0_i32_42 = arith.constant 0 : i32
    %258 = arith.cmpi ne, %257, %c0_i32_42 : i32
    scf.if %258 {
      %c0_43 = arith.constant 0 : index
      %c0_44 = arith.constant 0 : index
      %259 = vector.load %arg4[%c0_43, %c0_44] : memref<8x32xf32, #tpu.memory_space<vmem>>, vector<8x32xf32>
      tpu.vector_store %arg4[%c0_43, %c0_44], %254 {strides = array<i32>} : memref<8x32xf32, #tpu.memory_space<vmem>>, vector<8x32xf32>,
    } else {
    }
    return
  }
  func.func @transform_0(%arg0: i32) -> (i32, i32, i32) {
    %c0_i32 = arith.constant 0 : i32
    %c0_i32_0 = arith.constant 0 : i32
    %c0_i32_1 = arith.constant 0 : i32
    return %c0_i32, %arg0, %c0_i32_0 : i32, i32, i32
  }
  func.func @transform_1(%arg0: i32) -> (i32, i32) {
    %c0_i32 = arith.constant 0 : i32
    %c0_i32_0 = arith.constant 0 : i32
    %c0_i32_1 = arith.constant 0 : i32
    return %c0_i32, %c0_i32_0 : i32, i32
  }
  func.func @transform_2(%arg0: i32) -> (i32, i32) {
    %c0_i32 = arith.constant 0 : i32
    %c0_i32_0 = arith.constant 0 : i32
    %c0_i32_1 = arith.constant 0 : i32
    return %c0_i32, %c0_i32_0 : i32, i32
  }
  func.func @transform_3(%arg0: i32) -> (i32, i32) {
    %c0_i32 = arith.constant 0 : i32
    %c0_i32_0 = arith.constant 0 : i32
    %c0_i32_1 = arith.constant 0 : i32
    return %c0_i32, %c0_i32_0 : i32, i32
  }
}

module attributes {stable_mosaic.version = 11 : i64} {
  func.func @_context_tail_kernel(%arg0: memref<2x32xf32, #tpu.memory_space<vmem>>, %arg1: memref<2x32xf32, #tpu.memory_space<vmem>>, %arg2: memref<2x4x32xf32, #tpu.memory_space<vmem>>, %arg3: memref<2x4x32xf32, #tpu.memory_space<vmem>>, %arg4: memref<2x4x32xf32, #tpu.memory_space<vmem>>, %arg5: memref<2x1xi32, #tpu.memory_space<vmem>>, %arg6: memref<32x32xf32, #tpu.memory_space<vmem>>, %arg7: memref<32x32xf32, #tpu.memory_space<vmem>>, %arg8: memref<1x32xf32, #tpu.memory_space<vmem>>, %arg9: memref<32x32xf32, #tpu.memory_space<vmem>>, %arg10: memref<32x32xf32, #tpu.memory_space<vmem>>, %arg11: memref<32x32xf32, #tpu.memory_space<vmem>>, %arg12: memref<1x32xf32, #tpu.memory_space<vmem>>, %arg13: memref<32x96xf32, #tpu.memory_space<vmem>>, %arg14: memref<1x96xf32, #tpu.memory_space<vmem>>, %arg15: memref<32x96xf32, #tpu.memory_space<vmem>>, %arg16: memref<1x96xf32, #tpu.memory_space<vmem>>, %arg17: memref<32x32xf32, #tpu.memory_space<vmem>>, %arg18: memref<32x32xf32, #tpu.memory_space<vmem>>, %arg19: memref<1x32xf32, #tpu.memory_space<vmem>>, %arg20: memref<32x1xf32, #tpu.memory_space<vmem>>, %arg21: memref<32x32xf32, #tpu.memory_space<vmem>>, %arg22: memref<32x32xf32, #tpu.memory_space<vmem>>, %arg23: memref<1x32xf32, #tpu.memory_space<vmem>>, %arg24: memref<32x32xf32, #tpu.memory_space<vmem>>, %arg25: memref<1x32xf32, #tpu.memory_space<vmem>>, %arg26: memref<32x32xf32, #tpu.memory_space<vmem>>, %arg27: memref<1x32xf32, #tpu.memory_space<vmem>>, %arg28: memref<32x5xf32, #tpu.memory_space<vmem>>, %arg29: memref<1x5xf32, #tpu.memory_space<vmem>>, %arg30: memref<2x5xf32, #tpu.memory_space<vmem>>) attributes {dimension_semantics = [], scalar_prefetch = 0 : i64, scratch_operands = 0 : i64, tpu.core_type = #tpu.core_type<tc>} {
    %c0 = arith.constant 0 : index
    %c0_0 = arith.constant 0 : index
    %0 = vector.load %arg0[%c0, %c0_0] : memref<2x32xf32, #tpu.memory_space<vmem>>, vector<2x32xf32>
    %c0_1 = arith.constant 0 : index
    %c0_2 = arith.constant 0 : index
    %1 = vector.load %arg6[%c0_1, %c0_2] : memref<32x32xf32, #tpu.memory_space<vmem>>, vector<32x32xf32>
    %cst = arith.constant dense<0.000000e+00> : vector<2x32xf32>
    %2 = tpu.matmul %0, %1, %cst {dimension_numbers = #tpu.dot_dimension_numbers<[1], [0], [0], [1], [0, 0, 1, 1], [], []>} : vector<2x32xf32>, vector<32x32xf32>, vector<2x32xf32> -> vector<2x32xf32>
    %c0_3 = arith.constant 0 : index
    %c0_4 = arith.constant 0 : index
    %3 = vector.load %arg1[%c0_3, %c0_4] : memref<2x32xf32, #tpu.memory_space<vmem>>, vector<2x32xf32>
    %c0_5 = arith.constant 0 : index
    %c0_6 = arith.constant 0 : index
    %4 = vector.load %arg7[%c0_5, %c0_6] : memref<32x32xf32, #tpu.memory_space<vmem>>, vector<32x32xf32>
    %cst_7 = arith.constant dense<0.000000e+00> : vector<2x32xf32>
    %5 = tpu.matmul %3, %4, %cst_7 {dimension_numbers = #tpu.dot_dimension_numbers<[1], [0], [0], [1], [0, 0, 1, 1], [], []>} : vector<2x32xf32>, vector<32x32xf32>, vector<2x32xf32> -> vector<2x32xf32>
    %6 = arith.addf %2, %5 : vector<2x32xf32>
    %c0_8 = arith.constant 0 : index
    %c0_9 = arith.constant 0 : index
    %7 = vector.load %arg8[%c0_8, %c0_9] : memref<1x32xf32, #tpu.memory_space<vmem>>, vector<1x32xf32>
    %8 = vector.broadcast %7 : vector<1x32xf32> to vector<2x32xf32>
    %9 = arith.addf %6, %8 : vector<2x32xf32>
    %cst_10 = arith.constant 0.000000e+00 : f32
    %10 = vector.broadcast %cst_10 : f32 to vector<2x32xf32>
    %11 = arith.maximumf %9, %10 : vector<2x32xf32>
    %c0_11 = arith.constant 0 : index
    %c0_12 = arith.constant 0 : index
    %c0_13 = arith.constant 0 : index
    %12 = vector.load %arg2[%c0_11, %c0_12, %c0_13] : memref<2x4x32xf32, #tpu.memory_space<vmem>>, vector<2x4x32xf32>
    %c0_14 = arith.constant 0 : index
    %c0_15 = arith.constant 0 : index
    %13 = vector.load %arg9[%c0_14, %c0_15] : memref<32x32xf32, #tpu.memory_space<vmem>>, vector<32x32xf32>
    "tpu.trace_start"() <{level = 10 : i32, message = "bht,tc->bhc"}> : () -> ()
    %cst_16 = arith.constant dense<0.000000e+00> : vector<2x4x32xf32>
    %14 = tpu.matmul %12, %13, %cst_16 {dimension_numbers = #tpu.dot_dimension_numbers<[2], [0], [0, 1], [1], [0, 0, 0, 1, 1, 1], [], []>} : vector<2x4x32xf32>, vector<32x32xf32>, vector<2x4x32xf32> -> vector<2x4x32xf32>
    "tpu.trace_stop"() : () -> ()
    %c0_17 = arith.constant 0 : index
    %c0_18 = arith.constant 0 : index
    %c0_19 = arith.constant 0 : index
    %15 = vector.load %arg3[%c0_17, %c0_18, %c0_19] : memref<2x4x32xf32, #tpu.memory_space<vmem>>, vector<2x4x32xf32>
    %c0_20 = arith.constant 0 : index
    %c0_21 = arith.constant 0 : index
    %16 = vector.load %arg10[%c0_20, %c0_21] : memref<32x32xf32, #tpu.memory_space<vmem>>, vector<32x32xf32>
    "tpu.trace_start"() <{level = 10 : i32, message = "bhs,sc->bhc"}> : () -> ()
    %cst_22 = arith.constant dense<0.000000e+00> : vector<2x4x32xf32>
    %17 = tpu.matmul %15, %16, %cst_22 {dimension_numbers = #tpu.dot_dimension_numbers<[2], [0], [0, 1], [1], [0, 0, 0, 1, 1, 1], [], []>} : vector<2x4x32xf32>, vector<32x32xf32>, vector<2x4x32xf32> -> vector<2x4x32xf32>
    "tpu.trace_stop"() : () -> ()
    %18 = arith.addf %14, %17 : vector<2x4x32xf32>
    %c0_23 = arith.constant 0 : index
    %c0_24 = arith.constant 0 : index
    %c0_25 = arith.constant 0 : index
    %19 = vector.load %arg4[%c0_23, %c0_24, %c0_25] : memref<2x4x32xf32, #tpu.memory_space<vmem>>, vector<2x4x32xf32>
    %c0_26 = arith.constant 0 : index
    %c0_27 = arith.constant 0 : index
    %20 = vector.load %arg11[%c0_26, %c0_27] : memref<32x32xf32, #tpu.memory_space<vmem>>, vector<32x32xf32>
    "tpu.trace_start"() <{level = 10 : i32, message = "bhp,pc->bhc"}> : () -> ()
    %cst_28 = arith.constant dense<0.000000e+00> : vector<2x4x32xf32>
    %21 = tpu.matmul %19, %20, %cst_28 {dimension_numbers = #tpu.dot_dimension_numbers<[2], [0], [0, 1], [1], [0, 0, 0, 1, 1, 1], [], []>} : vector<2x4x32xf32>, vector<32x32xf32>, vector<2x4x32xf32> -> vector<2x4x32xf32>
    "tpu.trace_stop"() : () -> ()
    %22 = arith.addf %18, %21 : vector<2x4x32xf32>
    %c0_29 = arith.constant 0 : index
    %c0_30 = arith.constant 0 : index
    %23 = vector.load %arg12[%c0_29, %c0_30] : memref<1x32xf32, #tpu.memory_space<vmem>>, vector<1x32xf32>
    %24 = vector.shape_cast %23 : vector<1x32xf32> to vector<1x1x32xf32>
    %25 = vector.broadcast %24 : vector<1x1x32xf32> to vector<2x4x32xf32>
    %26 = arith.addf %22, %25 : vector<2x4x32xf32>
    %cst_31 = arith.constant 0.000000e+00 : f32
    %27 = vector.broadcast %cst_31 : f32 to vector<2x4x32xf32>
    %28 = arith.maximumf %26, %27 : vector<2x4x32xf32>
    %c0_32 = arith.constant 0 : index
    %c0_33 = arith.constant 0 : index
    %29 = vector.load %arg13[%c0_32, %c0_33] : memref<32x96xf32, #tpu.memory_space<vmem>>, vector<32x96xf32>
    "tpu.trace_start"() <{level = 10 : i32, message = "bhc,cg->bhg"}> : () -> ()
    %cst_34 = arith.constant dense<0.000000e+00> : vector<2x4x96xf32>
    %30 = tpu.matmul %28, %29, %cst_34 {dimension_numbers = #tpu.dot_dimension_numbers<[2], [0], [0, 1], [1], [0, 0, 0, 1, 1, 1], [], []>} : vector<2x4x32xf32>, vector<32x96xf32>, vector<2x4x96xf32> -> vector<2x4x96xf32>
    "tpu.trace_stop"() : () -> ()
    %c0_35 = arith.constant 0 : index
    %c0_36 = arith.constant 0 : index
    %31 = vector.load %arg14[%c0_35, %c0_36] : memref<1x96xf32, #tpu.memory_space<vmem>>, vector<1x96xf32>
    %32 = vector.shape_cast %31 : vector<1x96xf32> to vector<1x1x96xf32>
    %33 = vector.broadcast %32 : vector<1x1x96xf32> to vector<2x4x96xf32>
    %34 = arith.addf %30, %33 : vector<2x4x96xf32>
    %c0_37 = arith.constant 0 : index
    %c0_38 = arith.constant 0 : index
    %35 = vector.load %arg5[%c0_37, %c0_38] : memref<2x1xi32, #tpu.memory_space<vmem>>, vector<2x1xi32>
    %c0_39 = arith.constant 0 : index
    %c0_40 = arith.constant 0 : index
    %36 = vector.load %arg15[%c0_39, %c0_40] : memref<32x96xf32, #tpu.memory_space<vmem>>, vector<32x96xf32>
    %c0_41 = arith.constant 0 : index
    %c0_42 = arith.constant 0 : index
    %37 = vector.load %arg16[%c0_41, %c0_42] : memref<1x96xf32, #tpu.memory_space<vmem>>, vector<1x96xf32>
    %c0_43 = arith.constant 0 : index
    %c0_44 = arith.constant 0 : index
    %38 = vector.load %arg17[%c0_43, %c0_44] : memref<32x32xf32, #tpu.memory_space<vmem>>, vector<32x32xf32>
    %c0_45 = arith.constant 0 : index
    %c0_46 = arith.constant 0 : index
    %39 = vector.load %arg20[%c0_45, %c0_46] : memref<32x1xf32, #tpu.memory_space<vmem>>, vector<32x1xf32>
    %c0_47 = arith.constant 0 : index
    %c0_48 = arith.constant 0 : index
    %40 = vector.load %arg18[%c0_47, %c0_48] : memref<32x32xf32, #tpu.memory_space<vmem>>, vector<32x32xf32>
    %cst_49 = arith.constant dense<0.000000e+00> : vector<2x32xf32>
    %41 = tpu.matmul %11, %40, %cst_49 {dimension_numbers = #tpu.dot_dimension_numbers<[1], [0], [0], [1], [0, 0, 1, 1], [], []>} : vector<2x32xf32>, vector<32x32xf32>, vector<2x32xf32> -> vector<2x32xf32>
    %c0_50 = arith.constant 0 : index
    %c0_51 = arith.constant 0 : index
    %42 = vector.load %arg19[%c0_50, %c0_51] : memref<1x32xf32, #tpu.memory_space<vmem>>, vector<1x32xf32>
    %43 = vector.broadcast %42 : vector<1x32xf32> to vector<2x32xf32>
    %44 = arith.addf %41, %43 : vector<2x32xf32>
    %cst_52 = arith.constant 0.000000e+00 : f32
    %45 = vector.broadcast %cst_52 : f32 to vector<2x32xf32>
    %46 = vector.extract_strided_slice %34 {offsets = [0, 0, 0], sizes = [2, 1, 96], strides = [1, 1, 1]} : vector<2x4x96xf32> to vector<2x1x96xf32>
    %47 = vector.shape_cast %46 : vector<2x1x96xf32> to vector<2x96xf32>
    %cst_53 = arith.constant dense<0.000000e+00> : vector<2x96xf32>
    %48 = tpu.matmul %45, %36, %cst_53 {dimension_numbers = #tpu.dot_dimension_numbers<[1], [0], [0], [1], [0, 0, 1, 1], [], []>} : vector<2x32xf32>, vector<32x96xf32>, vector<2x96xf32> -> vector<2x96xf32>
    %49 = vector.broadcast %37 : vector<1x96xf32> to vector<2x96xf32>
    %50 = arith.addf %48, %49 : vector<2x96xf32>
    %51 = vector.extract_strided_slice %47 {offsets = [0, 0], sizes = [2, 32], strides = [1, 1]} : vector<2x96xf32> to vector<2x32xf32>
    %52 = vector.extract_strided_slice %50 {offsets = [0, 0], sizes = [2, 32], strides = [1, 1]} : vector<2x96xf32> to vector<2x32xf32>
    %53 = arith.addf %51, %52 : vector<2x32xf32>
    %54 = arith.negf %53 : vector<2x32xf32>
    %55 = math.exp %54 : vector<2x32xf32>
    %cst_54 = arith.constant 1.000000e+00 : f32
    %56 = vector.broadcast %cst_54 : f32 to vector<2x32xf32>
    %57 = arith.addf %56, %55 : vector<2x32xf32>
    %58 = arith.divf %56, %57 : vector<2x32xf32>
    %59 = vector.extract_strided_slice %47 {offsets = [0, 32], sizes = [2, 32], strides = [1, 1]} : vector<2x96xf32> to vector<2x32xf32>
    %60 = vector.extract_strided_slice %50 {offsets = [0, 32], sizes = [2, 32], strides = [1, 1]} : vector<2x96xf32> to vector<2x32xf32>
    %61 = arith.addf %59, %60 : vector<2x32xf32>
    %62 = arith.negf %61 : vector<2x32xf32>
    %63 = math.exp %62 : vector<2x32xf32>
    %cst_55 = arith.constant 1.000000e+00 : f32
    %64 = vector.broadcast %cst_55 : f32 to vector<2x32xf32>
    %65 = arith.addf %64, %63 : vector<2x32xf32>
    %66 = arith.divf %64, %65 : vector<2x32xf32>
    %67 = vector.extract_strided_slice %47 {offsets = [0, 64], sizes = [2, 32], strides = [1, 1]} : vector<2x96xf32> to vector<2x32xf32>
    %68 = vector.extract_strided_slice %50 {offsets = [0, 64], sizes = [2, 32], strides = [1, 1]} : vector<2x96xf32> to vector<2x32xf32>
    %69 = arith.mulf %58, %68 : vector<2x32xf32>
    %70 = arith.addf %67, %69 : vector<2x32xf32>
    %71 = math.tanh %70 : vector<2x32xf32>
    %cst_56 = arith.constant 1.000000e+00 : f32
    %72 = vector.broadcast %cst_56 : f32 to vector<2x32xf32>
    %73 = arith.subf %72, %66 : vector<2x32xf32>
    %74 = arith.mulf %73, %71 : vector<2x32xf32>
    %75 = arith.mulf %66, %45 : vector<2x32xf32>
    %76 = arith.addf %74, %75 : vector<2x32xf32>
    %c0_i32 = arith.constant 0 : i32
    %77 = vector.broadcast %c0_i32 : i32 to vector<2x1xi32>
    %78 = arith.cmpi sgt, %35, %77 : vector<2x1xi32>
    %79 = vector.shape_cast %78 : vector<2x1xi1> to vector<2x1xi1>
    %80 = vector.broadcast %79 : vector<2x1xi1> to vector<2x32xi1>
    %81 = arith.select %80, %76, %45 : vector<2x32xi1>, vector<2x32xf32>
    %cst_57 = arith.constant dense<0.000000e+00> : vector<2x32xf32>
    %82 = tpu.matmul %81, %38, %cst_57 {dimension_numbers = #tpu.dot_dimension_numbers<[1], [0], [0], [1], [0, 0, 1, 1], [], []>} : vector<2x32xf32>, vector<32x32xf32>, vector<2x32xf32> -> vector<2x32xf32>
    %83 = arith.addf %82, %44 : vector<2x32xf32>
    %84 = math.tanh %83 : vector<2x32xf32>
    %cst_58 = arith.constant dense<0.000000e+00> : vector<2x1xf32>
    %85 = tpu.matmul %84, %39, %cst_58 {dimension_numbers = #tpu.dot_dimension_numbers<[1], [0], [0], [1], [0, 0, 1, 1], [], []>} : vector<2x32xf32>, vector<32x1xf32>, vector<2x1xf32> -> vector<2x1xf32>
    %cst_59 = arith.constant -1.000000e+30 : f32
    %86 = vector.broadcast %cst_59 : f32 to vector<2x1xf32>
    %87 = arith.select %78, %85, %86 : vector<2x1xi1>, vector<2x1xf32>
    %88 = vector.extract_strided_slice %34 {offsets = [0, 1, 0], sizes = [2, 1, 96], strides = [1, 1, 1]} : vector<2x4x96xf32> to vector<2x1x96xf32>
    %89 = vector.shape_cast %88 : vector<2x1x96xf32> to vector<2x96xf32>
    %cst_60 = arith.constant dense<0.000000e+00> : vector<2x96xf32>
    %90 = tpu.matmul %81, %36, %cst_60 {dimension_numbers = #tpu.dot_dimension_numbers<[1], [0], [0], [1], [0, 0, 1, 1], [], []>} : vector<2x32xf32>, vector<32x96xf32>, vector<2x96xf32> -> vector<2x96xf32>
    %91 = vector.broadcast %37 : vector<1x96xf32> to vector<2x96xf32>
    %92 = arith.addf %90, %91 : vector<2x96xf32>
    %93 = vector.extract_strided_slice %89 {offsets = [0, 0], sizes = [2, 32], strides = [1, 1]} : vector<2x96xf32> to vector<2x32xf32>
    %94 = vector.extract_strided_slice %92 {offsets = [0, 0], sizes = [2, 32], strides = [1, 1]} : vector<2x96xf32> to vector<2x32xf32>
    %95 = arith.addf %93, %94 : vector<2x32xf32>
    %96 = arith.negf %95 : vector<2x32xf32>
    %97 = math.exp %96 : vector<2x32xf32>
    %cst_61 = arith.constant 1.000000e+00 : f32
    %98 = vector.broadcast %cst_61 : f32 to vector<2x32xf32>
    %99 = arith.addf %98, %97 : vector<2x32xf32>
    %100 = arith.divf %98, %99 : vector<2x32xf32>
    %101 = vector.extract_strided_slice %89 {offsets = [0, 32], sizes = [2, 32], strides = [1, 1]} : vector<2x96xf32> to vector<2x32xf32>
    %102 = vector.extract_strided_slice %92 {offsets = [0, 32], sizes = [2, 32], strides = [1, 1]} : vector<2x96xf32> to vector<2x32xf32>
    %103 = arith.addf %101, %102 : vector<2x32xf32>
    %104 = arith.negf %103 : vector<2x32xf32>
    %105 = math.exp %104 : vector<2x32xf32>
    %cst_62 = arith.constant 1.000000e+00 : f32
    %106 = vector.broadcast %cst_62 : f32 to vector<2x32xf32>
    %107 = arith.addf %106, %105 : vector<2x32xf32>
    %108 = arith.divf %106, %107 : vector<2x32xf32>
    %109 = vector.extract_strided_slice %89 {offsets = [0, 64], sizes = [2, 32], strides = [1, 1]} : vector<2x96xf32> to vector<2x32xf32>
    %110 = vector.extract_strided_slice %92 {offsets = [0, 64], sizes = [2, 32], strides = [1, 1]} : vector<2x96xf32> to vector<2x32xf32>
    %111 = arith.mulf %100, %110 : vector<2x32xf32>
    %112 = arith.addf %109, %111 : vector<2x32xf32>
    %113 = math.tanh %112 : vector<2x32xf32>
    %cst_63 = arith.constant 1.000000e+00 : f32
    %114 = vector.broadcast %cst_63 : f32 to vector<2x32xf32>
    %115 = arith.subf %114, %108 : vector<2x32xf32>
    %116 = arith.mulf %115, %113 : vector<2x32xf32>
    %117 = arith.mulf %108, %81 : vector<2x32xf32>
    %118 = arith.addf %116, %117 : vector<2x32xf32>
    %c1_i32 = arith.constant 1 : i32
    %119 = vector.broadcast %c1_i32 : i32 to vector<2x1xi32>
    %120 = arith.cmpi sgt, %35, %119 : vector<2x1xi32>
    %121 = vector.shape_cast %120 : vector<2x1xi1> to vector<2x1xi1>
    %122 = vector.broadcast %121 : vector<2x1xi1> to vector<2x32xi1>
    %123 = arith.select %122, %118, %81 : vector<2x32xi1>, vector<2x32xf32>
    %cst_64 = arith.constant dense<0.000000e+00> : vector<2x32xf32>
    %124 = tpu.matmul %123, %38, %cst_64 {dimension_numbers = #tpu.dot_dimension_numbers<[1], [0], [0], [1], [0, 0, 1, 1], [], []>} : vector<2x32xf32>, vector<32x32xf32>, vector<2x32xf32> -> vector<2x32xf32>
    %125 = arith.addf %124, %44 : vector<2x32xf32>
    %126 = math.tanh %125 : vector<2x32xf32>
    %cst_65 = arith.constant dense<0.000000e+00> : vector<2x1xf32>
    %127 = tpu.matmul %126, %39, %cst_65 {dimension_numbers = #tpu.dot_dimension_numbers<[1], [0], [0], [1], [0, 0, 1, 1], [], []>} : vector<2x32xf32>, vector<32x1xf32>, vector<2x1xf32> -> vector<2x1xf32>
    %cst_66 = arith.constant -1.000000e+30 : f32
    %128 = vector.broadcast %cst_66 : f32 to vector<2x1xf32>
    %129 = arith.select %120, %127, %128 : vector<2x1xi1>, vector<2x1xf32>
    %130 = vector.extract_strided_slice %34 {offsets = [0, 2, 0], sizes = [2, 1, 96], strides = [1, 1, 1]} : vector<2x4x96xf32> to vector<2x1x96xf32>
    %131 = vector.shape_cast %130 : vector<2x1x96xf32> to vector<2x96xf32>
    %cst_67 = arith.constant dense<0.000000e+00> : vector<2x96xf32>
    %132 = tpu.matmul %123, %36, %cst_67 {dimension_numbers = #tpu.dot_dimension_numbers<[1], [0], [0], [1], [0, 0, 1, 1], [], []>} : vector<2x32xf32>, vector<32x96xf32>, vector<2x96xf32> -> vector<2x96xf32>
    %133 = vector.broadcast %37 : vector<1x96xf32> to vector<2x96xf32>
    %134 = arith.addf %132, %133 : vector<2x96xf32>
    %135 = vector.extract_strided_slice %131 {offsets = [0, 0], sizes = [2, 32], strides = [1, 1]} : vector<2x96xf32> to vector<2x32xf32>
    %136 = vector.extract_strided_slice %134 {offsets = [0, 0], sizes = [2, 32], strides = [1, 1]} : vector<2x96xf32> to vector<2x32xf32>
    %137 = arith.addf %135, %136 : vector<2x32xf32>
    %138 = arith.negf %137 : vector<2x32xf32>
    %139 = math.exp %138 : vector<2x32xf32>
    %cst_68 = arith.constant 1.000000e+00 : f32
    %140 = vector.broadcast %cst_68 : f32 to vector<2x32xf32>
    %141 = arith.addf %140, %139 : vector<2x32xf32>
    %142 = arith.divf %140, %141 : vector<2x32xf32>
    %143 = vector.extract_strided_slice %131 {offsets = [0, 32], sizes = [2, 32], strides = [1, 1]} : vector<2x96xf32> to vector<2x32xf32>
    %144 = vector.extract_strided_slice %134 {offsets = [0, 32], sizes = [2, 32], strides = [1, 1]} : vector<2x96xf32> to vector<2x32xf32>
    %145 = arith.addf %143, %144 : vector<2x32xf32>
    %146 = arith.negf %145 : vector<2x32xf32>
    %147 = math.exp %146 : vector<2x32xf32>
    %cst_69 = arith.constant 1.000000e+00 : f32
    %148 = vector.broadcast %cst_69 : f32 to vector<2x32xf32>
    %149 = arith.addf %148, %147 : vector<2x32xf32>
    %150 = arith.divf %148, %149 : vector<2x32xf32>
    %151 = vector.extract_strided_slice %131 {offsets = [0, 64], sizes = [2, 32], strides = [1, 1]} : vector<2x96xf32> to vector<2x32xf32>
    %152 = vector.extract_strided_slice %134 {offsets = [0, 64], sizes = [2, 32], strides = [1, 1]} : vector<2x96xf32> to vector<2x32xf32>
    %153 = arith.mulf %142, %152 : vector<2x32xf32>
    %154 = arith.addf %151, %153 : vector<2x32xf32>
    %155 = math.tanh %154 : vector<2x32xf32>
    %cst_70 = arith.constant 1.000000e+00 : f32
    %156 = vector.broadcast %cst_70 : f32 to vector<2x32xf32>
    %157 = arith.subf %156, %150 : vector<2x32xf32>
    %158 = arith.mulf %157, %155 : vector<2x32xf32>
    %159 = arith.mulf %150, %123 : vector<2x32xf32>
    %160 = arith.addf %158, %159 : vector<2x32xf32>
    %c2_i32 = arith.constant 2 : i32
    %161 = vector.broadcast %c2_i32 : i32 to vector<2x1xi32>
    %162 = arith.cmpi sgt, %35, %161 : vector<2x1xi32>
    %163 = vector.shape_cast %162 : vector<2x1xi1> to vector<2x1xi1>
    %164 = vector.broadcast %163 : vector<2x1xi1> to vector<2x32xi1>
    %165 = arith.select %164, %160, %123 : vector<2x32xi1>, vector<2x32xf32>
    %cst_71 = arith.constant dense<0.000000e+00> : vector<2x32xf32>
    %166 = tpu.matmul %165, %38, %cst_71 {dimension_numbers = #tpu.dot_dimension_numbers<[1], [0], [0], [1], [0, 0, 1, 1], [], []>} : vector<2x32xf32>, vector<32x32xf32>, vector<2x32xf32> -> vector<2x32xf32>
    %167 = arith.addf %166, %44 : vector<2x32xf32>
    %168 = math.tanh %167 : vector<2x32xf32>
    %cst_72 = arith.constant dense<0.000000e+00> : vector<2x1xf32>
    %169 = tpu.matmul %168, %39, %cst_72 {dimension_numbers = #tpu.dot_dimension_numbers<[1], [0], [0], [1], [0, 0, 1, 1], [], []>} : vector<2x32xf32>, vector<32x1xf32>, vector<2x1xf32> -> vector<2x1xf32>
    %cst_73 = arith.constant -1.000000e+30 : f32
    %170 = vector.broadcast %cst_73 : f32 to vector<2x1xf32>
    %171 = arith.select %162, %169, %170 : vector<2x1xi1>, vector<2x1xf32>
    %172 = vector.extract_strided_slice %34 {offsets = [0, 3, 0], sizes = [2, 1, 96], strides = [1, 1, 1]} : vector<2x4x96xf32> to vector<2x1x96xf32>
    %173 = vector.shape_cast %172 : vector<2x1x96xf32> to vector<2x96xf32>
    %cst_74 = arith.constant dense<0.000000e+00> : vector<2x96xf32>
    %174 = tpu.matmul %165, %36, %cst_74 {dimension_numbers = #tpu.dot_dimension_numbers<[1], [0], [0], [1], [0, 0, 1, 1], [], []>} : vector<2x32xf32>, vector<32x96xf32>, vector<2x96xf32> -> vector<2x96xf32>
    %175 = vector.broadcast %37 : vector<1x96xf32> to vector<2x96xf32>
    %176 = arith.addf %174, %175 : vector<2x96xf32>
    %177 = vector.extract_strided_slice %173 {offsets = [0, 0], sizes = [2, 32], strides = [1, 1]} : vector<2x96xf32> to vector<2x32xf32>
    %178 = vector.extract_strided_slice %176 {offsets = [0, 0], sizes = [2, 32], strides = [1, 1]} : vector<2x96xf32> to vector<2x32xf32>
    %179 = arith.addf %177, %178 : vector<2x32xf32>
    %180 = arith.negf %179 : vector<2x32xf32>
    %181 = math.exp %180 : vector<2x32xf32>
    %cst_75 = arith.constant 1.000000e+00 : f32
    %182 = vector.broadcast %cst_75 : f32 to vector<2x32xf32>
    %183 = arith.addf %182, %181 : vector<2x32xf32>
    %184 = arith.divf %182, %183 : vector<2x32xf32>
    %185 = vector.extract_strided_slice %173 {offsets = [0, 32], sizes = [2, 32], strides = [1, 1]} : vector<2x96xf32> to vector<2x32xf32>
    %186 = vector.extract_strided_slice %176 {offsets = [0, 32], sizes = [2, 32], strides = [1, 1]} : vector<2x96xf32> to vector<2x32xf32>
    %187 = arith.addf %185, %186 : vector<2x32xf32>
    %188 = arith.negf %187 : vector<2x32xf32>
    %189 = math.exp %188 : vector<2x32xf32>
    %cst_76 = arith.constant 1.000000e+00 : f32
    %190 = vector.broadcast %cst_76 : f32 to vector<2x32xf32>
    %191 = arith.addf %190, %189 : vector<2x32xf32>
    %192 = arith.divf %190, %191 : vector<2x32xf32>
    %193 = vector.extract_strided_slice %173 {offsets = [0, 64], sizes = [2, 32], strides = [1, 1]} : vector<2x96xf32> to vector<2x32xf32>
    %194 = vector.extract_strided_slice %176 {offsets = [0, 64], sizes = [2, 32], strides = [1, 1]} : vector<2x96xf32> to vector<2x32xf32>
    %195 = arith.mulf %184, %194 : vector<2x32xf32>
    %196 = arith.addf %193, %195 : vector<2x32xf32>
    %197 = math.tanh %196 : vector<2x32xf32>
    %cst_77 = arith.constant 1.000000e+00 : f32
    %198 = vector.broadcast %cst_77 : f32 to vector<2x32xf32>
    %199 = arith.subf %198, %192 : vector<2x32xf32>
    %200 = arith.mulf %199, %197 : vector<2x32xf32>
    %201 = arith.mulf %192, %165 : vector<2x32xf32>
    %202 = arith.addf %200, %201 : vector<2x32xf32>
    %c3_i32 = arith.constant 3 : i32
    %203 = vector.broadcast %c3_i32 : i32 to vector<2x1xi32>
    %204 = arith.cmpi sgt, %35, %203 : vector<2x1xi32>
    %205 = vector.shape_cast %204 : vector<2x1xi1> to vector<2x1xi1>
    %206 = vector.broadcast %205 : vector<2x1xi1> to vector<2x32xi1>
    %207 = arith.select %206, %202, %165 : vector<2x32xi1>, vector<2x32xf32>
    %cst_78 = arith.constant dense<0.000000e+00> : vector<2x32xf32>
    %208 = tpu.matmul %207, %38, %cst_78 {dimension_numbers = #tpu.dot_dimension_numbers<[1], [0], [0], [1], [0, 0, 1, 1], [], []>} : vector<2x32xf32>, vector<32x32xf32>, vector<2x32xf32> -> vector<2x32xf32>
    %209 = arith.addf %208, %44 : vector<2x32xf32>
    %210 = math.tanh %209 : vector<2x32xf32>
    %cst_79 = arith.constant dense<0.000000e+00> : vector<2x1xf32>
    %211 = tpu.matmul %210, %39, %cst_79 {dimension_numbers = #tpu.dot_dimension_numbers<[1], [0], [0], [1], [0, 0, 1, 1], [], []>} : vector<2x32xf32>, vector<32x1xf32>, vector<2x1xf32> -> vector<2x1xf32>
    %cst_80 = arith.constant -1.000000e+30 : f32
    %212 = vector.broadcast %cst_80 : f32 to vector<2x1xf32>
    %213 = arith.select %204, %211, %212 : vector<2x1xi1>, vector<2x1xf32>
    %214 = arith.maximumf %87, %129 : vector<2x1xf32>
    %215 = arith.maximumf %214, %171 : vector<2x1xf32>
    %216 = arith.maximumf %215, %213 : vector<2x1xf32>
    %cst_81 = arith.constant 0.000000e+00 : f32
    %217 = vector.broadcast %cst_81 : f32 to vector<2x32xf32>
    %cst_82 = arith.constant 0.000000e+00 : f32
    %218 = vector.broadcast %cst_82 : f32 to vector<2x1xf32>
    %c0_i32_83 = arith.constant 0 : i32
    %219 = vector.broadcast %c0_i32_83 : i32 to vector<2x1xi32>
    %220 = arith.cmpi sgt, %35, %219 : vector<2x1xi32>
    %221 = arith.extui %220 : vector<2x1xi1> to vector<2x1xi32>
    %222 = arith.sitofp %221 : vector<2x1xi32> to vector<2x1xf32>
    %223 = arith.subf %87, %216 : vector<2x1xf32>
    %224 = math.exp %223 : vector<2x1xf32>
    %225 = arith.mulf %224, %222 : vector<2x1xf32>
    %226 = arith.addf %218, %225 : vector<2x1xf32>
    %227 = vector.broadcast %225 : vector<2x1xf32> to vector<2x32xf32>
    %228 = arith.mulf %227, %81 : vector<2x32xf32>
    %229 = arith.addf %217, %228 : vector<2x32xf32>
    %c1_i32_84 = arith.constant 1 : i32
    %230 = vector.broadcast %c1_i32_84 : i32 to vector<2x1xi32>
    %231 = arith.cmpi sgt, %35, %230 : vector<2x1xi32>
    %232 = arith.extui %231 : vector<2x1xi1> to vector<2x1xi32>
    %233 = arith.sitofp %232 : vector<2x1xi32> to vector<2x1xf32>
    %234 = arith.subf %129, %216 : vector<2x1xf32>
    %235 = math.exp %234 : vector<2x1xf32>
    %236 = arith.mulf %235, %233 : vector<2x1xf32>
    %237 = arith.addf %226, %236 : vector<2x1xf32>
    %238 = vector.broadcast %236 : vector<2x1xf32> to vector<2x32xf32>
    %239 = arith.mulf %238, %123 : vector<2x32xf32>
    %240 = arith.addf %229, %239 : vector<2x32xf32>
    %c2_i32_85 = arith.constant 2 : i32
    %241 = vector.broadcast %c2_i32_85 : i32 to vector<2x1xi32>
    %242 = arith.cmpi sgt, %35, %241 : vector<2x1xi32>
    %243 = arith.extui %242 : vector<2x1xi1> to vector<2x1xi32>
    %244 = arith.sitofp %243 : vector<2x1xi32> to vector<2x1xf32>
    %245 = arith.subf %171, %216 : vector<2x1xf32>
    %246 = math.exp %245 : vector<2x1xf32>
    %247 = arith.mulf %246, %244 : vector<2x1xf32>
    %248 = arith.addf %237, %247 : vector<2x1xf32>
    %249 = vector.broadcast %247 : vector<2x1xf32> to vector<2x32xf32>
    %250 = arith.mulf %249, %165 : vector<2x32xf32>
    %251 = arith.addf %240, %250 : vector<2x32xf32>
    %c3_i32_86 = arith.constant 3 : i32
    %252 = vector.broadcast %c3_i32_86 : i32 to vector<2x1xi32>
    %253 = arith.cmpi sgt, %35, %252 : vector<2x1xi32>
    %254 = arith.extui %253 : vector<2x1xi1> to vector<2x1xi32>
    %255 = arith.sitofp %254 : vector<2x1xi32> to vector<2x1xf32>
    %256 = arith.subf %213, %216 : vector<2x1xf32>
    %257 = math.exp %256 : vector<2x1xf32>
    %258 = arith.mulf %257, %255 : vector<2x1xf32>
    %259 = arith.addf %248, %258 : vector<2x1xf32>
    %260 = vector.broadcast %258 : vector<2x1xf32> to vector<2x32xf32>
    %261 = arith.mulf %260, %207 : vector<2x32xf32>
    %262 = arith.addf %251, %261 : vector<2x32xf32>
    %cst_87 = arith.constant 9.99999971E-10 : f32
    %263 = vector.broadcast %cst_87 : f32 to vector<2x1xf32>
    %264 = arith.addf %259, %263 : vector<2x1xf32>
    %265 = vector.broadcast %264 : vector<2x1xf32> to vector<2x32xf32>
    %266 = arith.divf %262, %265 : vector<2x32xf32>
    %c0_88 = arith.constant 0 : index
    %c0_89 = arith.constant 0 : index
    %267 = vector.load %arg21[%c0_88, %c0_89] : memref<32x32xf32, #tpu.memory_space<vmem>>, vector<32x32xf32>
    %cst_90 = arith.constant dense<0.000000e+00> : vector<2x32xf32>
    %268 = tpu.matmul %11, %267, %cst_90 {dimension_numbers = #tpu.dot_dimension_numbers<[1], [0], [0], [1], [0, 0, 1, 1], [], []>} : vector<2x32xf32>, vector<32x32xf32>, vector<2x32xf32> -> vector<2x32xf32>
    %c0_91 = arith.constant 0 : index
    %c0_92 = arith.constant 0 : index
    %269 = vector.load %arg22[%c0_91, %c0_92] : memref<32x32xf32, #tpu.memory_space<vmem>>, vector<32x32xf32>
    %cst_93 = arith.constant dense<0.000000e+00> : vector<2x32xf32>
    %270 = tpu.matmul %266, %269, %cst_93 {dimension_numbers = #tpu.dot_dimension_numbers<[1], [0], [0], [1], [0, 0, 1, 1], [], []>} : vector<2x32xf32>, vector<32x32xf32>, vector<2x32xf32> -> vector<2x32xf32>
    %271 = arith.addf %268, %270 : vector<2x32xf32>
    %c0_94 = arith.constant 0 : index
    %c0_95 = arith.constant 0 : index
    %272 = vector.load %arg23[%c0_94, %c0_95] : memref<1x32xf32, #tpu.memory_space<vmem>>, vector<1x32xf32>
    %273 = vector.broadcast %272 : vector<1x32xf32> to vector<2x32xf32>
    %274 = arith.addf %271, %273 : vector<2x32xf32>
    %c0_96 = arith.constant 0 : index
    %c0_97 = arith.constant 0 : index
    %275 = vector.load %arg24[%c0_96, %c0_97] : memref<32x32xf32, #tpu.memory_space<vmem>>, vector<32x32xf32>
    %cst_98 = arith.constant dense<0.000000e+00> : vector<2x32xf32>
    %276 = tpu.matmul %274, %275, %cst_98 {dimension_numbers = #tpu.dot_dimension_numbers<[1], [0], [0], [1], [0, 0, 1, 1], [], []>} : vector<2x32xf32>, vector<32x32xf32>, vector<2x32xf32> -> vector<2x32xf32>
    %c0_99 = arith.constant 0 : index
    %c0_100 = arith.constant 0 : index
    %277 = vector.load %arg25[%c0_99, %c0_100] : memref<1x32xf32, #tpu.memory_space<vmem>>, vector<1x32xf32>
    %278 = vector.broadcast %277 : vector<1x32xf32> to vector<2x32xf32>
    %279 = arith.addf %276, %278 : vector<2x32xf32>
    %cst_101 = arith.constant 0.000000e+00 : f32
    %280 = vector.broadcast %cst_101 : f32 to vector<2x32xf32>
    %281 = arith.maximumf %279, %280 : vector<2x32xf32>
    %c0_102 = arith.constant 0 : index
    %c0_103 = arith.constant 0 : index
    %282 = vector.load %arg26[%c0_102, %c0_103] : memref<32x32xf32, #tpu.memory_space<vmem>>, vector<32x32xf32>
    %cst_104 = arith.constant dense<0.000000e+00> : vector<2x32xf32>
    %283 = tpu.matmul %281, %282, %cst_104 {dimension_numbers = #tpu.dot_dimension_numbers<[1], [0], [0], [1], [0, 0, 1, 1], [], []>} : vector<2x32xf32>, vector<32x32xf32>, vector<2x32xf32> -> vector<2x32xf32>
    %c0_105 = arith.constant 0 : index
    %c0_106 = arith.constant 0 : index
    %284 = vector.load %arg27[%c0_105, %c0_106] : memref<1x32xf32, #tpu.memory_space<vmem>>, vector<1x32xf32>
    %285 = vector.broadcast %284 : vector<1x32xf32> to vector<2x32xf32>
    %286 = arith.addf %283, %285 : vector<2x32xf32>
    %cst_107 = arith.constant 0.000000e+00 : f32
    %287 = vector.broadcast %cst_107 : f32 to vector<2x32xf32>
    %288 = arith.maximumf %286, %287 : vector<2x32xf32>
    %c0_108 = arith.constant 0 : index
    %c0_109 = arith.constant 0 : index
    %289 = vector.load %arg28[%c0_108, %c0_109] : memref<32x5xf32, #tpu.memory_space<vmem>>, vector<32x5xf32>
    %cst_110 = arith.constant dense<0.000000e+00> : vector<2x5xf32>
    %290 = tpu.matmul %288, %289, %cst_110 {dimension_numbers = #tpu.dot_dimension_numbers<[1], [0], [0], [1], [0, 0, 1, 1], [], []>} : vector<2x32xf32>, vector<32x5xf32>, vector<2x5xf32> -> vector<2x5xf32>
    %c0_111 = arith.constant 0 : index
    %c0_112 = arith.constant 0 : index
    %291 = vector.load %arg29[%c0_111, %c0_112] : memref<1x5xf32, #tpu.memory_space<vmem>>, vector<1x5xf32>
    %292 = vector.broadcast %291 : vector<1x5xf32> to vector<2x5xf32>
    %293 = arith.addf %290, %292 : vector<2x5xf32>
    %c0_113 = arith.constant 0 : index
    %c0_114 = arith.constant 0 : index
    %294 = vector.load %arg30[%c0_113, %c0_114] : memref<2x5xf32, #tpu.memory_space<vmem>>, vector<2x5xf32>
    tpu.vector_store %arg30[%c0_113, %c0_114], %293 {strides = array<i32>} : memref<2x5xf32, #tpu.memory_space<vmem>>, vector<2x5xf32>,
    return
  }
}

</mosaic_0001>

<bundles_post_ra>
// kernel: emotion_predictor_forward.3
= control target key start
LH: loop header
LB: loop body
LE: loop exit
PB: predicated region body
PF: predicated region fallthrough
CT: control target
= control target key end

     0   :  { %v37_v0 = vlaneseq  ;;  %v1188_v48 = vmov 0   ;;  %vm696_vm0 = vcmask 261120   ;;  %s1963_s0 = inlined_call_operand.vmem [shape: f32[8,18], index: 0, kind: input, shape index: {}]   ;;  %s1964_s1 = inlined_call_operand.vmem [shape: f32[8,18], index: 1, kind: input, shape index: {}]   ;;  %s1965_s4 = inlined_call_operand.vmem [shape: f32[32,96], index: 4, kind: input, shape index: {}]   ;;  %s1966_s2 = inlined_call_operand.vmem [shape: f32[6,32], index: 2, kind: input, shape index: {}]   ;;  %s1967_s3 = inlined_call_operand.vmem [shape: f32[1,32], index: 3, kind: input, shape index: {}]   ;;  %s1968_s6 = inlined_call_operand.vmem [shape: s32[8,1], index: 6, kind: input, shape index: {}]   ;;  %s1969_s5 = inlined_call_operand.vmem [shape: f32[1,96], index: 5, kind: input, shape index: {}]   ;;  %s1970_s7 = inlined_call_operand.vmem [shape: f32[8,16,96], index: 7, kind: output, shape index: {}]  }
   0x1   :  { %v1237_v2 = vld [vmem:[%s1963_s0] sm:$0xff]  ;;  %v688_v22 = vld [vmem:[%s1965_s4 + $0x18] sm:$0xff]  ;;  %v687_v23 = vld [vmem:[%s1965_s4 + $0x10] sm:$0xff]  ;;  %1186 = vset.pattern.permute.xlu1 %v1188_v48  ;;  %1185 = vset.pattern.permute.xlu0 %v1188_v48 }
   0x2   :  { %v1232_v1 = vshrl.u32 %v37_v0, 7  ;;  %v1252_v7 = vld [vmem:[%s1964_s1] sm:$0xff]  ;;  %1142 = vmatprep.subr.mxu0 %v688_v22  ;;  %1174 = vmatprep.subr.mxu1 %v688_v22  ;;  %v686_v24 = vld [vmem:[%s1965_s4 + $0x8] sm:$0xff] }
   0x3   :  { %1143 = vmatpush3.msra.mxu0 %v688_v22  ;;  %1178 = vmatpush3.msra.mxu1 %v688_v22  ;;  %v685_v25 = vld [vmem:[%s1965_s4] sm:$0xff] }
   0x4   :  { %v1240_v3 = vsub.s32 0, %v1232_v1  ;;  %v1243_v4 = vsub.s32 4, %v1232_v1  ;;  %v1265_v10 = vsub.s32 5, %v1232_v1  ;;  %v1268_v11 = vsub.s32 1, %v1232_v1  ;;  %1144 = vmatprep.subr.mxu0 %v687_v23  ;;  %1175 = vmatprep.subr.mxu1 %v687_v23  ;;  %v1409_v44 = vld [vmem:[%s1966_s2] sm:$0x3f] }
   0x5   :  { %v105_v16 = vsub.s32 6, %v1232_v1  ;;  %v1300_v17 = vsub.s32 2, %v1232_v1  ;;  %1145 = vmatpush3.msra.mxu0 %v687_v23  ;;  %1179 = vmatpush3.msra.mxu1 %v687_v23  ;;  %v116_v26 = vsub.s32 7, %v1232_v1  ;;  %v72_v27 = vsub.s32 3, %v1232_v1  ;;  %v1431_v54 = vld [vmem:[%s1967_s3] ss:$0 sm:$0xff] }
   0x6   :  { %v40_v5 = vrot.slane %v1237_v2, %v1240_v3  ;;  %v84_v6 = vrot.slane %v1237_v2, %v1243_v4  ;;  %v1256_v8 = vrot.slane %v1252_v7, %v1243_v4  ;;  %v1260_v9 = vrot.slane %v1252_v7, %v1240_v3  ;;  %1146 = vmatprep.subr.mxu0 %v686_v24 }
   0x7   :  { %v1274_v12 = vrot.slane %v1237_v2, %v1265_v10  ;;  %v1278_v13 = vrot.slane %v1237_v2, %v1268_v11  ;;  %v1286_v14 = vrot.slane %v1252_v7, %v1265_v10  ;;  %v1290_v15 = vrot.slane %v1252_v7, %v1268_v11  ;;  %1176 = vmatprep.subr.mxu1 %v686_v24 }
   0x8   :  { %46 = vbcast.lane.b32.xlu1 %v40_v5, 264  ;;  %42 = vbcast.lane.b32.xlu0 %v40_v5, 256  ;;  %v1305_v18 = vrot.slane %v1237_v2, %v105_v16  ;;  %v1309_v19 = vrot.slane %v1237_v2, %v1300_v17  ;;  %v1320_v20 = vrot.slane %v1252_v7, %v105_v16 }
   0x9   :  { %v1324_v21 = vrot.slane %v1252_v7, %v1300_v17  ;;  %1147 = vmatpush3.msra.mxu0 %v686_v24  ;;  %1180 = vmatpush3.msra.mxu1 %v686_v24  ;;  %v1353_v28 = vrot.slane %v1237_v2, %v116_v26  ;;  %v1356_v29 = vrot.slane %v1237_v2, %v72_v27 }
   0xa   :  { %1148 = vmatprep.subr.mxu0 %v685_v25  ;;  %1177 = vmatprep.subr.mxu1 %v685_v25  ;;  %v1375_v32 = vrot.slane %v1252_v7, %v116_v26  ;;  %v1378_v33 = vrot.slane %v1252_v7, %v72_v27  ;;  %v1415_v47 = vrot.slane %v1409_v44, %v1240_v3  ;;  %v1189_v26 = vmov 1966171168  }
   0xb   :  { %1149 = vmatpush3.msra.mxu0 %v685_v25  ;;  %1181 = vmatpush3.msra.mxu1 %v685_v25  ;;  %v1426_v53 = vrot.slane %v1409_v44, %v72_v27  ;;  %v898_v27 = vunpack.c.l.s4 %v1189_v26 }
   0xc   :  { %90 = vbcast.lane.b32.xlu1 %v84_v6, 264  ;;  %86 = vbcast.lane.b32.xlu0 %v84_v6, 256 }
  0x10   :  { %210 = vbcast.lane.b32.xlu1 %v1256_v8, 256  ;;  %166 = vbcast.lane.b32.xlu0 %v1260_v9, 256 }
  0x14   :  { %214 = vbcast.lane.b32.xlu1 %v1256_v8, 264  ;;  %170 = vbcast.lane.b32.xlu0 %v1260_v9, 264 }
  0x18   :  { %97 = vbcast.lane.b32.xlu1 %v1274_v12, 256  ;;  %53 = vbcast.lane.b32.xlu0 %v1278_v13, 256 }
  0x1c   :  { %319 = vbcast.lane.b32.xlu1 %v84_v6, 257  ;;  %287 = vbcast.lane.b32.xlu0 %v40_v5, 257 }
  0x20   :  { %101 = vbcast.lane.b32.xlu1 %v1274_v12, 264  ;;  %57 = vbcast.lane.b32.xlu0 %v1278_v13, 264 }
  0x24   :  { %323 = vbcast.lane.b32.xlu1 %v84_v6, 265  ;;  %291 = vbcast.lane.b32.xlu0 %v40_v5, 265 }
  0x28   :  { %221 = vbcast.lane.b32.xlu1 %v1286_v14, 256  ;;  %177 = vbcast.lane.b32.xlu0 %v1290_v15, 256 }
  0x2c   :  { %419 = vbcast.lane.b32.xlu1 %v1256_v8, 257  ;;  %387 = vbcast.lane.b32.xlu0 %v1260_v9, 257 }
  0x30   :  { %225 = vbcast.lane.b32.xlu1 %v1286_v14, 264  ;;  %181 = vbcast.lane.b32.xlu0 %v1290_v15, 264 }
  0x34   :  { %423 = vbcast.lane.b32.xlu1 %v1256_v8, 265  ;;  %391 = vbcast.lane.b32.xlu0 %v1260_v9, 265 }
  0x38   :  { %108 = vbcast.lane.b32.xlu1 %v1305_v18, 256  ;;  %64 = vbcast.lane.b32.xlu0 %v1309_v19, 256 }
  0x3c   :  { %327 = vbcast.lane.b32.xlu1 %v1274_v12, 257  ;;  %295 = vbcast.lane.b32.xlu0 %v1278_v13, 257 }
  0x40   :  { %519 = vbcast.lane.b32.xlu1 %v84_v6, 258  ;;  %487 = vbcast.lane.b32.xlu0 %v40_v5, 258 }
  0x44   :  { %112 = vbcast.lane.b32.xlu1 %v1305_v18, 264  ;;  %68 = vbcast.lane.b32.xlu0 %v1309_v19, 264 }
  0x48   :  { %331 = vbcast.lane.b32.xlu1 %v1274_v12, 265  ;;  %299 = vbcast.lane.b32.xlu0 %v1278_v13, 265 }
  0x4c   :  { %523 = vbcast.lane.b32.xlu1 %v84_v6, 266  ;;  %491 = vbcast.lane.b32.xlu0 %v40_v5, 266 }
  0x50   :  { %232 = vbcast.lane.b32.xlu1 %v1320_v20, 256  ;;  %188 = vbcast.lane.b32.xlu0 %v1324_v21, 256 }
  0x54   :  { %427 = vbcast.lane.b32.xlu1 %v1286_v14, 257  ;;  %395 = vbcast.lane.b32.xlu0 %v1290_v15, 257 }
  0x58   :  { %619 = vbcast.lane.b32.xlu1 %v1256_v8, 258  ;;  %587 = vbcast.lane.b32.xlu0 %v1260_v9, 258 }
  0x5c   :  { %236 = vbcast.lane.b32.xlu1 %v1320_v20, 264  ;;  %192 = vbcast.lane.b32.xlu0 %v1324_v21, 264 }
  0x60   :  { %431 = vbcast.lane.b32.xlu1 %v1286_v14, 265  ;;  %399 = vbcast.lane.b32.xlu0 %v1290_v15, 265 }
  0x64   :  { %623 = vbcast.lane.b32.xlu1 %v1256_v8, 266  ;;  %591 = vbcast.lane.b32.xlu0 %v1260_v9, 266 }
  0x68   :  { %119 = vbcast.lane.b32.xlu1 %v1353_v28, 256  ;;  %75 = vbcast.lane.b32.xlu0 %v1356_v29, 256 }
  0x6c   :  { %335 = vbcast.lane.b32.xlu1 %v1305_v18, 257  ;;  %303 = vbcast.lane.b32.xlu0 %v1309_v19, 257 }
  0x70   :  { %527 = vbcast.lane.b32.xlu1 %v1274_v12, 258  ;;  %495 = vbcast.lane.b32.xlu0 %v1278_v13, 258 }
  0x74   :  { %123 = vbcast.lane.b32.xlu1 %v1353_v28, 264  ;;  %79 = vbcast.lane.b32.xlu0 %v1356_v29, 264 }
  0x78   :  { %339 = vbcast.lane.b32.xlu1 %v1305_v18, 265  ;;  %307 = vbcast.lane.b32.xlu0 %v1309_v19, 265 }
  0x7a   :  { %v1368_v30 = vpop.permute.xlu1 %46  ;;  %v1370_v31 = vpop.permute.xlu0 %42 }
  0x7c   :  { %531 = vbcast.lane.b32.xlu1 %v1274_v12, 266  ;;  %499 = vbcast.lane.b32.xlu0 %v1278_v13, 266 }
  0x7e   :  { %v1380_v34 = vpop.permute.xlu1 %90  ;;  %v1382_v35 = vpop.permute.xlu0 %86 }
  0x80   :  { %243 = vbcast.lane.b32.xlu1 %v1375_v32, 256  ;;  %199 = vbcast.lane.b32.xlu0 %v1378_v33, 256 }
  0x82   :  { %v1386_v36 = vpop.permute.xlu1 %210  ;;  %v1388_v37 = vpop.permute.xlu0 %166 }
  0x84   :  { %435 = vbcast.lane.b32.xlu1 %v1320_v20, 257  ;;  %403 = vbcast.lane.b32.xlu0 %v1324_v21, 257 }
  0x86   :  { %v1392_v38 = vpop.permute.xlu1 %214  ;;  %v1394_v39 = vpop.permute.xlu0 %170 }
  0x88   :  { %627 = vbcast.lane.b32.xlu1 %v1286_v14, 258  ;;  %595 = vbcast.lane.b32.xlu0 %v1290_v15, 258 }
  0x8a   :  { %v98_v40 = vpop.permute.xlu1 %97  ;;  %v54_v41 = vpop.permute.xlu0 %53 }
  0x8b   :  { %v139_v51 = vmul.f32 %v1415_v47, %v98_v40  ;;  %v131_v52 = vmul.f32 %v1415_v47, %v54_v41  ;;  %v899_v41 = vunpack.c.0.s8 %v898_v27  ;;  %v138_v27 = vmul.f32 %v1415_v47, %v1380_v34 }
  0x8c   :  { %247 = vbcast.lane.b32.xlu1 %v1375_v32, 264  ;;  %203 = vbcast.lane.b32.xlu0 %v1378_v33, 264 }
  0x8d   :  { %v155_v57 = vadd.f32 %v1431_v54, %v139_v51  ;;  %v147_v58 = vadd.f32 %v1431_v54, %v131_v52 }
  0x8e   :  { %v1400_v42 = vpop.permute.xlu1 %319  ;;  %v1402_v43 = vpop.permute.xlu0 %287 }
  0x90   :  { %439 = vbcast.lane.b32.xlu1 %v1320_v20, 265  ;;  %407 = vbcast.lane.b32.xlu0 %v1324_v21, 265 }
  0x92   :  { %v102_v45 = vpop.permute.xlu1 %101  ;;  %v58_v46 = vpop.permute.xlu0 %57 }
  0x93   :  { %v140_v5 = vmul.f32 %v1415_v47, %v102_v45  ;;  %v132_v6 = vmul.f32 %v1415_v47, %v58_v46 }
  0x94   :  { %631 = vbcast.lane.b32.xlu1 %v1286_v14, 266  ;;  %599 = vbcast.lane.b32.xlu0 %v1290_v15, 266 }
  0x95   :  { %v156_v9 = vadd.f32 %v1431_v54, %v140_v5  ;;  %v148_v12 = vadd.f32 %v1431_v54, %v132_v6  ;;  %v137_v5 = vmul.f32 %v1415_v47, %v1382_v35  ;;  %v129_v6 = vmul.f32 %v1415_v47, %v1370_v31 }
  0x96   :  { %v1417_v49 = vpop.permute.xlu1 %323  ;;  %v1419_v50 = vpop.permute.xlu0 %291 }
  0x97   :  { %v145_v26 = vadd.f32 %v1431_v54, %v129_v6 }
  0x98   :  { %343 = vbcast.lane.b32.xlu1 %v1353_v28, 257  ;;  %311 = vbcast.lane.b32.xlu0 %v1356_v29, 257 }
  0x9a   :  { %v222_v55 = vpop.permute.xlu1 %221  ;;  %v178_v56 = vpop.permute.xlu0 %177 }
  0x9b   :  { %v263_v59 = vmul.f32 %v1426_v53, %v222_v55  ;;  %v255_v60 = vmul.f32 %v1426_v53, %v178_v56  ;;  %v895_v56 = vld [vmem:[%s1968_s6] sm:$0xff] }
  0x9c   :  { %535 = vbcast.lane.b32.xlu1 %v1305_v18, 258  ;;  %503 = vbcast.lane.b32.xlu0 %v1309_v19, 258 }
  0x9d   :  { %v279_v61 = vadd.f32 %v263_v59, %v155_v57  ;;  %v271_v62 = vadd.f32 %v255_v60, %v147_v58 }
  0x9e   :  { %v1439_v63 = vpop.permute.xlu1 %419  ;;  %v1441_v2 = vpop.permute.xlu0 %387 }
  0xa0   :  { %347 = vbcast.lane.b32.xlu1 %v1353_v28, 265  ;;  %315 = vbcast.lane.b32.xlu0 %v1356_v29, 265 }
  0xa2   :  { %v226_v7 = vpop.permute.xlu1 %225  ;;  %v182_v8 = vpop.permute.xlu0 %181 }
  0xa3   :  { %v264_v13 = vmul.f32 %v1426_v53, %v226_v7  ;;  %v256_v14 = vmul.f32 %v1426_v53, %v182_v8  ;;  %v261_v7 = vmul.f32 %v1426_v53, %v1386_v36 }
  0xa4   :  { %539 = vbcast.lane.b32.xlu1 %v1305_v18, 266  ;;  %507 = vbcast.lane.b32.xlu0 %v1309_v19, 266  ;;  %v1463_v18 = vrot.slane %v1409_v44, %v1268_v11  ;;  %v1476_v11 = vsub.s32 %v899_v41, %v1232_v1 }
  0xa5   :  { %v280_v15 = vadd.f32 %v264_v13, %v156_v9  ;;  %v272_v16 = vadd.f32 %v256_v14, %v148_v12  ;;  %v896_v13 = vcombine.high %v895_v56, %v895_v56 }
  0xa6   :  { %v1453_v22 = vpop.permute.xlu1 %423  ;;  %v1455_v23 = vpop.permute.xlu0 %391  ;;  %v903_v59 = vrot.slane %v895_v56, %v1476_v11 }
  0xa8   :  { %443 = vbcast.lane.b32.xlu1 %v1375_v32, 257  ;;  %411 = vbcast.lane.b32.xlu0 %v1378_v33, 257  ;;  %v919_v31 = vrot.slane %v903_v59, %v1476_v11 }
  0xaa   :  { %v109_v24 = vpop.permute.xlu1 %108  ;;  %v65_v25 = vpop.permute.xlu0 %64  ;;  %v941_v34 = vcombine.high %v919_v31, %v919_v31 }
  0xab   :  { %v141_v36 = vmul.f32 %v1415_v47, %v109_v24  ;;  %v361_v24 = vmul.f32 %v1463_v18, %v1400_v42 }
  0xac   :  { %635 = vbcast.lane.b32.xlu1 %v1320_v20, 258  ;;  %603 = vbcast.lane.b32.xlu0 %v1324_v21, 258 }
  0xad   :  { %v157_v56 = vadd.f32 %v1431_v54, %v141_v36 }
  0xae   :  { %v328_v19 = vpop.permute.xlu1 %327  ;;  %v296_v40 = vpop.permute.xlu0 %295 }
  0xaf   :  { %v363_v45 = vmul.f32 %v1463_v18, %v328_v19  ;;  %v355_v46 = vmul.f32 %v1463_v18, %v296_v40  ;;  %v253_v19 = vmul.f32 %v1426_v53, %v1388_v37 }
  0xb0   :  { %447 = vbcast.lane.b32.xlu1 %v1375_v32, 265  ;;  %415 = vbcast.lane.b32.xlu0 %v1378_v33, 265 }
  0xb1   :  { %v1469_v48 = vadd.f32 %v363_v45, %v279_v61  ;;  %v1471_v51 = vadd.f32 %v355_v46, %v271_v62  ;;  %v911_v62 = vcombine.high %v903_v59, %v903_v59  ;;  %v910_v46 = vrot.slane %v896_v13, %v1476_v11 }
  0xb2   :  { %v520_v52 = vpop.permute.xlu1 %519  ;;  %v1473_v55 = vpop.permute.xlu0 %487 }
  0xb3   :  { %v933_v14 = vrot.slane %v911_v62, %v1476_v11  ;;  %v269_v62 = vadd.f32 %v253_v19, %v145_v26  ;;  %v154_v26 = vadd.f32 %v1431_v54, %v138_v27 }
  0xb4   :  { %639 = vbcast.lane.b32.xlu1 %v1320_v20, 266  ;;  %607 = vbcast.lane.b32.xlu0 %v1324_v21, 266 }
  0xb5   :  { %v943_v41 = vcombine.high %v933_v14, %v933_v14  ;;  %v952_v45 = vrot.slane %v933_v14, %v1240_v3 }
  0xb6   :  { %v1483_v57 = vpop.permute.xlu1 %112  ;;  %v1485_v58 = vpop.permute.xlu0 %68 }
  0xb7   :  { %v142_v19 = vmul.f32 %v1415_v47, %v1483_v57 }
  0xb8   :  { %543 = vbcast.lane.b32.xlu1 %v1353_v28, 258  ;;  %511 = vbcast.lane.b32.xlu0 %v1356_v29, 258 }
  0xba   :  { %v332_v60 = vpop.permute.xlu1 %331  ;;  %v300_v61 = vpop.permute.xlu0 %299 }
  0xbb   :  { %v364_v20 = vmul.f32 %v1463_v18, %v332_v60  ;;  %v356_v21 = vmul.f32 %v1463_v18, %v300_v61  ;;  %v912_v61 = vcombine.high %v910_v46, %v910_v46 }
  0xbc   :  { %547 = vbcast.lane.b32.xlu1 %v1353_v28, 266  ;;  %515 = vbcast.lane.b32.xlu0 %v1356_v29, 266  ;;  %v1512_v28 = vrot.slane %v1409_v44, %v1243_v4  ;;  %v153_v29 = vadd.f32 %v1431_v54, %v137_v5 }
  0xbd   :  { %v1500_v8 = vadd.f32 %v364_v20, %v280_v15  ;;  %v1502_v9 = vadd.f32 %v356_v21, %v272_v16  ;;  %v133_v15 = vmul.f32 %v1415_v47, %v65_v25  ;;  %v1519_v16 = vrot.slane %v1409_v44, %v1300_v17 }
  0xbe   :  { %v1504_v12 = vpop.permute.xlu1 %523  ;;  %v1506_v35 = vpop.permute.xlu0 %491  ;;  %v277_v4 = vadd.f32 %v261_v7, %v153_v29  ;;  %v353_v17 = vmul.f32 %v1463_v18, %v1402_v43  ;;  %v461_v42 = vmul.f32 %v1512_v28, %v1439_v63  ;;  %v948_v43 = vrot.slane %v919_v31, %v1240_v3 }
  0xbf   :  { %v149_v59 = vadd.f32 %v1431_v54, %v133_v15  ;;  %v453_v5 = vmul.f32 %v1512_v28, %v1441_v2  ;;  %v561_v7 = vmul.f32 %v1519_v16, %v520_v52  ;;  %v553_v2 = vmul.f32 %v1519_v16, %v1473_v55 }
  0xc0   :  { %643 = vbcast.lane.b32.xlu1 %v1375_v32, 258  ;;  %611 = vbcast.lane.b32.xlu0 %v1378_v33, 258  ;;  %v377_v6 = vadd.f32 %v361_v24, %v277_v4  ;;  %v369_v14 = vadd.f32 %v353_v17, %v269_v62  ;;  %v956_v31 = vrot.slane %v941_v34, %v1240_v3 }
  0xc1   :  { %v960_v52 = vrot.slane %v943_v41, %v1240_v3  ;;  %v940_v36 = vrot.slane %v912_v61, %v1476_v11  ;;  %v130_v15 = vmul.f32 %v1415_v47, %v1368_v30  ;;  %v254_v55 = vmul.f32 %v1426_v53, %v1394_v39 }
  0xc2   :  { %v233_v25 = vpop.permute.xlu1 %232  ;;  %v189_v40 = vpop.permute.xlu0 %188  ;;  %v477_v29 = vadd.f32 %v461_v42, %v377_v6  ;;  %v134_v30 = vmul.f32 %v1415_v47, %v1485_v58  ;;  %v354_v58 = vmul.f32 %v1463_v18, %v1419_v50  ;;  %v454_v6 = vmul.f32 %v1512_v28, %v1455_v23 }
  0xc3   :  { %v265_v37 = vmul.f32 %v1426_v53, %v233_v25  ;;  %v257_v60 = vmul.f32 %v1426_v53, %v189_v40  ;;  %v968_v39 = vrot.slane %v940_v36, %v1240_v3  ;;  %v944_v41 = vcombine.high %v940_v36, %v940_v36 }
  0xc4   :  { %647 = vbcast.lane.b32.xlu1 %v1375_v32, 266  ;;  %615 = vbcast.lane.b32.xlu0 %v1378_v33, 266  ;;  %v926_v32 = vrot.slane %v910_v46, %v1476_v11  ;;  %v1557_v33 = vrot.slane %v1409_v44, %v1265_v10  ;;  %v262_v10 = vmul.f32 %v1426_v53, %v1392_v38 }
  0xc5   :  { %v1545_v20 = vadd.f32 %v265_v37, %v157_v56  ;;  %v1547_v21 = vadd.f32 %v257_v60, %v149_v59  ;;  %v469_v44 = vadd.f32 %v453_v5, %v369_v14  ;;  %v577_v4 = vadd.f32 %v561_v7, %v477_v29 }
  0xc6   :  { %v1550_v13 = vpop.permute.xlu1 %427  ;;  %v1552_v63 = vpop.permute.xlu0 %395  ;;  %v964_v11 = vrot.slane %v926_v32, %v1240_v3  ;;  %v942_v40 = vcombine.high %v926_v32, %v926_v32  ;;  %v146_v57 = vadd.f32 %v1431_v54, %v130_v15  ;;  %v278_v46 = vadd.f32 %v262_v10, %v154_v26 }
  0xc7   :  { %v569_v25 = vadd.f32 %v553_v2, %v469_v44  ;;  %v362_v56 = vmul.f32 %v1463_v18, %v1417_v49  ;;  %v158_v59 = vadd.f32 %v1431_v54, %v142_v19  ;;  %v150_v42 = vadd.f32 %v1431_v54, %v134_v30 }
  0xc8   :  { %981 = vperm.xlu1 %1186, %v952_v45   ;;  %978 = vperm.xlu0 %1185, %v948_v43   ;;  %v270_v62 = vadd.f32 %v254_v55, %v146_v57  ;;  %v972_v49 = vrot.slane %v942_v40, %v1240_v3  ;;  %v976_v50 = vrot.slane %v944_v41, %v1240_v3 }
  0xc9   :  { %v462_v5 = vmul.f32 %v1512_v28, %v1453_v22  ;;  %v554_v3 = vmul.f32 %v1519_v16, %v1506_v35 }
  0xca   :  { %v620_v24 = vpop.permute.xlu1 %619  ;;  %v588_v17 = vpop.permute.xlu0 %587  ;;  %v370_v29 = vadd.f32 %v354_v58, %v270_v62 }
  0xcb   :  { %v661_v27 = vmul.f32 %v1557_v33, %v620_v24  ;;  %v653_v38 = vmul.f32 %v1557_v33, %v588_v17 }
  0xcc   :  { %984 = vperm.xlu1 %1186, %v956_v31   ;;  %987 = vperm.xlu0 %1185, %v960_v52   ;;  %v378_v31 = vadd.f32 %v362_v56, %v278_v46  ;;  %v562_v52 = vmul.f32 %v1519_v16, %v1504_v12  ;;  %v470_v36 = vadd.f32 %v454_v6, %v370_v29 }
  0xcd   :  { %v669_v45 = vadd.f32 %v653_v38, %v569_v25  ;;  %v677_v34 = vadd.f32 %v661_v27, %v577_v4  ;;  %v455_v46 = vmul.f32 %v1512_v28, %v1552_v63 }
  0xce   :  { %v237_v37 = vpop.permute.xlu1 %236  ;;  %v193_v60 = vpop.permute.xlu0 %192  ;;  %v478_v22 = vadd.f32 %v462_v5, %v378_v31  ;;  %v570_v10 = vadd.f32 %v554_v3, %v470_v36 }
  0xcf   :  { %v266_v43 = vmul.f32 %v1426_v53, %v237_v37  ;;  %v258_v61 = vmul.f32 %v1426_v53, %v193_v60  ;;  %1150 = vmatprep.mubr.msk.f32.mxu0 %vm696_vm0, %v669_v45  ;;  %1162 = vmatprep.mubr.msk.f32.mxu1 %vm696_vm0, %v677_v34  ;;  %v463_v34 = vmul.f32 %v1512_v28, %v1550_v13 }
  0xd0   :  { %990 = vperm.xlu1 %1186, %v964_v11   ;;  %993 = vperm.xlu0 %1185, %v968_v39   ;;  %v578_v26 = vadd.f32 %v562_v52, %v478_v22 }
  0xd1   :  { %v1596_v7 = vadd.f32 %v266_v43, %v158_v59  ;;  %v1598_v32 = vadd.f32 %v258_v61, %v150_v42  ;;  %v479_v60 = vadd.f32 %v463_v34, %v1469_v48  ;;  %v471_v42 = vadd.f32 %v455_v46, %v1471_v51 }
  0xd2   :  { %v432_v14 = vpop.permute.xlu1 %431  ;;  %v400_v2 = vpop.permute.xlu0 %399 }
  0xd3   :  { %v464_v48 = vmul.f32 %v1512_v28, %v432_v14  ;;  %v456_v51 = vmul.f32 %v1512_v28, %v400_v2 }
  0xd4   :  { %996 = vperm.xlu1 %1186, %v972_v49   ;;  %999 = vperm.xlu0 %1185, %v976_v50  }
  0xd5   :  { %v480_v36 = vadd.f32 %v464_v48, %v1500_v8 }
  0xd6   :  { %v624_v15 = vpop.permute.xlu1 %623  ;;  %v592_v23 = vpop.permute.xlu0 %591 }
  0xd7   :  { %v662_v44 = vmul.f32 %v1557_v33, %v624_v15  ;;  %v654_v55 = vmul.f32 %v1557_v33, %v592_v23  ;;  %v472_v15 = vadd.f32 %v456_v51, %v1502_v9 }
  0xd9   :  { %v678_v4 = vadd.f32 %v662_v44, %v578_v26  ;;  %v670_v19 = vadd.f32 %v654_v55, %v570_v10 }
  0xda   :  { %v1606_v24 = vpop.permute.xlu1 %119  ;;  %v1608_v12 = vpop.permute.xlu0 %75 }
  0xdb   :  { %1151 = vmatmul.mubr.msk.f32.vlgmr.msra.gmra.mxu0 %vm696_vm0, %v670_v19  ;;  %1163 = vmatmul.mubr.msk.f32.vlgmr.msra.gmra.mxu1 %vm696_vm0, %v678_v4 }
  0xde   :  { %v336_v35 = vpop.permute.xlu1 %335  ;;  %v304_v17 = vpop.permute.xlu0 %303 }
  0xdf   :  { %v365_v46 = vmul.f32 %v1463_v18, %v336_v35 }
  0xe2   :  { %v528_v11 = vpop.permute.xlu1 %527  ;;  %v496_v25 = vpop.permute.xlu0 %495 }
  0xe3   :  { %v563_v59 = vmul.f32 %v1519_v16, %v528_v11  ;;  %v555_v37 = vmul.f32 %v1519_v16, %v496_v25 }
  0xe5   :  { %v579_v62 = vadd.f32 %v563_v59, %v479_v60  ;;  %v571_v49 = vadd.f32 %v555_v37, %v471_v42  ;;  %v357_v59 = vmul.f32 %v1463_v18, %v304_v17 }
  0xe6   :  { %v1612_v30 = vpop.permute.xlu1 %123  ;;  %v1614_v27 = vpop.permute.xlu0 %79 }
  0xea   :  { %v1616_v38 = vpop.permute.xlu1 %339  ;;  %v1618_v39 = vpop.permute.xlu0 %307 }
  0xeb   :  { %v366_v35 = vmul.f32 %v1463_v18, %v1616_v38  ;;  %v358_v17 = vmul.f32 %v1463_v18, %v1618_v39 }
  0xed   :  { %v374_v39 = vadd.f32 %v358_v17, %v1598_v32 }
  0xee   :  { %v532_v40 = vpop.permute.xlu1 %531  ;;  %v500_v41 = vpop.permute.xlu0 %499 }
  0xef   :  { %v564_v3 = vmul.f32 %v1519_v16, %v532_v40  ;;  %v556_v22 = vmul.f32 %v1519_v16, %v500_v41 }
  0xf1   :  { %v580_v10 = vadd.f32 %v564_v3, %v480_v36  ;;  %v572_v44 = vadd.f32 %v556_v22, %v472_v15  ;;  %v382_v15 = vadd.f32 %v366_v35, %v1596_v7  ;;  %v135_v7 = vmul.f32 %v1415_v47, %v1608_v12 }
  0xf2   :  { %v1620_v57 = vpop.permute.xlu1 %243  ;;  %v1622_v45 = vpop.permute.xlu0 %199 }
  0xf3   :  { %v259_v12 = vmul.f32 %v1426_v53, %v1622_v45 }
  0xf6   :  { %v436_v56 = vpop.permute.xlu1 %435  ;;  %v404_v58 = vpop.permute.xlu0 %403 }
  0xf7   :  { %v465_v37 = vmul.f32 %v1512_v28, %v436_v56  ;;  %v457_v60 = vmul.f32 %v1512_v28, %v404_v58 }
  0xfa   :  { %v628_v43 = vpop.permute.xlu1 %627  ;;  %v596_v61 = vpop.permute.xlu0 %595 }
  0xfb   :  { %v663_v50 = vmul.f32 %v1557_v33, %v628_v43  ;;  %v655_v13 = vmul.f32 %v1557_v33, %v596_v61  ;;  %v381_v61 = vadd.f32 %v365_v46, %v1545_v20 }
  0xfd   :  { %v679_v5 = vadd.f32 %v663_v50, %v579_v62  ;;  %v671_v63 = vadd.f32 %v655_v13, %v571_v49  ;;  %v373_v62 = vadd.f32 %v357_v59, %v1547_v21  ;;  %v481_v13 = vadd.f32 %v465_v37, %v381_v61 }
  0xfe   :  { %v1634_v6 = vpop.permute.xlu1 %247  ;;  %v1636_v31 = vpop.permute.xlu0 %203 }
  0xff   :  { %1153 = vmatprep.mubr.msk.f32.mxu0 %vm696_vm0, %v671_v63  ;;  %1165 = vmatprep.mubr.msk.f32.mxu1 %vm696_vm0, %v679_v5  ;;  %v473_v5 = vadd.f32 %v457_v60, %v373_v62  ;;  %v151_v62 = vadd.f32 %v1431_v54, %v135_v7 }
 0x102   :  { %v440_v29 = vpop.permute.xlu1 %439  ;;  %v408_v52 = vpop.permute.xlu0 %407 }
 0x103   :  { %v466_v51 = vmul.f32 %v1512_v28, %v440_v29  ;;  %v458_v3 = vmul.f32 %v1512_v28, %v408_v52  ;;  %v143_v52 = vmul.f32 %v1415_v47, %v1606_v24  ;;  %v136_v24 = vmul.f32 %v1415_v47, %v1614_v27 }
 0x104   :  { %v268_v27 = vmul.f32 %v1426_v53, %v1634_v6 }
 0x105   :  { %v474_v29 = vadd.f32 %v458_v3, %v374_v39  ;;  %v159_v59 = vadd.f32 %v1431_v54, %v143_v52 }
 0x106   :  { %v632_v23 = vpop.permute.xlu1 %631  ;;  %v600_v26 = vpop.permute.xlu0 %599 }
 0x107   :  { %v664_v55 = vmul.f32 %v1557_v33, %v632_v23  ;;  %v656_v14 = vmul.f32 %v1557_v33, %v600_v26 }
 0x109   :  { %v680_v4 = vadd.f32 %v664_v55, %v580_v10  ;;  %v672_v2 = vadd.f32 %v656_v14, %v572_v44  ;;  %v482_v44 = vadd.f32 %v466_v51, %v382_v15 }
 0x10a   :  { %v344_v19 = vpop.permute.xlu1 %343  ;;  %v312_v11 = vpop.permute.xlu0 %311 }
 0x10b   :  { %1154 = vmatmul.mubr.msk.f32.gmra.mxu0 %vm696_vm0, %v672_v2  ;;  %1166 = vmatmul.mubr.msk.f32.gmra.mxu1 %vm696_vm0, %v680_v4  ;;  %v367_v37 = vmul.f32 %v1463_v18, %v344_v19 }
 0x10e   :  { %v536_v25 = vpop.permute.xlu1 %535  ;;  %v504_v8 = vpop.permute.xlu0 %503 }
 0x10f   :  { %v565_v49 = vmul.f32 %v1519_v16, %v536_v25  ;;  %v557_v50 = vmul.f32 %v1519_v16, %v504_v8  ;;  %v144_v8 = vmul.f32 %v1415_v47, %v1612_v30  ;;  %v359_v30 = vmul.f32 %v1463_v18, %v312_v11 }
 0x111   :  { %v581_v63 = vadd.f32 %v565_v49, %v481_v13  ;;  %v573_v48 = vadd.f32 %v557_v50, %v473_v5  ;;  %v160_v19 = vadd.f32 %v1431_v54, %v144_v8  ;;  %v152_v49 = vadd.f32 %v1431_v54, %v136_v24 }
 0x112   :  { %v1650_v40 = vpop.permute.xlu1 %347  ;;  %v1652_v9 = vpop.permute.xlu0 %315  ;;  %v275_v50 = vadd.f32 %v259_v12, %v151_v62 }
 0x113   :  { %v368_v5 = vmul.f32 %v1463_v18, %v1650_v40  ;;  %v360_v35 = vmul.f32 %v1463_v18, %v1652_v9 }
 0x116   :  { %v540_v41 = vpop.permute.xlu1 %539  ;;  %v508_v34 = vpop.permute.xlu0 %507 }
 0x117   :  { %v566_v26 = vmul.f32 %v1519_v16, %v540_v41  ;;  %v558_v10 = vmul.f32 %v1519_v16, %v508_v34  ;;  %v267_v41 = vmul.f32 %v1426_v53, %v1620_v57  ;;  %v260_v57 = vmul.f32 %v1426_v53, %v1636_v31 }
 0x118   :  { %v375_v31 = vadd.f32 %v359_v30, %v275_v50 }
 0x119   :  { %v582_v4 = vadd.f32 %v566_v26, %v482_v44  ;;  %v574_v32 = vadd.f32 %v558_v10, %v474_v29  ;;  %v283_v47 = vadd.f32 %v267_v41, %v159_v59  ;;  %v1190_v59 = vmov 0.0  }
 0x11a   :  { %v444_v42 = vpop.permute.xlu1 %443  ;;  %v412_v43 = vpop.permute.xlu0 %411 }
 0x11b   :  { %v467_v45 = vmul.f32 %v1512_v28, %v444_v42  ;;  %v459_v11 = vmul.f32 %v1512_v28, %v412_v43  ;;  %v383_v13 = vadd.f32 %v367_v37, %v283_v47 }
 0x11d   :  { %v483_v54 = vadd.f32 %v467_v45, %v383_v13  ;;  %v475_v43 = vadd.f32 %v459_v11, %v375_v31 }
 0x11e   :  { %v636_v56 = vpop.permute.xlu1 %635  ;;  %v604_v58 = vpop.permute.xlu0 %603 }
 0x11f   :  { %v665_v20 = vmul.f32 %v1557_v33, %v636_v56  ;;  %v657_v21 = vmul.f32 %v1557_v33, %v604_v58  ;;  %v284_v56 = vadd.f32 %v268_v27, %v160_v19  ;;  %v276_v58 = vadd.f32 %v260_v57, %v152_v49  ;;  %v1841_v19 = vld [vmem:[%s1969_s5] ss:$0 sm:$0xff] }
 0x121   :  { %v681_v22 = vadd.f32 %v665_v20, %v581_v63  ;;  %v673_v36 = vadd.f32 %v657_v21, %v573_v48  ;;  %v384_v20 = vadd.f32 %v368_v5, %v284_v56  ;;  %v376_v40 = vadd.f32 %v360_v35, %v276_v58 }
 0x122   :  { %v448_v38 = vpop.permute.xlu1 %447  ;;  %v416_v23 = vpop.permute.xlu0 %415 }
 0x123   :  { %1156 = vmatprep.mubr.msk.f32.mxu0 %vm696_vm0, %v673_v36  ;;  %1168 = vmatprep.mubr.msk.f32.mxu1 %vm696_vm0, %v681_v22  ;;  %v468_v63 = vmul.f32 %v1512_v28, %v448_v38  ;;  %v460_v48 = vmul.f32 %v1512_v28, %v416_v23 }
 0x125   :  { %v484_v39 = vadd.f32 %v468_v63, %v384_v20  ;;  %v476_v26 = vadd.f32 %v460_v48, %v376_v40 }
 0x126   :  { %v640_v55 = vpop.permute.xlu1 %639  ;;  %v608_v14 = vpop.permute.xlu0 %607 }
 0x127   :  { %v666_v2 = vmul.f32 %v1557_v33, %v640_v55  ;;  %v658_v25 = vmul.f32 %v1557_v33, %v608_v14 }
 0x129   :  { %v682_v34 = vadd.f32 %v666_v2, %v582_v4  ;;  %v674_v46 = vadd.f32 %v658_v25, %v574_v32  ;;  %v1725_v4 = vand.u32 127, %v37_v0  ;;  %v1728_v32 = vadd.s32 8, %v1232_v1 }
 0x12a   :  { %v544_v60 = vpop.permute.xlu1 %543  ;;  %v512_v61 = vpop.permute.xlu0 %511 }
 0x12b   :  { %1157 = vmatmul.mubr.msk.f32.gmra.mxu0 %vm696_vm0, %v674_v46  ;;  %1169 = vmatmul.mubr.msk.f32.gmra.mxu1 %vm696_vm0, %v682_v34  ;;  %v567_v6 = vmul.f32 %v1519_v16, %v544_v60  ;;  %v559_v42 = vmul.f32 %v1519_v16, %v512_v61  ;;  %vm1017_vm1 = vcmp.ge.s32.totalorder %v1725_v4, 32  ;;  %vm1034_vm5 = vcmp.lt.s32.totalorder %v1725_v4, 64 }
 0x12d   :  { %v583_v21 = vadd.f32 %v567_v6, %v483_v54  ;;  %v575_v3 = vadd.f32 %v559_v42, %v475_v43 }
 0x12e   :  { %v548_v17 = vpop.permute.xlu1 %547  ;;  %v516_v53 = vpop.permute.xlu0 %515 }
 0x12f   :  { %v568_v18 = vmul.f32 %v1519_v16, %v548_v17  ;;  %v560_v22 = vmul.f32 %v1519_v16, %v516_v53 }
 0x131   :  { %v584_v44 = vadd.f32 %v568_v18, %v484_v39  ;;  %v576_v29 = vadd.f32 %v560_v22, %v476_v26 }
 0x132   :  { %v644_v9 = vpop.permute.xlu1 %643  ;;  %v612_v51 = vpop.permute.xlu0 %611 }
 0x133   :  { %v667_v36 = vmul.f32 %v1557_v33, %v644_v9  ;;  %v659_v15 = vmul.f32 %v1557_v33, %v612_v51 }
 0x135   :  { %v683_v38 = vadd.f32 %v667_v36, %v583_v21  ;;  %v675_v10 = vadd.f32 %v659_v15, %v575_v3 }
 0x136   :  { %v648_v28 = vpop.permute.xlu1 %647  ;;  %v616_v23 = vpop.permute.xlu0 %615 }
 0x137   :  { %v668_v52 = vmul.f32 %v1557_v33, %v648_v28  ;;  %v660_v7 = vmul.f32 %v1557_v33, %v616_v23  ;;  %1159 = vmatprep.mubr.msk.f32.mxu0 %vm696_vm0, %v675_v10  ;;  %1171 = vmatprep.mubr.msk.f32.mxu1 %vm696_vm0, %v683_v38 }
 0x139   :  { %v684_v16 = vadd.f32 %v668_v52, %v584_v44  ;;  %v676_v55 = vadd.f32 %v660_v7, %v576_v29 }
 0x13b   :  { %1160 = vmatmul.mubr.msk.f32.gmra.mxu0 %vm696_vm0, %v676_v55  ;;  %1172 = vmatmul.mubr.msk.f32.gmra.mxu1 %vm696_vm0, %v684_v16 }
 0x143   :  { %v1722_v14 = vpop.permute.xlu1 %981  ;;  %v979_v25 = vpop.permute.xlu0 %978 }
 0x147   :  { %v985_v2 = vpop.permute.xlu1 %984  ;;  %v988_v8 = vpop.permute.xlu0 %987 }
 0x148   :  { %vm1005_vm2 = vcmp.ge.s32.totalorder %v1232_v1, %v985_v2  ;;  %vm1006_vm3 = vcmp.ge.s32.totalorder %v1728_v32, %v985_v2  ;;  %vm1007_vm9 = vcmp.ge.s32.totalorder %v1232_v1, %v988_v8  ;;  %vm1008_vm10 = vcmp.ge.s32.totalorder %v1728_v32, %v988_v8 }
 0x149   :  { %vm1022_vm4 = vmand %vm1005_vm2, %vm1017_vm1 }
 0x14a   :  { %vm1023_vm6 = vmand %vm1006_vm3, %vm1017_vm1 }
 0x14b   :  { %vm1740_vm7 = vmand %vm1022_vm4, %vm1034_vm5  ;;  %v991_v41 = vpop.permute.xlu1 %990  ;;  %v994_v46 = vpop.permute.xlu0 %993 }
 0x14c   :  { %vm1746_vm8 = vmand %vm1023_vm6, %vm1034_vm5  ;;  %v1789_v61 = vsel %vm1740_vm7, 10000.0, %v1190_v59 }
 0x14d   :  { %vm1024_vm11 = vmand %vm1007_vm9, %vm1017_vm1  ;;  %v1781_v37 = vsel %vm1746_vm8, 10000.0, %v1190_v59 }
 0x14e   :  { %vm1025_vm12 = vmand %vm1008_vm10, %vm1017_vm1 }
 0x14f   :  { %vm1758_vm13 = vmand %vm1024_vm11, %vm1034_vm5  ;;  %v997_v34 = vpop.permute.xlu1 %996  ;;  %v1000_v30 = vpop.permute.xlu0 %999 }
 0x150   :  { %vm1764_vm14 = vmand %vm1025_vm12, %vm1034_vm5  ;;  %vm1013_vm15 = vcmp.ge.s32.totalorder %v1232_v1, %v997_v34  ;;  %vm1014_vm0 = vcmp.ge.s32.totalorder %v1728_v32, %v997_v34  ;;  %vm1015_vm9 = vcmp.ge.s32.totalorder %v1232_v1, %v1000_v30  ;;  %vm1016_vm10 = vcmp.ge.s32.totalorder %v1728_v32, %v1000_v30 }
 0x151   :  { %vm1030_vm2 = vmand %vm1013_vm15, %vm1017_vm1  ;;  %v1805_v47 = vsel %vm1764_vm14, 10000.0, %v1190_v59  ;;  %v1810_v27 = vsel %vm1758_vm13, 10000.0, %v1190_v59  ;;  %vm1010_vm15 = vcmp.ge.s32.totalorder %v1728_v32, %v991_v41  ;;  %vm1002_vm14 = vcmp.ge.s32.totalorder %v1728_v32, %v979_v25 }
 0x152   :  { %vm1031_vm3 = vmand %vm1014_vm0, %vm1017_vm1  ;;  %vm1009_vm0 = vcmp.ge.s32.totalorder %v1232_v1, %v991_v41 }
 0x153   :  { %vm1047_vm4 = vmand %vm1030_vm2, %vm1034_vm5 }
 0x154   :  { %vm1048_vm6 = vmand %vm1031_vm3, %vm1034_vm5  ;;  %v1792_v62 = vsel %vm1047_vm4, 10000.0, %v1190_v59  ;;  %vm1001_vm3 = vcmp.ge.s32.totalorder %v1232_v1, %v979_v25 }
 0x155   :  { %v1784_v60 = vsel %vm1048_vm6, 10000.0, %v1190_v59  ;;  %vm1032_vm8 = vmand %vm1015_vm9, %vm1017_vm1 }
 0x156   :  { %vm1033_vm11 = vmand %vm1016_vm10, %vm1017_vm1 }
 0x157   :  { %vm1049_vm12 = vmand %vm1032_vm8, %vm1034_vm5 }
 0x158   :  { %vm1050_vm7 = vmand %vm1033_vm11, %vm1034_vm5  ;;  %v1815_v57 = vsel %vm1049_vm12, 10000.0, %v1190_v59  ;;  %vm1083_vm12 = vcmask 785408  }
 0x159   :  { %v1818_v45 = vsel %vm1050_vm7, 10000.0, %v1190_v59  ;;  %vm1027_vm2 = vmand %vm1010_vm15, %vm1017_vm1  ;;  %vm1004_vm7 = vcmp.ge.s32.totalorder %v1728_v32, %v1722_v14  ;;  %vm1003_vm15 = vcmp.ge.s32.totalorder %v1232_v1, %v1722_v14 }
 0x15a   :  { %vm1026_vm13 = vmand %vm1009_vm0, %vm1017_vm1  ;;  %vm1012_vm0 = vcmp.ge.s32.totalorder %v1728_v32, %v994_v46 }
 0x15b   :  { %vm1019_vm4 = vmand %vm1002_vm14, %vm1017_vm1 }
 0x15c   :  { %vm1044_vm6 = vmand %vm1027_vm2, %vm1034_vm5 }
 0x15d   :  { %vm1018_vm9 = vmand %vm1001_vm3, %vm1017_vm1  ;;  %v1060_v13 = vsel %vm1044_vm6, 10000.0, %v1190_v59 }
 0x15e   :  { %vm1036_vm10 = vmand %vm1019_vm4, %vm1034_vm5 }
 0x15f   :  { %vm1043_vm8 = vmand %vm1026_vm13, %vm1034_vm5  ;;  %v1052_v50 = vsel %vm1036_vm10, 10000.0, %v1190_v59  ;;  %vm1011_vm13 = vcmp.ge.s32.totalorder %v1232_v1, %v994_v46 }
 0x160   :  { %vm1035_vm11 = vmand %vm1018_vm9, %vm1034_vm5  ;;  %v1059_v31 = vsel %vm1043_vm8, 10000.0, %v1190_v59 }
 0x161   :  { %v1051_v17 = vsel %vm1035_vm11, 10000.0, %v1190_v59  ;;  %vm1021_vm14 = vmand %vm1004_vm7, %vm1017_vm1 }
 0x162   :  { %vm1020_vm2 = vmand %vm1003_vm15, %vm1017_vm1 }
 0x163   :  { %vm1029_vm3 = vmand %vm1012_vm0, %vm1017_vm1 }
 0x164   :  { %vm1038_vm4 = vmand %vm1021_vm14, %vm1034_vm5 }
 0x165   :  { %vm1028_vm6 = vmand %vm1011_vm13, %vm1017_vm1  ;;  %v1054_v1 = vsel %vm1038_vm4, 10000.0, %v1190_v59 }
 0x166   :  { %vm1046_vm9 = vmand %vm1029_vm3, %vm1034_vm5 }
 0x167   :  { %vm1037_vm10 = vmand %vm1020_vm2, %vm1034_vm5  ;;  %v1062_v40 = vsel %vm1046_vm9, 10000.0, %v1190_v59 }
 0x168   :  { %vm1045_vm8 = vmand %vm1028_vm6, %vm1034_vm5  ;;  %v1053_v51 = vsel %vm1037_vm10, 10000.0, %v1190_v59 }
 0x169   :  { %v1061_v22 = vsel %vm1045_vm8, 10000.0, %v1190_v59 }
 0x19b   :  { %v1152_v49 = vpop.f32.mrf.mxu0  ;;  %v1164_v11 = vpop.f32.mrf.mxu1 }
 0x19c   :  { %v817_v5 = vadd.f32 %v1152_v49, %v1841_v19  ;;  %v857_v35 = vadd.f32 %v1164_v11, %v1841_v19 }
 0x19d   :  { %v811_v6 = vpop.f32.mrf.mxu0  ;;  %v851_v53 = vpop.f32.mrf.mxu1 }
 0x19e   :  { %v1068_v42 = vadd.f32 %v1052_v50, %v817_v5  ;;  %v1076_v56 = vadd.f32 %v1060_v13, %v857_v35  ;;  %v812_v58 = vadd.f32 %v1841_v19, %v811_v6  ;;  %v852_v54 = vadd.f32 %v1841_v19, %v851_v53 }
 0x1a0   :  { %1085 = vst.msk [vmem:[%s1970_s7 + $0x8] sm:$0xff] %vm1083_vm12, %v1068_v42  ;;  %1093 = vst.msk [vmem:[%s1970_s7 + $0x48] sm:$0xff] %vm1083_vm12, %v1076_v56  ;;  %v1067_v63 = vadd.f32 %v1051_v17, %v812_v58  ;;  %v1075_v43 = vadd.f32 %v1059_v31, %v852_v54 }
 0x1a2   :  { %1084 = vst.msk [vmem:[%s1970_s7] sm:$0xff] %vm1083_vm12, %v1067_v63  ;;  %1092 = vst.msk [vmem:[%s1970_s7 + $0x40] sm:$0xff] %vm1083_vm12, %v1075_v43 }
 0x1cb   :  { %v1155_v48 = vpop.f32.mrf.mxu0  ;;  %v1167_v20 = vpop.f32.mrf.mxu1 }
 0x1cc   :  { %v827_v21 = vadd.f32 %v1155_v48, %v1841_v19  ;;  %v867_v18 = vadd.f32 %v1167_v20, %v1841_v19 }
 0x1cd   :  { %v821_v9 = vpop.f32.mrf.mxu0  ;;  %v861_v3 = vpop.f32.mrf.mxu1 }
 0x1ce   :  { %v1070_v36 = vadd.f32 %v1054_v1, %v827_v21  ;;  %v1078_v15 = vadd.f32 %v1062_v40, %v867_v18  ;;  %v822_v39 = vadd.f32 %v1841_v19, %v821_v9  ;;  %v862_v26 = vadd.f32 %v1841_v19, %v861_v3 }
 0x1d0   :  { %1087 = vst.msk [vmem:[%s1970_s7 + $0x18] sm:$0xff] %vm1083_vm12, %v1070_v36  ;;  %1095 = vst.msk [vmem:[%s1970_s7 + $0x58] sm:$0xff] %vm1083_vm12, %v1078_v15  ;;  %v1069_v38 = vadd.f32 %v1053_v51, %v822_v39  ;;  %v1077_v10 = vadd.f32 %v1061_v22, %v862_v26 }
 0x1d2   :  { %1086 = vst.msk [vmem:[%s1970_s7 + $0x10] sm:$0xff] %vm1083_vm12, %v1069_v38  ;;  %1094 = vst.msk [vmem:[%s1970_s7 + $0x50] sm:$0xff] %vm1083_vm12, %v1077_v10 }
 0x1eb   :  { %v1158_v44 = vpop.f32.mrf.mxu0  ;;  %v1170_v28 = vpop.f32.mrf.mxu1 }
 0x1ec   :  { %v837_v23 = vadd.f32 %v1158_v44, %v1841_v19  ;;  %v877_v29 = vadd.f32 %v1170_v28, %v1841_v19 }
 0x1ed   :  { %v831_v52 = vpop.f32.mrf.mxu0  ;;  %v871_v7 = vpop.f32.mrf.mxu1 }
 0x1ee   :  { %v1072_v16 = vadd.f32 %v1781_v37, %v837_v23  ;;  %v1080_v55 = vadd.f32 %v1784_v60, %v877_v29  ;;  %v832_v14 = vadd.f32 %v1841_v19, %v831_v52  ;;  %v872_v4 = vadd.f32 %v1841_v19, %v871_v7 }
 0x1f0   :  { %1089 = vst.msk [vmem:[%s1970_s7 + $0x28] sm:$0xff] %vm1083_vm12, %v1072_v16  ;;  %1097 = vst.msk [vmem:[%s1970_s7 + $0x68] sm:$0xff] %vm1083_vm12, %v1080_v55  ;;  %v1071_v32 = vadd.f32 %v1789_v61, %v832_v14  ;;  %v1079_v2 = vadd.f32 %v1792_v62, %v872_v4 }
 0x1f2   :  { %1088 = vst.msk [vmem:[%s1970_s7 + $0x20] sm:$0xff] %vm1083_vm12, %v1071_v32  ;;  %1096 = vst.msk [vmem:[%s1970_s7 + $0x60] sm:$0xff] %vm1083_vm12, %v1079_v2 }
 0x1fb   :  { %v1161_v0 = vpop.f32.mrf.mxu0  ;;  %v1173_v33 = vpop.f32.mrf.mxu1 }
 0x1fc   :  { %v847_v25 = vadd.f32 %v1161_v0, %v1841_v19  ;;  %v887_v8 = vadd.f32 %v1173_v33, %v1841_v19 }
 0x1fd   :  { %v841_v41 = vpop.f32.mrf.mxu0  ;;  %v881_v24 = vpop.f32.mrf.mxu1 }
 0x1fe   :  { %v1074_v12 = vadd.f32 %v1805_v47, %v847_v25  ;;  %v1082_v34 = vadd.f32 %v1818_v45, %v887_v8  ;;  %v842_v46 = vadd.f32 %v1841_v19, %v841_v41  ;;  %v882_v59 = vadd.f32 %v1841_v19, %v881_v24 }
 0x200   :  { %1091 = vst.msk [vmem:[%s1970_s7 + $0x38] sm:$0xff] %vm1083_vm12, %v1074_v12  ;;  %1099 = vst.msk [vmem:[%s1970_s7 + $0x78] sm:$0xff] %vm1083_vm12, %v1082_v34  ;;  %v1073_v37 = vadd.f32 %v1810_v27, %v842_v46  ;;  %v1081_v60 = vadd.f32 %v1815_v57, %v882_v59 }
 0x202   :  { %1090 = vst.msk [vmem:[%s1970_s7 + $0x30] sm:$0xff] %vm1083_vm12, %v1073_v37  ;;  %1098 = vst.msk [vmem:[%s1970_s7 + $0x70] sm:$0xff] %vm1083_vm12, %v1081_v60 }

// kernel: emotion_predictor_forward.4
= control target key start
LH: loop header
LB: loop body
LE: loop exit
PB: predicated region body
PF: predicated region fallthrough
CT: control target
= control target key end

     0   :  { %s3631_s12 = smov 0   ;;  %s3633_s13 = smov 0   ;;  %s4881_s0 = inlined_call_operand.vmem [shape: f32[8,16,96], index: 0, kind: input, shape index: {}]   ;;  %s4882_s1 = inlined_call_operand.vmem [shape: f32[32,96], index: 1, kind: input, shape index: {}]   ;;  %s4883_s2 = inlined_call_operand.vmem [shape: f32[1,96], index: 2, kind: input, shape index: {}]   ;;  %s4884_s3 = inlined_call_operand.vmem [shape: f32[8,32], index: 3, kind: output, shape index: {}]  }
   0x1   :  { %s3635_s14 = smov 0  }
   0x2 LB: > { %s2933_s15 = sadd.s32 4294967295, %s3603_s14   ;;  %s3648_s16 = sadd.s32 1, %s3603_s14   ;;  %s3603_s14 = sphi %s3635_s14, %s4887_s14   ;;  %s3599_s13 = sphi %s3633_s13, %s4886_s13   ;;  %s3595_s12 = sphi %s3631_s12, %s4885_s12  }
   0x3   : > { %s17_s17 = ssub.s32 %s3603_s14, %s3648_s16  ;;  %s20_s18 = sadd.s32 1, %s3599_s13 }
   0x4   : > { %p18_p0 = scmp.eq.s32.totalorder %s17_s17, 0  ;;  %p27_p1 = scmp.ne.s32.totalorder %s3599_s13, %s3595_s12 }
   0x5   : > { %p28_p2 = scmp.eq.s32.totalorder %s3603_s14, 0  ;;  %p2935_p4 = scmp.ge.s32.totalorder %s3603_s14, 2 }
   0x6   : > { %s3657_s19 = scalar_select %p18_p0, %s3599_s13, %s20_s18  }
   0x7   : > { %p29_p3 = por %p28_p2, %p27_p1  ;;  %122 = sbr.rel (%p2935_p4) target bundleno = 20 (0x14), region = 24 }
   0xc   : > { %125 = sbr.rel (!%p29_p3) target bundleno = 20 (0x14), region = 28  ;;  %s127_s20 = sand.u32 (%p29_p3), 1, %s3599_s13  }
   0xd   : > { %s2937_s21 = sshll.u32 (%p29_p3), %s3603_s14, 3  ;;  %s2936_s22 = sshll.u32 (%p29_p3), %s127_s20, 6 }
   0xe   : > { %s131_s25 = scalar_lea.vmem (%p29_p3), %s4881_s0, %s2937_s21  ;;  %s129_s26 = scalar_lea.vmem (%p29_p3), [#allocation3], %s2936_s22 }
   0xf   : > { %v174_v0 = vld [vmem:[%s131_s25] sm:$0xff] (%p29_p3)  ;;  %v176_v1 = vld [vmem:[%s131_s25 + $0x10] sm:$0xff] (%p29_p3) }
  0x10   : > { %v178_v2 = vld [vmem:[%s131_s25 + $0x20] sm:$0xff] (%p29_p3)  ;;  %175 = vst [vmem:[%s129_s26] sm:$0xff] (%p29_p3), %v174_v0  ;;  %177 = vst [vmem:[%s129_s26 + $0x8] sm:$0xff] (%p29_p3), %v176_v1  ;;  %v180_v3 = vld [vmem:[%s131_s25 + $0x30] sm:$0xff] (%p29_p3) }
  0x11   : > { %179 = vst [vmem:[%s129_s26 + $0x10] sm:$0xff] %v178_v2  ;;  %v182_v4 = vld [vmem:[%s131_s25 + $0x40] sm:$0xff]  ;;  %v184_v5 = vld [vmem:[%s131_s25 + $0x50] sm:$0xff]  ;;  %181 = vst [vmem:[%s129_s26 + $0x18] sm:$0xff] %v180_v3 }
  0x12   : > { %183 = vst [vmem:[%s129_s26 + $0x20] sm:$0xff] %v182_v4  ;;  %185 = vst [vmem:[%s129_s26 + $0x28] sm:$0xff] %v184_v5  ;;  %v186_v6 = vld [vmem:[%s131_s25 + $0x60] sm:$0xff]  ;;  %v188_v7 = vld [vmem:[%s131_s25 + $0x70] sm:$0xff] }
  0x13   : > { %187 = vst [vmem:[%s129_s26 + $0x30] sm:$0xff] %v186_v6  ;;  %189 = vst [vmem:[%s129_s26 + $0x38] sm:$0xff] %v188_v7 }
  0x14 PF: > { %p2938_p5 = scmp.ge.s32.totalorder %s3603_s14, 1  ;;  %p194_p6 = scmp.lt.s32.totalorder %s3603_s14, 3 }
  0x16   : > { %p195_p7 = pnand %p2938_p5, %p194_p6 }
  0x17   : > { %s201_s27 = sand.u32 (!%p195_p7), 1, %s3595_s12   ;;  %p2940_p8 = scmp.ne.s32.totalorder (!%p195_p7), %s2933_s15, 0 }
  0x18   : > { %198 = sbr.rel (%p195_p7) target bundleno = 5614 (0x15ee), region = 66  ;;  %s2939_s28 = sshll.u32 (!%p195_p7), %s201_s27, 6 }
  0x19   : > { %s3668_s29 = scalar_lea.vmem (!%p195_p7), [#allocation3], %s2939_s28 }
  0x1d   : > { %222 = sbr.rel (%p2940_p8) target bundleno = 36 (0x24), region = 74 }
  0x22   : > { %vm223_vm0 = vcmask 261120   ;;  %v3605_v8 = vmov 0.0  }
  0x23   : > { %224 = vst.msk [vmem:[#allocation2] sm:$0xff] %vm223_vm0, %v3605_v8 }
  0x24 PF: > { %v3675_v9 = vld [vmem:[%s4882_s1 + $0x18] sm:$0xff]  ;;  %v3606_v10 = vmov 0.0   ;;  %v3681_v11 = vld [vmem:[%s4882_s1 + $0x10] sm:$0xff]  ;;  %vm3607_vm1 = vmmov 0   ;;  %v3691_v12 = vld [vmem:[%s4882_s1 + $0x8] sm:$0xff]  ;;  %vm245_vm2 = vcmask 261120  }
  0x25   : > { %3057 = vmatprep.subr.mxu0 %v3606_v10  ;;  %3065 = vmatprep.mubr.msk.f32.mxu0 %vm3607_vm1, %v3606_v10  ;;  %v3700_v13 = vld [vmem:[%s4882_s1] sm:$0xff]  ;;  %s3608_s17 = smov 64   ;;  %v3743_v26 = vld [vmem:[%s3668_s29] sm:$0xff]  ;;  %v3747_v28 = vld [vmem:[%s3668_s29 + $0x8] sm:$0xff]  ;;  %s3609_s18 = smov 32   ;;  %vm575_vm3 = vcmask 1041409  }
  0x26   : > { %3058 = vmatpush3.msra.mxu0 %v3675_v9  ;;  %3068 = vmatprep.subr.mxu1 %v3606_v10  ;;  %v3731_v15 = vld [vmem:[%s4883_s2] ss:$0 sm:$0xff]  ;;  %v3750_v29 = vld [vmem:[%s3668_s29 + $0x10] sm:$0xff]  ;;  %v3758_v34 = vld [vmem:[%s3668_s29 + $0x20] sm:$0xff]  ;;  %s3610_s20 = smov 96   ;;  %vm578_vm4 = vcmask 1042434  }
  0x27   : > { %3059 = vmatprep.subr.mxu0 %v3606_v10  ;;  %3069 = vmatpush3.msra.mxu1 %v3675_v9  ;;  %v3754_v32 = vld [vmem:[%s3668_s29 + $0x18] sm:$0xff]  ;;  %v3762_v38 = vld [vmem:[%s3668_s29 + $0x28] sm:$0xff]  ;;  %v3766_v40 = vld [vmem:[%s3668_s29 + $0x30] sm:$0xff]  ;;  %vm581_vm5 = vcmask 1043459   ;;  %vm584_vm6 = vcmask 1044484   ;;  %vm587_vm7 = vcmask 1045509  }
  0x28   : > { %3060 = vmatpush3.msra.mxu0 %v3681_v11  ;;  %3070 = vmatprep.subr.mxu1 %v3606_v10  ;;  %v3771_v45 = vld [vmem:[%s3668_s29 + $0x38] sm:$0xff]  ;;  %vm590_vm8 = vcmask 1046534   ;;  %vm593_vm9 = vcmask 1047559   ;;  %vm2889_vm10 = vcmask 261127   ;;  %vm2891_vm11 = vcmask 260096   ;;  %p3014_p9 = scmp.ne.s32.totalorder %s2933_s15, 1 }
  0x29   : > { %3061 = vmatprep.subr.mxu0 %v3606_v10  ;;  %3071 = vmatpush3.msra.mxu1 %v3681_v11 }
  0x2a   : > { %3062 = vmatpush3.msra.mxu0 %v3691_v12  ;;  %v3704_v14 = vld [vmem:[#allocation2] sm:$0xff]  ;;  %3072 = vmatprep.subr.mxu1 %v3606_v10 }
  0x2b   : > { %3063 = vmatprep.subr.mxu0 %v3606_v10  ;;  %3073 = vmatpush3.msra.mxu1 %v3691_v12 }
  0x2c   : > { %3064 = vmatpush3.msra.mxu0 %v3700_v13  ;;  %3074 = vmatprep.subr.mxu1 %v3606_v10 }
  0x2d   : > { %3066 = vmatmul.mubr.msk.f32.vlgmr.msra.gmra.mxu0 %vm245_vm2, %v3704_v14  ;;  %3075 = vmatpush3.msra.mxu1 %v3700_v13 }
  0x2e   : > { %3076 = vmatprep.mubr.msk.f32.mxu1 %vm3607_vm1, %v3606_v10  ;;  %3079 = vmatprep.subr.mxu0 %v3606_v10 }
  0x2f   : > { %3080 = vmatpush3.msra.mxu0 %v3675_v9  ;;  %3087 = vmatprep.mubr.msk.f32.mxu0 %vm3607_vm1, %v3606_v10 }
  0x30   : > { %3081 = vmatprep.subr.mxu0 %v3606_v10  ;;  %3090 = vmatprep.subr.mxu1 %v3606_v10 }
  0x31   : > { %3082 = vmatpush3.msra.mxu0 %v3681_v11 }
  0x32   : > { %3083 = vmatprep.subr.mxu0 %v3606_v10 }
  0x33   : > { %3084 = vmatpush3.msra.mxu0 %v3691_v12 }
  0x34   : > { %3085 = vmatprep.subr.mxu0 %v3606_v10 }
  0x35   : > { %3086 = vmatpush3.msra.mxu0 %v3700_v13 }
  0x36   : > { %3101 = vmatprep.subr.mxu0 %v3606_v10 }
  0xed   : > { %v315_v16 = vpop.f32.mrf.mxu0 }
  0xee   : > { %v316_v17 = vadd.f32 %v3731_v15, %v315_v16 }
  0xef   : > { %v3067_v18 = vpop.f32.mrf.mxu0 }
  0xf0   : > { %391 = vrot.lane.b32.xlu1 %v316_v17, %s3608_s17  ;;  %v320_v19 = vrot.slane %v316_v17, 1  ;;  %v322_v20 = vrot.slane %v316_v17, 3  ;;  %v321_v21 = vrot.slane %v316_v17, 2  ;;  %v324_v22 = vrot.slane %v316_v17, 5 }
  0xf1   : > { %v323_v23 = vrot.slane %v316_v17, 4  ;;  %v326_v24 = vrot.slane %v316_v17, 7  ;;  %v325_v25 = vrot.slane %v316_v17, 6  ;;  %v335_v27 = vadd.f32 %v316_v17, %v3743_v26 }
  0xf2   : > { %393 = vrot.lane.b32.xlu0 %v320_v19, %s3608_s17  ;;  %v336_v30 = vadd.f32 %v320_v19, %v3747_v28  ;;  %v337_v33 = vadd.f32 %v321_v21, %v3750_v29  ;;  %v338_v36 = vadd.f32 %v322_v20, %v3754_v32  ;;  %v340_v42 = vadd.f32 %v324_v22, %v3762_v38 }
  0xf3   : > { %v2943_v31 = vmul.f32 -1.442695, %v335_v27  ;;  %v339_v39 = vadd.f32 %v323_v23, %v3758_v34  ;;  %v341_v44 = vadd.f32 %v325_v25, %v3766_v40  ;;  %v342_v47 = vadd.f32 %v326_v24, %v3771_v45 }
  0xf4   : > { %397 = vrot.lane.b32.xlu1 %v322_v20, %s3608_s17  ;;  %v2944_v35 = vmul.f32 -1.442695, %v336_v30  ;;  %v2945_v37 = vmul.f32 -1.442695, %v337_v33  ;;  %v2946_v41 = vmul.f32 -1.442695, %v338_v36 }
  0xf5   : > { %3175 = vpow2.f32 %v2943_v31  ;;  %v2947_v43 = vmul.f32 -1.442695, %v339_v39  ;;  %v2948_v46 = vmul.f32 -1.442695, %v340_v42  ;;  %v2949_v48 = vmul.f32 -1.442695, %v341_v44 }
  0xf6   : > { %395 = vrot.lane.b32.xlu0 %v321_v21, %s3608_s17  ;;  %3177 = vpow2.f32 %v2944_v35  ;;  %v2950_v50 = vmul.f32 -1.442695, %v342_v47  ;;  %v519_v39 = vrot.slane %v3704_v14, 1  ;;  %v521_v42 = vrot.slane %v3704_v14, 3 }
  0xf7   : > { %3179 = vpow2.f32 %v2945_v37  ;;  %v523_v44 = vrot.slane %v3704_v14, 5 }
  0xf8   : > { %401 = vrot.lane.b32.xlu1 %v324_v22, %s3608_s17  ;;  %3181 = vpow2.f32 %v2946_v41  ;;  %v520_v41 = vrot.slane %v3704_v14, 2 }
  0xf9   : > { %3183 = vpow2.f32 %v2947_v43  ;;  %v522_v43 = vrot.slane %v3704_v14, 4 }
  0xfa   : > { %399 = vrot.lane.b32.xlu0 %v323_v23, %s3608_s17  ;;  %3185 = vpow2.f32 %v2948_v46  ;;  %v524_v46 = vrot.slane %v3704_v14, 6 }
  0xfb   : > { %3187 = vpow2.f32 %v2949_v48 }
  0xfc   : > { %405 = vrot.lane.b32.xlu1 %v326_v24, %s3608_s17  ;;  %3189 = vpow2.f32 %v2950_v50 }
  0xfe   : > { %403 = vrot.lane.b32.xlu0 %v325_v25, %s3608_s17 }
 0x102   : > { %v3176_v49 = vpop.eup %3175 }
 0x103   : > { %v367_v51 = vadd.f32 1.0, %v3176_v49  ;;  %v3178_v52 = vpop.eup %3177 }
 0x104   : > { %v3180_v53 = vpop.eup %3179  ;;  %v368_v54 = vadd.f32 1.0, %v3178_v52 }
 0x105   : > { %3191 = vrcp.f32 %v367_v51  ;;  %v3182_v55 = vpop.eup %3181  ;;  %v369_v56 = vadd.f32 1.0, %v3180_v53 }
 0x106   : > { %v3184_v57 = vpop.eup %3183  ;;  %3193 = vrcp.f32 %v368_v54  ;;  %v370_v58 = vadd.f32 1.0, %v3182_v55 }
 0x107   : > { %v3186_v59 = vpop.eup %3185  ;;  %3195 = vrcp.f32 %v369_v56  ;;  %v371_v60 = vadd.f32 1.0, %v3184_v57 }
 0x108   : > { %v3188_v61 = vpop.eup %3187  ;;  %3197 = vrcp.f32 %v370_v58  ;;  %v372_v62 = vadd.f32 1.0, %v3186_v59 }
 0x109   : > { %3199 = vrcp.f32 %v371_v60  ;;  %v373_v63 = vadd.f32 1.0, %v3188_v61  ;;  %v3190_v0 = vpop.eup %3189 }
 0x10a   : > { %3201 = vrcp.f32 %v372_v62  ;;  %v374_v3 = vadd.f32 1.0, %v3190_v0 }
 0x10b   : > { %3203 = vrcp.f32 %v373_v63 }
 0x10c   : > { %3205 = vrcp.f32 %v374_v3 }
 0x112   : > { %v3774_v1 = vpop.eup %3191 }
 0x113   : > { %v3778_v6 = vpop.eup %3193 }
 0x114   : > { %v3781_v16 = vpop.eup %3195 }
 0x115   : > { %v3785_v19 = vpop.eup %3197 }
 0x116   : > { %v3788_v20 = vpop.eup %3199 }
 0x117   : > { %v3792_v25 = vpop.eup %3201 }
 0x118   : > { %v3796_v27 = vpop.eup %3203 }
 0x119   : > { %v3802_v36 = vpop.eup %3205 }
 0x162   : > { %v392_v2 = vpop.permute.xlu1 %391 }
 0x163   : > { %v415_v4 = vmul.f32 %v3774_v1, %v392_v2 }
 0x164   : > { %v394_v5 = vpop.permute.xlu0 %393 }
 0x165   : > { %431 = vrot.lane.b32.xlu0 %v415_v4, %s3608_s17  ;;  %v416_v8 = vmul.f32 %v3778_v6, %v394_v5  ;;  %v525_v4 = vrot.slane %v3704_v14, 7 }
 0x166   : > { %v398_v7 = vpop.permute.xlu1 %397 }
 0x167   : > { %v418_v23 = vmul.f32 %v3785_v19, %v398_v7 }
 0x168   : > { %v396_v17 = vpop.permute.xlu0 %395 }
 0x169   : > { %v417_v18 = vmul.f32 %v3781_v16, %v396_v17  ;;  %433 = vrot.lane.b32.xlu0 %v416_v8, %s3608_s17 }
 0x16a   : > { %v402_v21 = vpop.permute.xlu1 %401 }
 0x16b   : > { %435 = vrot.lane.b32.xlu1 %v417_v18, %s3608_s17  ;;  %v420_v31 = vmul.f32 %v3792_v25, %v402_v21 }
 0x16c   : > { %v400_v22 = vpop.permute.xlu0 %399 }
 0x16d   : > { %v419_v24 = vmul.f32 %v3788_v20, %v400_v22 }
 0x16e   : > { %v406_v35 = vpop.permute.xlu1 %405 }
 0x16f   : > { %437 = vrot.lane.b32.xlu1 %v418_v23, %s3608_s17  ;;  %439 = vrot.lane.b32.xlu0 %v419_v24, %s3608_s17  ;;  %v422_v37 = vmul.f32 %v3802_v36, %v406_v35  ;;  %v472_v35 = vsub.f32 1.0, %v3778_v6 }
 0x170   : > { %v404_v30 = vpop.permute.xlu0 %403 }
 0x171   : > { %v421_v33 = vmul.f32 %v3796_v27, %v404_v30 }
 0x173   : > { %441 = vrot.lane.b32.xlu1 %v420_v31, %s3608_s17  ;;  %443 = vrot.lane.b32.xlu0 %v421_v33, %s3608_s17 }
 0x177   : > { %445 = vrot.lane.b32.xlu1 %v422_v37, %s3608_s17  ;;  %526 = vrot.lane.b32.xlu0 %v3704_v14, %s3609_s18  ;;  %v473_v37 = vsub.f32 1.0, %v3781_v16 }
 0x17b   : > { %528 = vrot.lane.b32.xlu1 %v519_v39, %s3609_s18 }
 0x17f   : > { %530 = vrot.lane.b32.xlu1 %v520_v41, %s3609_s18 }
 0x183   : > { %532 = vrot.lane.b32.xlu1 %v521_v42, %s3609_s18 }
 0x187   : > { %534 = vrot.lane.b32.xlu1 %v522_v43, %s3609_s18 }
 0x18b   : > { %536 = vrot.lane.b32.xlu1 %v523_v44, %s3609_s18 }
 0x18f   : > { %538 = vrot.lane.b32.xlu1 %v524_v46, %s3609_s18  ;;  %v474_v46 = vsub.f32 1.0, %v3785_v19 }
 0x1d7   : > { %v432_v47 = vpop.permute.xlu0 %431 }
 0x1d8   : > { %v455_v48 = vadd.f32 %v432_v47, %v3743_v26 }
 0x1da   : > { %3207 = vtanh.f32 %v455_v48 }
 0x1db   : > { %v434_v49 = vpop.permute.xlu0 %433 }
 0x1dc   : > { %v456_v50 = vadd.f32 %v434_v49, %v3747_v28  ;;  %v471_v49 = vsub.f32 1.0, %v3774_v1 }
 0x1dd   : > { %v436_v51 = vpop.permute.xlu1 %435 }
 0x1de   : > { %3209 = vtanh.f32 %v456_v50  ;;  %v457_v52 = vadd.f32 %v436_v51, %v3750_v29 }
 0x1e0   : > { %3211 = vtanh.f32 %v457_v52 }
 0x1e1   : > { %v438_v53 = vpop.permute.xlu1 %437  ;;  %v440_v54 = vpop.permute.xlu0 %439 }
 0x1e2   : > { %v458_v55 = vadd.f32 %v438_v53, %v3754_v32  ;;  %v459_v56 = vadd.f32 %v440_v54, %v3758_v34  ;;  %v475_v53 = vsub.f32 1.0, %v3788_v20 }
 0x1e4   : > { %3213 = vtanh.f32 %v458_v55 }
 0x1e5   : > { %v442_v57 = vpop.permute.xlu1 %441  ;;  %3215 = vtanh.f32 %v459_v56  ;;  %v444_v60 = vpop.permute.xlu0 %443  ;;  %v476_v56 = vsub.f32 1.0, %v3792_v25 }
 0x1e6   : > { %v460_v58 = vadd.f32 %v442_v57, %v3762_v38  ;;  %v461_v61 = vadd.f32 %v444_v60, %v3766_v40 }
 0x1e7   : > { %v3208_v59 = vpop.eup %3207 }
 0x1e8   : > { %487 = vrot.lane.b32.xlu0 %v3208_v59, %s3610_s20  ;;  %3217 = vtanh.f32 %v460_v58 }
 0x1e9   : > { %v446_v63 = vpop.permute.xlu1 %445  ;;  %3219 = vtanh.f32 %v461_v61  ;;  %v527_v24 = vpop.permute.xlu0 %526 }
 0x1ea   : > { %v462_v0 = vadd.f32 %v446_v63, %v3771_v45  ;;  %v550_v58 = vmul.f32 %v3774_v1, %v527_v24 }
 0x1eb   : > { %v3210_v62 = vpop.eup %3209 }
 0x1ec   : > { %489 = vrot.lane.b32.xlu0 %v3210_v62, %s3610_s20  ;;  %3221 = vtanh.f32 %v462_v0  ;;  %v477_v0 = vsub.f32 1.0, %v3796_v27 }
 0x1ed   : > { %v3212_v2 = vpop.eup %3211  ;;  %v529_v18 = vpop.permute.xlu1 %528 }
 0x1ee   : > { %v551_v44 = vmul.f32 %v3778_v6, %v529_v18 }
 0x1f0   : > { %491 = vrot.lane.b32.xlu0 %v3212_v2, %s3610_s20 }
 0x1f1   : > { %v3214_v3 = vpop.eup %3213  ;;  %v531_v21 = vpop.permute.xlu1 %530 }
 0x1f2   : > { %493 = vrot.lane.b32.xlu1 %v3214_v3, %s3610_s20  ;;  %v3216_v5 = vpop.eup %3215  ;;  %v552_v47 = vmul.f32 %v3781_v16, %v531_v21 }
 0x1f4   : > { %495 = vrot.lane.b32.xlu0 %v3216_v5, %s3610_s20 }
 0x1f5   : > { %v3218_v7 = vpop.eup %3217  ;;  %v533_v22 = vpop.permute.xlu1 %532 }
 0x1f6   : > { %540 = vrot.lane.b32.xlu1 %v525_v4, %s3609_s18  ;;  %v3220_v8 = vpop.eup %3219  ;;  %v553_v54 = vmul.f32 %v3785_v19, %v533_v22 }
 0x1f8   : > { %497 = vrot.lane.b32.xlu0 %v3218_v7, %s3610_s20 }
 0x1f9   : > { %v3222_v17 = vpop.eup %3221  ;;  %v535_v23 = vpop.permute.xlu1 %534 }
 0x1fa   : > { %v554_v61 = vmul.f32 %v3788_v20, %v535_v23 }
 0x1fc   : > { %499 = vrot.lane.b32.xlu0 %v3220_v8, %s3610_s20 }
 0x1fd   : > { %v537_v14 = vpop.permute.xlu1 %536 }
 0x1fe   : > { %v555_v63 = vmul.f32 %v3792_v25, %v537_v14 }
 0x200   : > { %501 = vrot.lane.b32.xlu0 %v3222_v17, %s3610_s20 }
 0x201   : > { %v539_v33 = vpop.permute.xlu1 %538 }
 0x202   : > { %v556_v2 = vmul.f32 %v3796_v27, %v539_v33  ;;  %v478_v27 = vsub.f32 1.0, %v3802_v36 }
 0x25a   : > { %v488_v30 = vpop.permute.xlu0 %487 }
 0x25b   : > { %v511_v55 = vmul.f32 %v488_v30, %v471_v49 }
 0x25d   : > { %v3858_v19 = vadd.f32 %v550_v58, %v511_v55 }
 0x25e   : > { %v490_v31 = vpop.permute.xlu0 %489 }
 0x25f   : > { %v512_v41 = vmul.f32 %v490_v31, %v472_v35 }
 0x261   : > { %v3844_v50 = vadd.f32 %v551_v44, %v512_v41 }
 0x262   : > { %v492_v39 = vpop.permute.xlu0 %491 }
 0x263   : > { %v513_v42 = vmul.f32 %v492_v39, %v473_v37  ;;  %v574_v16 = vrot.slane %v3844_v50, 7 }
 0x264   : > { %v494_v43 = vpop.permute.xlu1 %493 }
 0x265   : > { %v514_v51 = vmul.f32 %v494_v43, %v474_v46  ;;  %v3846_v52 = vadd.f32 %v552_v47, %v513_v42  ;;  %v576_v20 = vsel %vm575_vm3, %v574_v16, %v3858_v19 }
 0x266   : > { %v496_v48 = vpop.permute.xlu0 %495 }
 0x267   : > { %v515_v6 = vmul.f32 %v496_v48, %v475_v53  ;;  %v3853_v59 = vadd.f32 %v553_v54, %v514_v51  ;;  %v577_v62 = vrot.slane %v3846_v52, 6 }
 0x268   : > { %v541_v8 = vpop.permute.xlu1 %540 }
 0x269   : > { %v3862_v1 = vadd.f32 %v554_v61, %v515_v6  ;;  %v580_v4 = vrot.slane %v3853_v59, 5  ;;  %v579_v7 = vsel %vm578_vm4, %v577_v62, %v576_v20  ;;  %v557_v23 = vmul.f32 %v3802_v36, %v541_v8 }
 0x26a   : > { %v498_v57 = vpop.permute.xlu0 %497 }
 0x26b   : > { %v516_v60 = vmul.f32 %v498_v57, %v476_v56  ;;  %v583_v18 = vrot.slane %v3862_v1, 4  ;;  %v582_v22 = vsel %vm581_vm5, %v580_v4, %v579_v7 }
 0x26d   : > { %v3869_v5 = vadd.f32 %v555_v63, %v516_v60  ;;  %v585_v33 = vsel %vm584_vm6, %v583_v18, %v582_v22 }
 0x26e   : > { %v500_v3 = vpop.permute.xlu0 %499 }
 0x26f   : > { %v517_v25 = vmul.f32 %v500_v3, %v477_v0  ;;  %v586_v24 = vrot.slane %v3869_v5, 3 }
 0x271   : > { %v3872_v17 = vadd.f32 %v556_v2, %v517_v25  ;;  %v588_v37 = vsel %vm587_vm7, %v586_v24, %v585_v33 }
 0x272   : > { %v502_v21 = vpop.permute.xlu0 %501 }
 0x273   : > { %v518_v14 = vmul.f32 %v502_v21, %v478_v27  ;;  %v589_v30 = vrot.slane %v3872_v17, 2 }
 0x275   : > { %v3880_v31 = vadd.f32 %v557_v23, %v518_v14  ;;  %v591_v39 = vsel %vm590_vm8, %v589_v30, %v588_v37 }
 0x277   : > { %v592_v35 = vrot.slane %v3880_v31, 1 }
 0x279   : > { %v594_v36 = vsel %vm593_vm9, %v592_v35, %v591_v39 }
 0x27a   : > { %595 = vrot.lane.b32.xlu0 %v594_v36, %s3610_s20 }
 0x2ec   : > { %v596_v41 = vpop.permute.xlu0 %595 }
 0x2ed   : > { %3077 = vmatmul.mubr.msk.f32.vlgmr.msra.gmra.mxu1 %vm245_vm2, %v596_v41 }
 0x2ee   : > { %3091 = vmatpush3.msra.mxu1 %v3675_v9  ;;  %3098 = vmatprep.mubr.msk.f32.mxu1 %vm3607_vm1, %v3606_v10 }
 0x2ef   : > { %3092 = vmatprep.subr.mxu1 %v3606_v10 }
 0x2f0   : > { %3093 = vmatpush3.msra.mxu1 %v3681_v11 }
 0x2f1   : > { %3094 = vmatprep.subr.mxu1 %v3606_v10 }
 0x2f2   : > { %3095 = vmatpush3.msra.mxu1 %v3691_v12 }
 0x2f3   : > { %3096 = vmatprep.subr.mxu1 %v3606_v10 }
 0x2f4   : > { %3097 = vmatpush3.msra.mxu1 %v3700_v13 }
 0x2f5   : > { %3112 = vmatprep.subr.mxu1 %v3606_v10 }
 0x3ad   : > { %v665_v42 = vpop.f32.mrf.mxu1 }
 0x3ae   : > { %v666_v43 = vadd.f32 %v3731_v15, %v665_v42 }
 0x3af   : > { %v3078_v44 = vpop.f32.mrf.mxu1 }
 0x3b0   : > { %743 = vrot.lane.b32.xlu1 %v666_v43, %s3608_s17  ;;  %v671_v46 = vrot.slane %v666_v43, 1  ;;  %v670_v47 = vrot.slane %v666_v43, 7  ;;  %v672_v48 = vrot.slane %v666_v43, 2  ;;  %v673_v49 = vrot.slane %v666_v43, 3 }
 0x3b1   : > { %v674_v51 = vrot.slane %v666_v43, 4  ;;  %v675_v53 = vrot.slane %v666_v43, 5  ;;  %v676_v54 = vrot.slane %v666_v43, 6  ;;  %v686_v55 = vadd.f32 %v666_v43, %v3747_v28 }
 0x3b2   : > { %745 = vrot.lane.b32.xlu0 %v671_v46, %s3608_s17  ;;  %v687_v56 = vadd.f32 %v671_v46, %v3750_v29  ;;  %v685_v6 = vadd.f32 %v670_v47, %v3743_v26  ;;  %v688_v60 = vadd.f32 %v672_v48, %v3754_v32  ;;  %v689_v62 = vadd.f32 %v673_v49, %v3758_v34 }
 0x3b3   : > { %v2953_v57 = vmul.f32 -1.442695, %v686_v55  ;;  %v690_v0 = vadd.f32 %v674_v51, %v3762_v38  ;;  %v691_v3 = vadd.f32 %v675_v53, %v3766_v40  ;;  %v692_v4 = vadd.f32 %v676_v54, %v3771_v45 }
 0x3b4   : > { %741 = vrot.lane.b32.xlu1 %v670_v47, %s3608_s17  ;;  %v2954_v58 = vmul.f32 -1.442695, %v687_v56  ;;  %v2952_v61 = vmul.f32 -1.442695, %v685_v6  ;;  %v2955_v63 = vmul.f32 -1.442695, %v688_v60 }
 0x3b5   : > { %3223 = vpow2.f32 %v2953_v57  ;;  %v2956_v2 = vmul.f32 -1.442695, %v689_v62  ;;  %v2957_v20 = vmul.f32 -1.442695, %v690_v0  ;;  %v2958_v25 = vmul.f32 -1.442695, %v691_v3 }
 0x3b6   : > { %747 = vrot.lane.b32.xlu0 %v672_v48, %s3608_s17  ;;  %3225 = vpow2.f32 %v2954_v58  ;;  %v2959_v7 = vmul.f32 -1.442695, %v692_v4 }
 0x3b7   : > { %3227 = vpow2.f32 %v2952_v61 }
 0x3b8   : > { %749 = vrot.lane.b32.xlu1 %v673_v49, %s3608_s17  ;;  %3229 = vpow2.f32 %v2955_v63 }
 0x3b9   : > { %3231 = vpow2.f32 %v2956_v2 }
 0x3ba   : > { %751 = vrot.lane.b32.xlu0 %v674_v51, %s3608_s17  ;;  %3233 = vpow2.f32 %v2957_v20 }
 0x3bb   : > { %3235 = vpow2.f32 %v2958_v25 }
 0x3bc   : > { %753 = vrot.lane.b32.xlu1 %v675_v53, %s3608_s17  ;;  %3237 = vpow2.f32 %v2959_v7 }
 0x3be   : > { %755 = vrot.lane.b32.xlu0 %v676_v54, %s3608_s17 }
 0x3c2   : > { %v3224_v8 = vpop.eup %3223 }
 0x3c3   : > { %v3226_v27 = vpop.eup %3225  ;;  %v718_v18 = vadd.f32 1.0, %v3224_v8 }
 0x3c4   : > { %v3228_v21 = vpop.eup %3227  ;;  %v719_v22 = vadd.f32 1.0, %v3226_v27 }
 0x3c5   : > { %v3230_v23 = vpop.eup %3229  ;;  %v717_v24 = vadd.f32 1.0, %v3228_v21  ;;  %3239 = vrcp.f32 %v718_v18 }
 0x3c6   : > { %v3232_v14 = vpop.eup %3231  ;;  %3241 = vrcp.f32 %v719_v22  ;;  %v720_v30 = vadd.f32 1.0, %v3230_v23 }
 0x3c7   : > { %v3234_v33 = vpop.eup %3233  ;;  %3243 = vrcp.f32 %v717_v24  ;;  %v721_v35 = vadd.f32 1.0, %v3232_v14 }
 0x3c8   : > { %v3236_v37 = vpop.eup %3235  ;;  %3245 = vrcp.f32 %v720_v30  ;;  %v722_v39 = vadd.f32 1.0, %v3234_v33 }
 0x3c9   : > { %v3238_v36 = vpop.eup %3237  ;;  %3247 = vrcp.f32 %v721_v35  ;;  %v723_v41 = vadd.f32 1.0, %v3236_v37 }
 0x3ca   : > { %3249 = vrcp.f32 %v722_v39  ;;  %v724_v42 = vadd.f32 1.0, %v3238_v36 }
 0x3cb   : > { %3251 = vrcp.f32 %v723_v41 }
 0x3cc   : > { %3253 = vrcp.f32 %v724_v42 }
 0x3d2   : > { %v3916_v43 = vpop.eup %3239 }
 0x3d3   : > { %v3919_v47 = vpop.eup %3241 }
 0x3d4   : > { %v3923_v51 = vpop.eup %3243 }
 0x3d5   : > { %v3927_v55 = vpop.eup %3245 }
 0x3d6   : > { %v3931_v57 = vpop.eup %3247 }
 0x3d7   : > { %v3935_v61 = vpop.eup %3249 }
 0x3d8   : > { %v3939_v0 = vpop.eup %3251 }
 0x3d9   : > { %v3943_v20 = vpop.eup %3253 }
 0x422   : > { %v744_v44 = vpop.permute.xlu1 %743 }
 0x423   : > { %v766_v46 = vmul.f32 %v3916_v43, %v744_v44 }
 0x424   : > { %v746_v48 = vpop.permute.xlu0 %745 }
 0x425   : > { %v767_v49 = vmul.f32 %v3919_v47, %v746_v48  ;;  %783 = vrot.lane.b32.xlu1 %v766_v46, %s3608_s17 }
 0x426   : > { %v742_v53 = vpop.permute.xlu1 %741 }
 0x427   : > { %v765_v54 = vmul.f32 %v3923_v51, %v742_v53  ;;  %785 = vrot.lane.b32.xlu0 %v767_v49, %s3608_s17 }
 0x428   : > { %v748_v56 = vpop.permute.xlu0 %747 }
 0x429   : > { %v768_v6 = vmul.f32 %v3927_v55, %v748_v56  ;;  %781 = vrot.lane.b32.xlu1 %v765_v54, %s3608_s17 }
 0x42a   : > { %v750_v58 = vpop.permute.xlu1 %749 }
 0x42b   : > { %v769_v60 = vmul.f32 %v3931_v57, %v750_v58  ;;  %787 = vrot.lane.b32.xlu0 %v768_v6, %s3608_s17  ;;  %v823_v58 = vsub.f32 1.0, %v3919_v47 }
 0x42c   : > { %v752_v62 = vpop.permute.xlu0 %751 }
 0x42d   : > { %v770_v63 = vmul.f32 %v3935_v61, %v752_v62  ;;  %789 = vrot.lane.b32.xlu1 %v769_v60, %s3608_s17  ;;  %v870_v60 = vrot.slane %v3846_v52, 7  ;;  %v872_v52 = vrot.slane %v3862_v1, 7 }
 0x42e   : > { %v754_v2 = vpop.permute.xlu1 %753 }
 0x42f   : > { %v771_v3 = vmul.f32 %v3939_v0, %v754_v2  ;;  %791 = vrot.lane.b32.xlu0 %v770_v63, %s3608_s17  ;;  %v869_v63 = vrot.slane %v3858_v19, 7  ;;  %v822_v2 = vsub.f32 1.0, %v3916_v43  ;;  %v885_v19 = vmul.f32 %v3916_v43, %v574_v16 }
 0x430   : > { %v756_v4 = vpop.permute.xlu0 %755 }
 0x431   : > { %v772_v25 = vmul.f32 %v3943_v20, %v756_v4  ;;  %793 = vrot.lane.b32.xlu1 %v771_v3, %s3608_s17  ;;  %v821_v4 = vsub.f32 1.0, %v3923_v51 }
 0x433   : > { %795 = vrot.lane.b32.xlu0 %v772_v25, %s3608_s17  ;;  %v871_v25 = vrot.slane %v3853_v59, 7 }
 0x435   : > { %v887_v59 = vmul.f32 %v3927_v55, %v871_v25 }
 0x497   : > { %v784_v7 = vpop.permute.xlu1 %783 }
 0x498   : > { %v806_v8 = vadd.f32 %v784_v7, %v3747_v28  ;;  %v886_v7 = vmul.f32 %v3919_v47, %v870_v60 }
 0x499   : > { %v786_v27 = vpop.permute.xlu0 %785 }
 0x49a   : > { %3255 = vtanh.f32 %v806_v8  ;;  %v807_v18 = vadd.f32 %v786_v27, %v3750_v29 }
 0x49b   : > { %v782_v21 = vpop.permute.xlu1 %781 }
 0x49c   : > { %3257 = vtanh.f32 %v807_v18  ;;  %v805_v22 = vadd.f32 %v782_v21, %v3743_v26  ;;  %v884_v18 = vmul.f32 %v3923_v51, %v869_v63  ;;  %v873_v51 = vrot.slane %v3869_v5, 7 }
 0x49d   : > { %v788_v23 = vpop.permute.xlu0 %787 }
 0x49e   : > { %3259 = vtanh.f32 %v805_v22  ;;  %v808_v24 = vadd.f32 %v788_v23, %v3754_v32  ;;  %v824_v22 = vsub.f32 1.0, %v3927_v55 }
 0x49f   : > { %v790_v14 = vpop.permute.xlu1 %789 }
 0x4a0   : > { %3261 = vtanh.f32 %v808_v24  ;;  %v809_v30 = vadd.f32 %v790_v14, %v3758_v34 }
 0x4a1   : > { %v792_v33 = vpop.permute.xlu0 %791 }
 0x4a2   : > { %3263 = vtanh.f32 %v809_v30  ;;  %v810_v35 = vadd.f32 %v792_v33, %v3762_v38  ;;  %v825_v30 = vsub.f32 1.0, %v3931_v57  ;;  %v888_v33 = vmul.f32 %v3931_v57, %v872_v52 }
 0x4a3   : > { %v794_v37 = vpop.permute.xlu1 %793 }
 0x4a4   : > { %3265 = vtanh.f32 %v810_v35  ;;  %v811_v39 = vadd.f32 %v794_v37, %v3766_v40  ;;  %v874_v37 = vrot.slane %v3872_v17, 7 }
 0x4a5   : > { %v796_v36 = vpop.permute.xlu0 %795 }
 0x4a6   : > { %3267 = vtanh.f32 %v811_v39  ;;  %v812_v41 = vadd.f32 %v796_v36, %v3771_v45  ;;  %v875_v39 = vrot.slane %v3880_v31, 7  ;;  %v826_v36 = vsub.f32 1.0, %v3935_v61 }
 0x4a7   : > { %v3256_v42 = vpop.eup %3255  ;;  %v889_v31 = vmul.f32 %v3935_v61, %v873_v51 }
 0x4a8   : > { %3269 = vtanh.f32 %v812_v41  ;;  %839 = vrot.lane.b32.xlu1 %v3256_v42, %s3610_s20  ;;  %v891_v63 = vmul.f32 %v3943_v20, %v875_v39 }
 0x4a9   : > { %v3258_v44 = vpop.eup %3257 }
 0x4aa   : > { %841 = vrot.lane.b32.xlu0 %v3258_v44, %s3610_s20  ;;  %v827_v44 = vsub.f32 1.0, %v3939_v0 }
 0x4ab   : > { %v3260_v46 = vpop.eup %3259 }
 0x4ac   : > { %837 = vrot.lane.b32.xlu1 %v3260_v46, %s3610_s20 }
 0x4ad   : > { %v3262_v48 = vpop.eup %3261 }
 0x4ae   : > { %843 = vrot.lane.b32.xlu0 %v3262_v48, %s3610_s20  ;;  %v890_v48 = vmul.f32 %v3939_v0, %v874_v37 }
 0x4af   : > { %v3264_v49 = vpop.eup %3263 }
 0x4b0   : > { %845 = vrot.lane.b32.xlu1 %v3264_v49, %s3610_s20 }
 0x4b1   : > { %v3266_v53 = vpop.eup %3265 }
 0x4b2   : > { %847 = vrot.lane.b32.xlu0 %v3266_v53, %s3610_s20 }
 0x4b3   : > { %v3268_v54 = vpop.eup %3267 }
 0x4b4   : > { %849 = vrot.lane.b32.xlu1 %v3268_v54, %s3610_s20 }
 0x4b5   : > { %v3270_v56 = vpop.eup %3269 }
 0x4b6   : > { %851 = vrot.lane.b32.xlu0 %v3270_v56, %s3610_s20 }
 0x51a   : > { %v840_v6 = vpop.permute.xlu1 %839 }
 0x51b   : > { %v862_v27 = vmul.f32 %v840_v6, %v822_v2  ;;  %v828_v6 = vsub.f32 1.0, %v3943_v20 }
 0x51c   : > { %v842_v62 = vpop.permute.xlu0 %841 }
 0x51d   : > { %v863_v3 = vmul.f32 %v842_v62, %v823_v58  ;;  %v3985_v1 = vadd.f32 %v885_v19, %v862_v27 }
 0x51e   : > { %v838_v8 = vpop.permute.xlu1 %837 }
 0x51f   : > { %v861_v21 = vmul.f32 %v838_v8, %v821_v4  ;;  %v3977_v23 = vadd.f32 %v886_v7, %v863_v3 }
 0x520   : > { %v844_v24 = vpop.permute.xlu0 %843 }
 0x521   : > { %v3979_v14 = vadd.f32 %v884_v18, %v861_v21  ;;  %v864_v47 = vmul.f32 %v844_v24, %v824_v22  ;;  %v910_v55 = vrot.slane %v3977_v23, 7 }
 0x522   : > { %v846_v35 = vpop.permute.xlu1 %845 }
 0x523   : > { %v908_v50 = vrot.slane %v3979_v14, 1  ;;  %v3988_v16 = vadd.f32 %v887_v59, %v864_v47  ;;  %v865_v43 = vmul.f32 %v846_v35, %v825_v30 }
 0x524   : > { %v848_v41 = vpop.permute.xlu0 %847 }
 0x525   : > { %v909_v5 = vsel %vm575_vm3, %v3985_v1, %v908_v50  ;;  %v912_v57 = vrot.slane %v3988_v16, 6  ;;  %v3997_v42 = vadd.f32 %v888_v33, %v865_v43  ;;  %v866_v46 = vmul.f32 %v848_v41, %v826_v36 }
 0x526   : > { %v911_v17 = vsel %vm578_vm4, %v910_v55, %v909_v5  ;;  %v850_v49 = vpop.permute.xlu1 %849 }
 0x527   : > { %v913_v53 = vsel %vm581_vm5, %v912_v57, %v911_v17  ;;  %v914_v54 = vrot.slane %v3997_v42, 5  ;;  %v867_v56 = vmul.f32 %v850_v49, %v827_v44  ;;  %v4008_v58 = vadd.f32 %v889_v31, %v866_v46 }
 0x528   : > { %v852_v60 = vpop.permute.xlu0 %851 }
 0x529   : > { %v4010_v62 = vadd.f32 %v890_v48, %v867_v56  ;;  %v868_v2 = vmul.f32 %v852_v60, %v828_v6  ;;  %v915_v61 = vsel %vm584_vm6, %v914_v54, %v913_v53  ;;  %v916_v0 = vrot.slane %v4008_v58, 4 }
 0x52b   : > { %v918_v3 = vrot.slane %v4010_v62, 3  ;;  %v4016_v4 = vadd.f32 %v891_v63, %v868_v2  ;;  %v917_v25 = vsel %vm587_vm7, %v916_v0, %v915_v61 }
 0x52d   : > { %v920_v7 = vrot.slane %v4016_v4, 2  ;;  %v919_v8 = vsel %vm590_vm8, %v918_v3, %v917_v25 }
 0x52f   : > { %v921_v27 = vsel %vm593_vm9, %v920_v7, %v919_v8 }
 0x530   : > { %922 = vrot.lane.b32.xlu1 %v921_v27, %s3610_s20 }
 0x5a2   : > { %v923_v20 = vpop.permute.xlu1 %922 }
 0x5a3   : > { %3088 = vmatmul.mubr.msk.f32.vlgmr.msra.gmra.mxu0 %vm245_vm2, %v923_v20 }
 0x5a4   : > { %3102 = vmatpush3.msra.mxu0 %v3675_v9  ;;  %3109 = vmatprep.mubr.msk.f32.mxu0 %vm3607_vm1, %v3606_v10 }
 0x5a5   : > { %3103 = vmatprep.subr.mxu0 %v3606_v10 }
 0x5a6   : > { %3104 = vmatpush3.msra.mxu0 %v3681_v11 }
 0x5a7   : > { %3105 = vmatprep.subr.mxu0 %v3606_v10 }
 0x5a8   : > { %3106 = vmatpush3.msra.mxu0 %v3691_v12 }
 0x5a9   : > { %3107 = vmatprep.subr.mxu0 %v3606_v10 }
 0x5aa   : > { %3108 = vmatpush3.msra.mxu0 %v3700_v13 }
 0x5ab   : > { %3123 = vmatprep.subr.mxu0 %v3606_v10 }
 0x663   : > { %v992_v18 = vpop.f32.mrf.mxu0 }
 0x664   : > { %v993_v9 = vadd.f32 %v3731_v15, %v992_v18 }
 0x665   : > { %v3089_v21 = vpop.f32.mrf.mxu0 }
 0x666   : > { %1072 = vrot.lane.b32.xlu1 %v993_v9, %s3608_s17  ;;  %v997_v22 = vrot.slane %v993_v9, 6  ;;  %v998_v11 = vrot.slane %v993_v9, 7  ;;  %v999_v52 = vrot.slane %v993_v9, 1  ;;  %v1001_v12 = vrot.slane %v993_v9, 3 }
 0x667   : > { %v1000_v13 = vrot.slane %v993_v9, 2  ;;  %v1003_v19 = vrot.slane %v993_v9, 5  ;;  %v1002_v15 = vrot.slane %v993_v9, 4  ;;  %v1014_v24 = vadd.f32 %v993_v9, %v3750_v29 }
 0x668   : > { %1068 = vrot.lane.b32.xlu0 %v997_v22, %s3608_s17  ;;  %v1012_v59 = vadd.f32 %v997_v22, %v3743_v26  ;;  %v1013_v47 = vadd.f32 %v998_v11, %v3747_v28  ;;  %v1015_v33 = vadd.f32 %v999_v52, %v3754_v32  ;;  %v1017_v50 = vadd.f32 %v1001_v12, %v3762_v38 }
 0x669   : > { %v2963_v30 = vmul.f32 -1.442695, %v1014_v24  ;;  %v1016_v37 = vadd.f32 %v1000_v13, %v3758_v34  ;;  %v1019_v29 = vadd.f32 %v1003_v19, %v3771_v45  ;;  %v1018_v28 = vadd.f32 %v1002_v15, %v3766_v40 }
 0x66a   : > { %1070 = vrot.lane.b32.xlu1 %v998_v11, %s3608_s17  ;;  %v2961_v51 = vmul.f32 -1.442695, %v1012_v59  ;;  %v2962_v35 = vmul.f32 -1.442695, %v1013_v47  ;;  %v2964_v43 = vmul.f32 -1.442695, %v1015_v33 }
 0x66b   : > { %3271 = vpow2.f32 %v2963_v30  ;;  %v2966_v39 = vmul.f32 -1.442695, %v1017_v50  ;;  %v2965_v26 = vmul.f32 -1.442695, %v1016_v37  ;;  %v2968_v36 = vmul.f32 -1.442695, %v1019_v29 }
 0x66c   : > { %1074 = vrot.lane.b32.xlu0 %v999_v52, %s3608_s17  ;;  %3273 = vpow2.f32 %v2961_v51  ;;  %v2967_v32 = vmul.f32 -1.442695, %v1018_v28  ;;  %v4084_v30 = vld [vmem:[%s3668_s29 + $0x10] sm:$0xff]  ;;  %v4092_v37 = vld [vmem:[%s3668_s29 + $0x8] sm:$0xff] }
 0x66d   : > { %3275 = vpow2.f32 %v2962_v35  ;;  %v4088_v35 = vld [vmem:[%s3668_s29] sm:$0xff] }
 0x66e   : > { %1078 = vrot.lane.b32.xlu1 %v1001_v12, %s3608_s17  ;;  %3277 = vpow2.f32 %v2964_v43 }
 0x66f   : > { %3279 = vpow2.f32 %v2966_v39 }
 0x670   : > { %1076 = vrot.lane.b32.xlu0 %v1000_v13, %s3608_s17  ;;  %3281 = vpow2.f32 %v2965_v26  ;;  %v4096_v26 = vld [vmem:[%s3668_s29 + $0x18] sm:$0xff] }
 0x671   : > { %3283 = vpow2.f32 %v2968_v36 }
 0x672   : > { %1082 = vrot.lane.b32.xlu1 %v1003_v19, %s3608_s17  ;;  %3285 = vpow2.f32 %v2967_v32  ;;  %v4100_v32 = vld [vmem:[%s3668_s29 + $0x28] sm:$0xff] }
 0x674   : > { %1080 = vrot.lane.b32.xlu0 %v1002_v15, %s3608_s17 }
 0x678   : > { %v3272_v41 = vpop.eup %3271 }
 0x679   : > { %v3274_v38 = vpop.eup %3273  ;;  %v1046_v5 = vadd.f32 1.0, %v3272_v41 }
 0x67a   : > { %v3276_v57 = vpop.eup %3275  ;;  %v1044_v44 = vadd.f32 1.0, %v3274_v38 }
 0x67b   : > { %v3278_v34 = vpop.eup %3277  ;;  %v1045_v17 = vadd.f32 1.0, %v3276_v57  ;;  %3287 = vrcp.f32 %v1046_v5  ;;  %v4104_v5 = vld [vmem:[%s3668_s29 + $0x20] sm:$0xff] }
 0x67c   : > { %v3280_v31 = vpop.eup %3279  ;;  %3289 = vrcp.f32 %v1044_v44  ;;  %v1047_v45 = vadd.f32 1.0, %v3278_v34  ;;  %v4108_v34 = vld [vmem:[%s3668_s29 + $0x38] sm:$0xff] }
 0x67d   : > { %v3282_v46 = vpop.eup %3281  ;;  %3291 = vrcp.f32 %v1045_v17  ;;  %v1049_v40 = vadd.f32 1.0, %v3280_v31 }
 0x67e   : > { %v3284_v48 = vpop.eup %3283  ;;  %3293 = vrcp.f32 %v1047_v45  ;;  %v1048_v49 = vadd.f32 1.0, %v3282_v46  ;;  %v4112_v45 = vld [vmem:[%s3668_s29 + $0x30] sm:$0xff] }
 0x67f   : > { %v3286_v53 = vpop.eup %3285  ;;  %3295 = vrcp.f32 %v1049_v40  ;;  %v1051_v54 = vadd.f32 1.0, %v3284_v48 }
 0x680   : > { %3297 = vrcp.f32 %v1048_v49  ;;  %v1050_v56 = vadd.f32 1.0, %v3286_v53 }
 0x681   : > { %3299 = vrcp.f32 %v1051_v54 }
 0x682   : > { %3301 = vrcp.f32 %v1050_v56 }
 0x688   : > { %v4051_v6 = vpop.eup %3287 }
 0x689   : > { %v4054_v2 = vpop.eup %3289 }
 0x68a   : > { %v4058_v3 = vpop.eup %3291 }
 0x68b   : > { %v4062_v8 = vpop.eup %3293 }
 0x68c   : > { %v4066_v18 = vpop.eup %3295 }
 0x68d   : > { %v4070_v22 = vpop.eup %3297 }
 0x68e   : > { %v4074_v12 = vpop.eup %3299 }
 0x68f   : > { %v4078_v15 = vpop.eup %3301 }
 0x6d8   : > { %v1073_v60 = vpop.permute.xlu1 %1072 }
 0x6d9   : > { %v1094_v63 = vmul.f32 %v4051_v6, %v1073_v60 }
 0x6da   : > { %v1069_v61 = vpop.permute.xlu0 %1068 }
 0x6db   : > { %v1092_v0 = vmul.f32 %v4054_v2, %v1069_v61  ;;  %1112 = vrot.lane.b32.xlu1 %v1094_v63, %s3608_s17 }
 0x6dc   : > { %v1071_v25 = vpop.permute.xlu1 %1070 }
 0x6dd   : > { %v1093_v7 = vmul.f32 %v4058_v3, %v1071_v25  ;;  %1108 = vrot.lane.b32.xlu0 %v1092_v0, %s3608_s17  ;;  %v1196_v0 = vrot.slane %v3979_v14, 7  ;;  %v1148_v25 = vsub.f32 1.0, %v4054_v2 }
 0x6de   : > { %v1075_v27 = vpop.permute.xlu0 %1074 }
 0x6df   : > { %v1095_v20 = vmul.f32 %v4062_v8, %v1075_v27  ;;  %1110 = vrot.lane.b32.xlu1 %v1093_v7, %s3608_s17  ;;  %v1197_v27 = vrot.slane %v3985_v1, 7 }
 0x6e0   : > { %v1079_v9 = vpop.permute.xlu1 %1078 }
 0x6e1   : > { %v1097_v21 = vmul.f32 %v4066_v18, %v1079_v9  ;;  %1114 = vrot.lane.b32.xlu0 %v1095_v20, %s3608_s17  ;;  %v1211_v20 = vmul.f32 %v4054_v2, %v1196_v0 }
 0x6e2   : > { %v1077_v11 = vpop.permute.xlu0 %1076 }
 0x6e3   : > { %v1096_v52 = vmul.f32 %v4070_v22, %v1077_v11  ;;  %1118 = vrot.lane.b32.xlu1 %v1097_v21, %s3608_s17  ;;  %v1149_v21 = vsub.f32 1.0, %v4058_v3  ;;  %v1198_v11 = vrot.slane %v3988_v16, 7  ;;  %v1199_v16 = vrot.slane %v3997_v42, 7 }
 0x6e4   : > { %v1083_v13 = vpop.permute.xlu1 %1082 }
 0x6e5   : > { %v1099_v19 = vmul.f32 %v4074_v12, %v1083_v13  ;;  %1116 = vrot.lane.b32.xlu0 %v1096_v52, %s3608_s17  ;;  %v1150_v52 = vsub.f32 1.0, %v4051_v6  ;;  %v1215_v23 = vmul.f32 %v4070_v22, %v1199_v16 }
 0x6e6   : > { %v1081_v24 = vpop.permute.xlu0 %1080 }
 0x6e7   : > { %v1098_v59 = vmul.f32 %v4078_v15, %v1081_v24  ;;  %1122 = vrot.lane.b32.xlu1 %v1099_v19, %s3608_s17  ;;  %v1212_v24 = vmul.f32 %v4058_v3, %v1197_v27  ;;  %v1213_v3 = vmul.f32 %v4051_v6, %v910_v55  ;;  %v1202_v6 = vrot.slane %v4016_v4, 7 }
 0x6e9   : > { %1120 = vrot.lane.b32.xlu0 %v1098_v59, %s3608_s17  ;;  %v1151_v59 = vsub.f32 1.0, %v4062_v8 }
 0x74d   : > { %v1113_v47 = vpop.permute.xlu1 %1112 }
 0x74e   : > { %v1134_v51 = vadd.f32 %v4084_v30, %v1113_v47  ;;  %v1214_v47 = vmul.f32 %v4062_v8, %v1198_v11  ;;  %v4195_v11 = vld [vmem:[%s4882_s1 + $0x10] sm:$0xff] }
 0x74f   : > { %v1109_v33 = vpop.permute.xlu0 %1108 }
 0x750   : > { %3303 = vtanh.f32 %v1134_v51  ;;  %v1132_v50 = vadd.f32 %v4088_v35, %v1109_v33 }
 0x751   : > { %v1111_v43 = vpop.permute.xlu1 %1110 }
 0x752   : > { %3305 = vtanh.f32 %v1132_v50  ;;  %v1133_v39 = vadd.f32 %v4092_v37, %v1111_v43  ;;  %v1153_v50 = vsub.f32 1.0, %v4066_v18  ;;  %v1200_v43 = vrot.slane %v4008_v58, 7 }
 0x753   : > { %v1115_v29 = vpop.permute.xlu0 %1114 }
 0x754   : > { %3307 = vtanh.f32 %v1133_v39  ;;  %v1135_v28 = vadd.f32 %v4096_v26, %v1115_v29  ;;  %v1152_v29 = vsub.f32 1.0, %v4070_v22  ;;  %v1218_v22 = vmul.f32 %v4074_v12, %v1202_v6 }
 0x755   : > { %v1119_v36 = vpop.permute.xlu1 %1118 }
 0x756   : > { %3309 = vtanh.f32 %v1135_v28  ;;  %v1137_v41 = vadd.f32 %v4100_v32, %v1119_v36 }
 0x757   : > { %v1117_v38 = vpop.permute.xlu0 %1116 }
 0x758   : > { %3311 = vtanh.f32 %v1137_v41  ;;  %v1136_v57 = vadd.f32 %v4104_v5, %v1117_v38  ;;  %v1216_v38 = vmul.f32 %v4066_v18, %v1200_v43 }
 0x759   : > { %v1123_v44 = vpop.permute.xlu1 %1122 }
 0x75a   : > { %3313 = vtanh.f32 %v1136_v57  ;;  %v1139_v17 = vadd.f32 %v4108_v34, %v1123_v44 }
 0x75b   : > { %v1121_v31 = vpop.permute.xlu0 %1120 }
 0x75c   : > { %3315 = vtanh.f32 %v1139_v17  ;;  %v1138_v46 = vadd.f32 %v4112_v45, %v1121_v31  ;;  %v1155_v31 = vsub.f32 1.0, %v4074_v12 }
 0x75d   : > { %v3304_v40 = vpop.eup %3303 }
 0x75e   : > { %3317 = vtanh.f32 %v1138_v46  ;;  %1168 = vrot.lane.b32.xlu1 %v3304_v40, %s3610_s20  ;;  %v1201_v40 = vrot.slane %v4010_v62, 7 }
 0x75f   : > { %v3306_v48 = vpop.eup %3305 }
 0x760   : > { %1164 = vrot.lane.b32.xlu0 %v3306_v48, %s3610_s20 }
 0x761   : > { %v3308_v49 = vpop.eup %3307 }
 0x762   : > { %1166 = vrot.lane.b32.xlu1 %v3308_v49, %s3610_s20  ;;  %v1154_v49 = vsub.f32 1.0, %v4078_v15 }
 0x763   : > { %v3310_v53 = vpop.eup %3309 }
 0x764   : > { %1170 = vrot.lane.b32.xlu0 %v3310_v53, %s3610_s20 }
 0x765   : > { %v3312_v54 = vpop.eup %3311 }
 0x766   : > { %1174 = vrot.lane.b32.xlu1 %v3312_v54, %s3610_s20 }
 0x767   : > { %v3314_v56 = vpop.eup %3313 }
 0x768   : > { %1172 = vrot.lane.b32.xlu0 %v3314_v56, %s3610_s20  ;;  %v1217_v56 = vmul.f32 %v4078_v15, %v1201_v40 }
 0x769   : > { %v3316_v60 = vpop.eup %3315 }
 0x76a   : > { %1178 = vrot.lane.b32.xlu1 %v3316_v60, %s3610_s20 }
 0x76b   : > { %v3318_v63 = vpop.eup %3317 }
 0x76c   : > { %1176 = vrot.lane.b32.xlu0 %v3318_v63, %s3610_s20 }
 0x7d0   : > { %v1169_v61 = vpop.permute.xlu1 %1168 }
 0x7d1   : > { %v1190_v51 = vmul.f32 %v1169_v61, %v1150_v52  ;;  %v4202_v52 = vld [vmem:[%s4882_s1 + $0x8] sm:$0xff] }
 0x7d2   : > { %v1165_v7 = vpop.permute.xlu0 %1164 }
 0x7d3   : > { %v1188_v9 = vmul.f32 %v1165_v7, %v1148_v25  ;;  %v4149_v42 = vadd.f32 %v1213_v3, %v1190_v51 }
 0x7d4   : > { %v1167_v13 = vpop.permute.xlu1 %1166 }
 0x7d5   : > { %v4130_v19 = vadd.f32 %v1211_v20, %v1188_v9  ;;  %v1189_v14 = vmul.f32 %v1167_v13, %v1149_v21  ;;  %v4186_v21 = vld [vmem:[%s4882_s1 + $0x18] sm:$0xff]  ;;  %v4209_v13 = vld [vmem:[%s4882_s1] sm:$0xff] }
 0x7d6   : > { %v1171_v1 = vpop.permute.xlu0 %1170 }
 0x7d7   : > { %v4135_v2 = vadd.f32 %v1212_v24, %v1189_v14  ;;  %v1191_v33 = vmul.f32 %v1171_v1, %v1151_v59  ;;  %v1235_v8 = vrot.slane %v4130_v19, 2  ;;  %v4216_v14 = vld [vmem:[%s4883_s2] ss:$0 sm:$0xff] }
 0x7d8   : > { %v1175_v39 = vpop.permute.xlu1 %1174 }
 0x7d9   : > { %v1236_v28 = vrot.slane %v4135_v2, 1  ;;  %v4146_v36 = vadd.f32 %v1214_v47, %v1191_v33  ;;  %v1193_v41 = vmul.f32 %v1175_v39, %v1153_v50 }
 0x7da   : > { %v1173_v57 = vpop.permute.xlu0 %1172 }
 0x7db   : > { %v1237_v58 = vsel %vm575_vm3, %v1236_v28, %v1235_v8  ;;  %v1192_v55 = vmul.f32 %v1173_v57, %v1152_v29  ;;  %v1239_v44 = vrot.slane %v4146_v36, 7  ;;  %v4155_v17 = vadd.f32 %v1216_v38, %v1193_v41 }
 0x7dc   : > { %v1179_v46 = vpop.permute.xlu1 %1178  ;;  %v1238_v18 = vsel %vm578_vm4, %v4149_v42, %v1237_v58 }
 0x7dd   : > { %v4161_v48 = vadd.f32 %v1215_v23, %v1192_v55  ;;  %v1195_v53 = vmul.f32 %v1179_v46, %v1155_v31  ;;  %v1240_v62 = vsel %vm581_vm5, %v1239_v44, %v1238_v18  ;;  %v1243_v63 = vrot.slane %v4155_v17, 5 }
 0x7de   : > { %v1177_v4 = vpop.permute.xlu0 %1176 }
 0x7df   : > { %v1241_v54 = vrot.slane %v4161_v48, 6  ;;  %v1194_v60 = vmul.f32 %v1177_v4, %v1154_v49  ;;  %v4171_v61 = vadd.f32 %v1218_v22, %v1195_v53 }
 0x7e1   : > { %v4173_v0 = vadd.f32 %v1217_v56, %v1194_v60  ;;  %v1242_v25 = vsel %vm584_vm6, %v1241_v54, %v1240_v62  ;;  %v1247_v27 = vrot.slane %v4171_v61, 3 }
 0x7e2   : > { %v1244_v12 = vsel %vm587_vm7, %v1243_v63, %v1242_v25 }
 0x7e3   : > { %v1245_v7 = vrot.slane %v4173_v0, 4 }
 0x7e5   : > { %v1246_v15 = vsel %vm590_vm8, %v1245_v7, %v1244_v12 }
 0x7e6   : > { %v1248_v20 = vsel %vm593_vm9, %v1247_v27, %v1246_v15 }
 0x7e7   : > { %1249 = vrot.lane.b32.xlu0 %v1248_v20, %s3610_s20 }
 0x859   : > { %v1250_v9 = vpop.permute.xlu0 %1249 }
 0x85a   : > { %3099 = vmatmul.mubr.msk.f32.vlgmr.msra.gmra.mxu1 %vm245_vm2, %v1250_v9 }
 0x85b   : > { %3113 = vmatpush3.msra.mxu1 %v4186_v21  ;;  %3120 = vmatprep.mubr.msk.f32.mxu1 %vm3607_vm1, %v3606_v10 }
 0x85c   : > { %3114 = vmatprep.subr.mxu1 %v3606_v10 }
 0x85d   : > { %3115 = vmatpush3.msra.mxu1 %v4195_v11 }
 0x85e   : > { %3116 = vmatprep.subr.mxu1 %v3606_v10 }
 0x85f   : > { %3117 = vmatpush3.msra.mxu1 %v4202_v52 }
 0x860   : > { %3118 = vmatprep.subr.mxu1 %v3606_v10 }
 0x861   : > { %3119 = vmatpush3.msra.mxu1 %v4209_v13 }
 0x862   : > { %3134 = vmatprep.subr.mxu1 %v3606_v10 }
 0x91a   : > { %v1319_v24 = vpop.f32.mrf.mxu1 }
 0x91b   : > { %v1320_v59 = vadd.f32 %v4216_v14, %v1319_v24 }
 0x91c   : > { %v3100_v47 = vpop.f32.mrf.mxu1 }
 0x91d   : > { %1401 = vrot.lane.b32.xlu1 %v1320_v59, %s3608_s17  ;;  %v1325_v1 = vrot.slane %v1320_v59, 6  ;;  %v1324_v51 = vrot.slane %v1320_v59, 5  ;;  %v1327_v33 = vrot.slane %v1320_v59, 1  ;;  %v1326_v50 = vrot.slane %v1320_v59, 7 }
 0x91e   : > { %v1328_v16 = vrot.slane %v1320_v59, 2  ;;  %v1329_v43 = vrot.slane %v1320_v59, 3  ;;  %v1330_v3 = vrot.slane %v1320_v59, 4  ;;  %v1342_v39 = vadd.f32 %v4096_v26, %v1320_v59 }
 0x91f   : > { %1397 = vrot.lane.b32.xlu0 %v1325_v1, %s3608_s17  ;;  %v1340_v29 = vadd.f32 %v4092_v37, %v1325_v1  ;;  %v1339_v8 = vadd.f32 %v4088_v35, %v1324_v51  ;;  %v1343_v38 = vadd.f32 %v4104_v5, %v1327_v33  ;;  %v1341_v58 = vadd.f32 %v4084_v30, %v1326_v50 }
 0x920   : > { %v2973_v28 = vmul.f32 -1.442695, %v1342_v39  ;;  %v1344_v55 = vadd.f32 %v4100_v32, %v1328_v16  ;;  %v1345_v31 = vadd.f32 %v4112_v45, %v1329_v43  ;;  %v1346_v40 = vadd.f32 %v4108_v34, %v1330_v3 }
 0x921   : > { %1395 = vrot.lane.b32.xlu1 %v1324_v51, %s3608_s17  ;;  %v2971_v41 = vmul.f32 -1.442695, %v1340_v29  ;;  %v2970_v57 = vmul.f32 -1.442695, %v1339_v8  ;;  %v2974_v23 = vmul.f32 -1.442695, %v1343_v38 }
 0x922   : > { %3319 = vpow2.f32 %v2973_v28  ;;  %v2972_v6 = vmul.f32 -1.442695, %v1341_v58  ;;  %v2975_v46 = vmul.f32 -1.442695, %v1344_v55  ;;  %v2976_v18 = vmul.f32 -1.442695, %v1345_v31 }
 0x923   : > { %1403 = vrot.lane.b32.xlu0 %v1327_v33, %s3608_s17  ;;  %3321 = vpow2.f32 %v2971_v41  ;;  %v2977_v49 = vmul.f32 -1.442695, %v1346_v40 }
 0x924   : > { %3323 = vpow2.f32 %v2970_v57 }
 0x925   : > { %1399 = vrot.lane.b32.xlu1 %v1326_v50, %s3608_s17  ;;  %3325 = vpow2.f32 %v2974_v23 }
 0x926   : > { %3327 = vpow2.f32 %v2972_v6 }
 0x927   : > { %1405 = vrot.lane.b32.xlu0 %v1328_v16, %s3608_s17  ;;  %3329 = vpow2.f32 %v2975_v46 }
 0x928   : > { %3331 = vpow2.f32 %v2976_v18 }
 0x929   : > { %1407 = vrot.lane.b32.xlu1 %v1329_v43, %s3608_s17  ;;  %3333 = vpow2.f32 %v2977_v49 }
 0x92b   : > { %1409 = vrot.lane.b32.xlu0 %v1330_v3, %s3608_s17 }
 0x92f   : > { %v3320_v22 = vpop.eup %3319 }
 0x930   : > { %v3322_v53 = vpop.eup %3321  ;;  %v1374_v4 = vadd.f32 1.0, %v3320_v22 }
 0x931   : > { %v3324_v54 = vpop.eup %3323  ;;  %v1372_v56 = vadd.f32 1.0, %v3322_v53 }
 0x932   : > { %v3326_v60 = vpop.eup %3325  ;;  %v1371_v62 = vadd.f32 1.0, %v3324_v54  ;;  %3335 = vrcp.f32 %v1374_v4 }
 0x933   : > { %v3328_v63 = vpop.eup %3327  ;;  %3337 = vrcp.f32 %v1372_v56  ;;  %v1375_v25 = vadd.f32 1.0, %v3326_v60 }
 0x934   : > { %v3330_v12 = vpop.eup %3329  ;;  %3339 = vrcp.f32 %v1371_v62  ;;  %v1373_v7 = vadd.f32 1.0, %v3328_v63 }
 0x935   : > { %v3332_v27 = vpop.eup %3331  ;;  %3341 = vrcp.f32 %v1375_v25  ;;  %v1376_v15 = vadd.f32 1.0, %v3330_v12 }
 0x936   : > { %v3334_v20 = vpop.eup %3333  ;;  %3343 = vrcp.f32 %v1373_v7  ;;  %v1377_v9 = vadd.f32 1.0, %v3332_v27 }
 0x937   : > { %3345 = vrcp.f32 %v1376_v15  ;;  %v1378_v24 = vadd.f32 1.0, %v3334_v20 }
 0x938   : > { %3347 = vrcp.f32 %v1377_v9 }
 0x939   : > { %3349 = vrcp.f32 %v1378_v24 }
 0x93f   : > { %v4235_v59 = vpop.eup %3335 }
 0x940   : > { %v4238_v51 = vpop.eup %3337 }
 0x941   : > { %v4242_v16 = vpop.eup %3339 }
 0x942   : > { %v4246_v39 = vpop.eup %3341 }
 0x943   : > { %v4250_v28 = vpop.eup %3343 }
 0x944   : > { %v4254_v57 = vpop.eup %3345 }
 0x945   : > { %v4258_v55 = vpop.eup %3347 }
 0x946   : > { %v4262_v46 = vpop.eup %3349 }
 0x98f   : > { %v1402_v47 = vpop.permute.xlu1 %1401 }
 0x990   : > { %v1422_v1 = vmul.f32 %v4235_v59, %v1402_v47 }
 0x991   : > { %v1398_v33 = vpop.permute.xlu0 %1397 }
 0x992   : > { %v1420_v50 = vmul.f32 %v4238_v51, %v1398_v33  ;;  %1441 = vrot.lane.b32.xlu1 %v1422_v1, %s3608_s17 }
 0x993   : > { %v1396_v43 = vpop.permute.xlu1 %1395 }
 0x994   : > { %v1419_v3 = vmul.f32 %v4242_v16, %v1396_v43  ;;  %1437 = vrot.lane.b32.xlu0 %v1420_v50, %s3608_s17 }
 0x995   : > { %v1404_v29 = vpop.permute.xlu0 %1403 }
 0x996   : > { %v1423_v8 = vmul.f32 %v4246_v39, %v1404_v29  ;;  %1435 = vrot.lane.b32.xlu1 %v1419_v3, %s3608_s17 }
 0x997   : > { %v1400_v41 = vpop.permute.xlu1 %1399 }
 0x998   : > { %v1421_v38 = vmul.f32 %v4250_v28, %v1400_v41  ;;  %1443 = vrot.lane.b32.xlu0 %v1423_v8, %s3608_s17  ;;  %v1524_v41 = vrot.slane %v4135_v2, 7  ;;  %v1525_v2 = vrot.slane %v4149_v42, 7 }
 0x999   : > { %v1406_v58 = vpop.permute.xlu0 %1405 }
 0x99a   : > { %v1424_v23 = vmul.f32 %v4254_v57, %v1406_v58  ;;  %1439 = vrot.lane.b32.xlu1 %v1421_v38, %s3608_s17  ;;  %v1476_v38 = vsub.f32 1.0, %v4238_v51 }
 0x99b   : > { %v1408_v6 = vpop.permute.xlu1 %1407 }
 0x99c   : > { %v1425_v31 = vmul.f32 %v4258_v55, %v1408_v6  ;;  %1445 = vrot.lane.b32.xlu0 %v1424_v23, %s3608_s17  ;;  %v1523_v23 = vrot.slane %v4130_v19, 7  ;;  %v1539_v6 = vmul.f32 %v4238_v51, %v1524_v41  ;;  %v1477_v51 = vsub.f32 1.0, %v4250_v28 }
 0x99d   : > { %v1410_v40 = vpop.permute.xlu0 %1409  ;;  %v1482_v41 = vsub.f32 1.0, %v4262_v46 }
 0x99e   : > { %v1426_v18 = vmul.f32 %v4262_v46, %v1410_v40  ;;  %1447 = vrot.lane.b32.xlu1 %v1425_v31, %s3608_s17  ;;  %v1475_v40 = vsub.f32 1.0, %v4242_v16 }
 0x9a0   : > { %1449 = vrot.lane.b32.xlu0 %v1426_v18, %s3608_s17 }
 0xa04   : > { %v1442_v49 = vpop.permute.xlu1 %1441 }
 0xa05   : > { %v1462_v22 = vadd.f32 %v4096_v26, %v1442_v49 }
 0xa06   : > { %v1438_v53 = vpop.permute.xlu0 %1437 }
 0xa07   : > { %3351 = vtanh.f32 %v1462_v22  ;;  %v1460_v4 = vadd.f32 %v4092_v37, %v1438_v53  ;;  %v1538_v22 = vmul.f32 %v4242_v16, %v1523_v23  ;;  %v1540_v16 = vmul.f32 %v4250_v28, %v1525_v2 }
 0xa08   : > { %v1436_v54 = vpop.permute.xlu1 %1435 }
 0xa09   : > { %3353 = vtanh.f32 %v1460_v4  ;;  %v1459_v56 = vadd.f32 %v4088_v35, %v1436_v54  ;;  %v1479_v4 = vsub.f32 1.0, %v4246_v39  ;;  %v1526_v54 = vrot.slane %v4161_v48, 7 }
 0xa0a   : > { %v1444_v60 = vpop.permute.xlu0 %1443 }
 0xa0b   : > { %3355 = vtanh.f32 %v1459_v56  ;;  %v1463_v62 = vadd.f32 %v4104_v5, %v1444_v60 }
 0xa0c   : > { %v1440_v63 = vpop.permute.xlu1 %1439 }
 0xa0d   : > { %3357 = vtanh.f32 %v1463_v62  ;;  %v1461_v25 = vadd.f32 %v4084_v30, %v1440_v63  ;;  %v1527_v62 = vrot.slane %v4155_v17, 7  ;;  %v1478_v63 = vsub.f32 1.0, %v4235_v59 }
 0xa0e   : > { %v1446_v12 = vpop.permute.xlu0 %1445 }
 0xa0f   : > { %3359 = vtanh.f32 %v1461_v25  ;;  %v1464_v7 = vadd.f32 %v4100_v32, %v1446_v12  ;;  %v1542_v25 = vmul.f32 %v4246_v39, %v1526_v54 }
 0xa10   : > { %v1448_v27 = vpop.permute.xlu1 %1447 }
 0xa11   : > { %3361 = vtanh.f32 %v1464_v7  ;;  %v1465_v15 = vadd.f32 %v4112_v45, %v1448_v27  ;;  %v1480_v27 = vsub.f32 1.0, %v4254_v57 }
 0xa12   : > { %v1450_v20 = vpop.permute.xlu0 %1449 }
 0xa13   : > { %3363 = vtanh.f32 %v1465_v15  ;;  %v1466_v9 = vadd.f32 %v4108_v34, %v1450_v20  ;;  %v1528_v15 = vrot.slane %v4173_v0, 7 }
 0xa14   : > { %v3352_v24 = vpop.eup %3351 }
 0xa15   : > { %3365 = vtanh.f32 %v1466_v9  ;;  %1497 = vrot.lane.b32.xlu1 %v3352_v24, %s3610_s20  ;;  %v1543_v9 = vmul.f32 %v4254_v57, %v1527_v62  ;;  %v1481_v24 = vsub.f32 1.0, %v4258_v55  ;;  %v1544_v57 = vmul.f32 %v4258_v55, %v1528_v15 }
 0xa16   : > { %v3354_v47 = vpop.eup %3353 }
 0xa17   : > { %1493 = vrot.lane.b32.xlu0 %v3354_v47, %s3610_s20 }
 0xa18   : > { %v3356_v1 = vpop.eup %3355 }
 0xa19   : > { %1491 = vrot.lane.b32.xlu1 %v3356_v1, %s3610_s20 }
 0xa1a   : > { %v3358_v33 = vpop.eup %3357 }
 0xa1b   : > { %1499 = vrot.lane.b32.xlu0 %v3358_v33, %s3610_s20  ;;  %v1541_v33 = vmul.f32 %v4235_v59, %v1239_v44 }
 0xa1c   : > { %v3360_v50 = vpop.eup %3359 }
 0xa1d   : > { %1495 = vrot.lane.b32.xlu1 %v3360_v50, %s3610_s20 }
 0xa1e   : > { %v3362_v43 = vpop.eup %3361 }
 0xa1f   : > { %1501 = vrot.lane.b32.xlu0 %v3362_v43, %s3610_s20 }
 0xa20   : > { %v3364_v3 = vpop.eup %3363 }
 0xa21   : > { %1503 = vrot.lane.b32.xlu1 %v3364_v3, %s3610_s20 }
 0xa22   : > { %v3366_v29 = vpop.eup %3365 }
 0xa23   : > { %1505 = vrot.lane.b32.xlu0 %v3366_v29, %s3610_s20  ;;  %v1529_v29 = vrot.slane %v4171_v61, 7 }
 0xa25   : > { %v1545_v23 = vmul.f32 %v4262_v46, %v1529_v29 }
 0xa87   : > { %v1498_v8 = vpop.permute.xlu1 %1497 }
 0xa88   : > { %v1518_v20 = vmul.f32 %v1498_v8, %v1478_v63 }
 0xa89   : > { %v1494_v58 = vpop.permute.xlu0 %1493 }
 0xa8a   : > { %v1516_v31 = vmul.f32 %v1494_v58, %v1476_v38  ;;  %v4320_v8 = vadd.f32 %v1541_v33, %v1518_v20 }
 0xa8b   : > { %v1492_v18 = vpop.permute.xlu1 %1491 }
 0xa8c   : > { %v4288_v49 = vadd.f32 %v1539_v6, %v1516_v31  ;;  %v1515_v53 = vmul.f32 %v1492_v18, %v1475_v40 }
 0xa8d   : > { %v1500_v56 = vpop.permute.xlu0 %1499 }
 0xa8e   : > { %v4294_v60 = vadd.f32 %v1538_v22, %v1515_v53  ;;  %v1519_v19 = vmul.f32 %v1500_v56, %v1479_v4  ;;  %v1563_v7 = vrot.slane %v4288_v49, 2 }
 0xa8f   : > { %v1496_v12 = vpop.permute.xlu1 %1495 }
 0xa90   : > { %v1562_v42 = vrot.slane %v4294_v60, 3  ;;  %v1517_v48 = vmul.f32 %v1496_v12, %v1477_v51  ;;  %v4308_v47 = vadd.f32 %v1542_v25, %v1519_v19 }
 0xa91   : > { %v1502_v17 = vpop.permute.xlu0 %1501 }
 0xa92   : > { %v1564_v39 = vsel %vm575_vm3, %v1563_v7, %v1562_v42  ;;  %v4310_v28 = vadd.f32 %v1540_v16, %v1517_v48  ;;  %v1520_v1 = vmul.f32 %v1502_v17, %v1480_v27  ;;  %v1568_v58 = vrot.slane %v4308_v47, 7 }
 0xa93   : > { %v1504_v50 = vpop.permute.xlu1 %1503 }
 0xa94   : > { %v1565_v0 = vrot.slane %v4310_v28, 1  ;;  %v4316_v43 = vadd.f32 %v1543_v9, %v1520_v1  ;;  %v1521_v3 = vmul.f32 %v1504_v50, %v1481_v24 }
 0xa95   : > { %v1506_v38 = vpop.permute.xlu0 %1505 }
 0xa96   : > { %v1566_v36 = vsel %vm578_vm4, %v1565_v0, %v1564_v39  ;;  %v1570_v44 = vrot.slane %v4316_v43, 6  ;;  %v4326_v59 = vadd.f32 %v1544_v57, %v1521_v3  ;;  %v1522_v6 = vmul.f32 %v1506_v38, %v1482_v41 }
 0xa97   : > { %v1567_v55 = vsel %vm581_vm5, %v4320_v8, %v1566_v36 }
 0xa98   : > { %v1572_v61 = vrot.slane %v4326_v59, 5  ;;  %v1569_v31 = vsel %vm584_vm6, %v1568_v58, %v1567_v55  ;;  %v4335_v40 = vadd.f32 %v1545_v23, %v1522_v6 }
 0xa99   : > { %v1571_v18 = vsel %vm587_vm7, %v1570_v44, %v1569_v31 }
 0xa9a   : > { %v1573_v22 = vsel %vm590_vm8, %v1572_v61, %v1571_v18  ;;  %v1574_v53 = vrot.slane %v4335_v40, 4 }
 0xa9c   : > { %v1575_v46 = vsel %vm593_vm9, %v1574_v53, %v1573_v22 }
 0xa9d   : > { %1576 = vrot.lane.b32.xlu1 %v1575_v46, %s3610_s20 }
 0xb0f   : > { %v1577_v4 = vpop.permute.xlu1 %1576 }
 0xb10   : > { %3110 = vmatmul.mubr.msk.f32.vlgmr.msra.gmra.mxu0 %vm245_vm2, %v1577_v4 }
 0xb11   : > { %3124 = vmatpush3.msra.mxu0 %v4186_v21  ;;  %3131 = vmatprep.mubr.msk.f32.mxu0 %vm3607_vm1, %v3606_v10 }
 0xb12   : > { %3125 = vmatprep.subr.mxu0 %v3606_v10 }
 0xb13   : > { %3126 = vmatpush3.msra.mxu0 %v4195_v11 }
 0xb14   : > { %3127 = vmatprep.subr.mxu0 %v3606_v10 }
 0xb15   : > { %3128 = vmatpush3.msra.mxu0 %v4202_v52 }
 0xb16   : > { %3129 = vmatprep.subr.mxu0 %v3606_v10 }
 0xb17   : > { %3130 = vmatpush3.msra.mxu0 %v4209_v13 }
 0xbd0   : > { %v1646_v2 = vpop.f32.mrf.mxu0 }
 0xbd1   : > { %v1647_v54 = vadd.f32 %v4216_v14, %v1646_v2 }
 0xbd2   : > { %v3111_v56 = vpop.f32.mrf.mxu0 }
 0xbd3   : > { %1730 = vrot.lane.b32.xlu1 %v1647_v54, %s3608_s17  ;;  %v1651_v19 = vrot.slane %v1647_v54, 4  ;;  %v1652_v51 = vrot.slane %v1647_v54, 5  ;;  %v1653_v62 = vrot.slane %v1647_v54, 6  ;;  %v1654_v63 = vrot.slane %v1647_v54, 7 }
 0xbd4   : > { %v1655_v25 = vrot.slane %v1647_v54, 1  ;;  %v1657_v16 = vrot.slane %v1647_v54, 3  ;;  %v1656_v12 = vrot.slane %v1647_v54, 2  ;;  %v1670_v7 = vadd.f32 %v4104_v5, %v1647_v54 }
 0xbd5   : > { %1722 = vrot.lane.b32.xlu0 %v1651_v19, %s3608_s17  ;;  %v1666_v42 = vadd.f32 %v4088_v35, %v1651_v19  ;;  %v1667_v48 = vadd.f32 %v4092_v37, %v1652_v51  ;;  %v1668_v20 = vadd.f32 %v4084_v30, %v1653_v62  ;;  %v1669_v17 = vadd.f32 %v4096_v26, %v1654_v63 }
 0xbd6   : > { %v2983_v27 = vmul.f32 -1.442695, %v1670_v7  ;;  %v1671_v39 = vadd.f32 %v4100_v32, %v1655_v25  ;;  %v1673_v33 = vadd.f32 %v4108_v34, %v1657_v16  ;;  %v1672_v0 = vadd.f32 %v4112_v45, %v1656_v12 }
 0xbd7   : > { %1724 = vrot.lane.b32.xlu1 %v1652_v51, %s3608_s17  ;;  %v2979_v15 = vmul.f32 -1.442695, %v1666_v42  ;;  %v2980_v9 = vmul.f32 -1.442695, %v1667_v48  ;;  %v2981_v24 = vmul.f32 -1.442695, %v1668_v20 }
 0xbd8   : > { %3367 = vpow2.f32 %v2983_v27  ;;  %v2982_v1 = vmul.f32 -1.442695, %v1669_v17  ;;  %v2984_v50 = vmul.f32 -1.442695, %v1671_v39  ;;  %v2986_v57 = vmul.f32 -1.442695, %v1673_v33 }
 0xbd9   : > { %1726 = vrot.lane.b32.xlu0 %v1653_v62, %s3608_s17  ;;  %3369 = vpow2.f32 %v2979_v15  ;;  %v2985_v3 = vmul.f32 -1.442695, %v1672_v0 }
 0xbda   : > { %3371 = vpow2.f32 %v2980_v9 }
 0xbdb   : > { %1728 = vrot.lane.b32.xlu1 %v1654_v63, %s3608_s17  ;;  %3373 = vpow2.f32 %v2981_v24 }
 0xbdc   : > { %3375 = vpow2.f32 %v2982_v1 }
 0xbdd   : > { %1732 = vrot.lane.b32.xlu0 %v1655_v25, %s3608_s17  ;;  %3377 = vpow2.f32 %v2984_v50 }
 0xbde   : > { %3379 = vpow2.f32 %v2986_v57 }
 0xbdf   : > { %1736 = vrot.lane.b32.xlu1 %v1657_v16, %s3608_s17  ;;  %3381 = vpow2.f32 %v2985_v3 }
 0xbe1   : > { %1734 = vrot.lane.b32.xlu0 %v1656_v12, %s3608_s17 }
 0xbe5   : > { %v3368_v29 = vpop.eup %3367 }
 0xbe6   : > { %v3370_v41 = vpop.eup %3369  ;;  %v1702_v38 = vadd.f32 1.0, %v3368_v29 }
 0xbe7   : > { %v3372_v36 = vpop.eup %3371  ;;  %v1698_v44 = vadd.f32 1.0, %v3370_v41 }
 0xbe8   : > { %v3374_v23 = vpop.eup %3373  ;;  %v1699_v6 = vadd.f32 1.0, %v3372_v36  ;;  %3383 = vrcp.f32 %v1702_v38 }
 0xbe9   : > { %v3376_v55 = vpop.eup %3375  ;;  %3385 = vrcp.f32 %v1698_v44  ;;  %v1700_v61 = vadd.f32 1.0, %v3374_v23 }
 0xbea   : > { %v3378_v31 = vpop.eup %3377  ;;  %3387 = vrcp.f32 %v1699_v6  ;;  %v1701_v18 = vadd.f32 1.0, %v3376_v55 }
 0xbeb   : > { %v3380_v22 = vpop.eup %3379  ;;  %3389 = vrcp.f32 %v1700_v61  ;;  %v1703_v53 = vadd.f32 1.0, %v3378_v31 }
 0xbec   : > { %v3382_v46 = vpop.eup %3381  ;;  %3391 = vrcp.f32 %v1701_v18  ;;  %v1705_v4 = vadd.f32 1.0, %v3380_v22 }
 0xbed   : > { %3393 = vrcp.f32 %v1703_v53  ;;  %v1704_v2 = vadd.f32 1.0, %v3382_v46 }
 0xbee   : > { %3395 = vrcp.f32 %v1705_v4 }
 0xbef   : > { %3397 = vrcp.f32 %v1704_v2 }
 0xbf5   : > { %v4369_v54 = vpop.eup %3383 }
 0xbf6   : > { %v4372_v51 = vpop.eup %3385 }
 0xbf7   : > { %v4376_v25 = vpop.eup %3387 }
 0xbf8   : > { %v4380_v7 = vpop.eup %3389 }
 0xbf9   : > { %v4384_v27 = vpop.eup %3391 }
 0xbfa   : > { %v4388_v9 = vpop.eup %3393 }
 0xbfb   : > { %v4392_v39 = vpop.eup %3395 }
 0xbfc   : > { %v4396_v50 = vpop.eup %3397 }
 0xc45   : > { %v1731_v56 = vpop.permute.xlu1 %1730 }
 0xc46   : > { %v1750_v19 = vmul.f32 %v4369_v54, %v1731_v56  ;;  %v1850_v56 = vrot.slane %v4294_v60, 7  ;;  %v1804_v60 = vsub.f32 1.0, %v4380_v7 }
 0xc47   : > { %v1723_v62 = vpop.permute.xlu0 %1722 }
 0xc48   : > { %v1746_v63 = vmul.f32 %v4372_v51, %v1723_v62  ;;  %1770 = vrot.lane.b32.xlu1 %v1750_v19, %s3608_s17  ;;  %v1802_v19 = vsub.f32 1.0, %v4372_v51 }
 0xc49   : > { %v1725_v16 = vpop.permute.xlu1 %1724 }
 0xc4a   : > { %v1747_v12 = vmul.f32 %v4376_v25, %v1725_v16  ;;  %1762 = vrot.lane.b32.xlu0 %v1746_v63, %s3608_s17  ;;  %v1851_v63 = vrot.slane %v4288_v49, 7  ;;  %v1865_v16 = vmul.f32 %v4372_v51, %v1850_v56 }
 0xc4b   : > { %v1727_v42 = vpop.permute.xlu0 %1726 }
 0xc4c   : > { %v1748_v48 = vmul.f32 %v4380_v7, %v1727_v42  ;;  %1764 = vrot.lane.b32.xlu1 %v1747_v12, %s3608_s17  ;;  %v1803_v42 = vsub.f32 1.0, %v4376_v25 }
 0xc4d   : > { %v1729_v15 = vpop.permute.xlu1 %1728 }
 0xc4e   : > { %v1749_v20 = vmul.f32 %v4384_v27, %v1729_v15  ;;  %1766 = vrot.lane.b32.xlu0 %v1748_v48, %s3608_s17  ;;  %v1852_v48 = vrot.slane %v4310_v28, 7  ;;  %v1806_v28 = vsub.f32 1.0, %v4369_v54 }
 0xc4f   : > { %v1733_v17 = vpop.permute.xlu0 %1732 }
 0xc50   : > { %v1751_v24 = vmul.f32 %v4388_v9, %v1733_v17  ;;  %1768 = vrot.lane.b32.xlu1 %v1749_v20, %s3608_s17  ;;  %v1866_v17 = vmul.f32 %v4376_v25, %v1851_v63  ;;  %v1867_v49 = vmul.f32 %v4380_v7, %v1852_v48  ;;  %v1807_v7 = vsub.f32 1.0, %v4388_v9 }
 0xc51   : > { %v1737_v1 = vpop.permute.xlu1 %1736 }
 0xc52   : > { %v1753_v33 = vmul.f32 %v4392_v39, %v1737_v1  ;;  %1772 = vrot.lane.b32.xlu0 %v1751_v24, %s3608_s17  ;;  %v1853_v1 = vrot.slane %v4320_v8, 7 }
 0xc53   : > { %v1735_v0 = vpop.permute.xlu0 %1734 }
 0xc54   : > { %v1752_v57 = vmul.f32 %v4396_v50, %v1735_v0  ;;  %1776 = vrot.lane.b32.xlu1 %v1753_v33, %s3608_s17 }
 0xc56   : > { %1774 = vrot.lane.b32.xlu0 %v1752_v57, %s3608_s17  ;;  %v1805_v57 = vsub.f32 1.0, %v4384_v27 }
 0xcba   : > { %v1771_v3 = vpop.permute.xlu1 %1770 }
 0xcbb   : > { %v1790_v29 = vadd.f32 %v4104_v5, %v1771_v3  ;;  %v1868_v3 = vmul.f32 %v4384_v27, %v1853_v1  ;;  %v4504_v1 = vld [vmem:[%s3668_s29 + $0x18] sm:$0xff] }
 0xcbc   : > { %v1763_v41 = vpop.permute.xlu0 %1762 }
 0xcbd   : > { %3399 = vtanh.f32 %v1790_v29  ;;  %v1786_v38 = vadd.f32 %v4088_v35, %v1763_v41 }
 0xcbe   : > { %v1765_v36 = vpop.permute.xlu1 %1764 }
 0xcbf   : > { %3401 = vtanh.f32 %v1786_v38  ;;  %v1787_v44 = vadd.f32 %v4092_v37, %v1765_v36  ;;  %v1854_v36 = vrot.slane %v4316_v43, 7  ;;  %v1869_v43 = vmul.f32 %v4369_v54, %v1568_v58 }
 0xcc0   : > { %v1767_v23 = vpop.permute.xlu0 %1766 }
 0xcc1   : > { %3403 = vtanh.f32 %v1787_v44  ;;  %v1788_v6 = vadd.f32 %v4084_v30, %v1767_v23  ;;  %v1855_v44 = vrot.slane %v4326_v59, 7  ;;  %v1870_v59 = vmul.f32 %v4388_v9, %v1854_v36 }
 0xcc2   : > { %v1769_v55 = vpop.permute.xlu1 %1768 }
 0xcc3   : > { %3405 = vtanh.f32 %v1788_v6  ;;  %v1789_v61 = vadd.f32 %v4096_v26, %v1769_v55  ;;  %v1809_v6 = vsub.f32 1.0, %v4392_v39  ;;  %v1871_v58 = vmul.f32 %v4396_v50, %v1855_v44  ;;  %v4520_v44 = vld [vmem:[%s3668_s29 + $0x38] sm:$0xff] }
 0xcc4   : > { %v1773_v31 = vpop.permute.xlu0 %1772 }
 0xcc5   : > { %3407 = vtanh.f32 %v1789_v61  ;;  %v1791_v5 = vadd.f32 %v4100_v32, %v1773_v31 }
 0xcc6   : > { %v1777_v18 = vpop.permute.xlu1 %1776 }
 0xcc7   : > { %3409 = vtanh.f32 %v1791_v5  ;;  %v1793_v35 = vadd.f32 %v4108_v34, %v1777_v18  ;;  %v1856_v5 = vrot.slane %v4335_v40, 7 }
 0xcc8   : > { %v1775_v22 = vpop.permute.xlu0 %1774 }
 0xcc9   : > { %3411 = vtanh.f32 %v1793_v35  ;;  %v1792_v37 = vadd.f32 %v4112_v45, %v1775_v22 }
 0xcca   : > { %v3400_v53 = vpop.eup %3399 }
 0xccb   : > { %3413 = vtanh.f32 %v1792_v37  ;;  %1826 = vrot.lane.b32.xlu1 %v3400_v53, %s3610_s20 }
 0xccc   : > { %v3402_v30 = vpop.eup %3401 }
 0xccd   : > { %1818 = vrot.lane.b32.xlu0 %v3402_v30, %s3610_s20  ;;  %v1808_v30 = vsub.f32 1.0, %v4396_v50 }
 0xcce   : > { %v3404_v26 = vpop.eup %3403 }
 0xccf   : > { %1820 = vrot.lane.b32.xlu1 %v3404_v26, %s3610_s20 }
 0xcd0   : > { %v3406_v46 = vpop.eup %3405 }
 0xcd1   : > { %1822 = vrot.lane.b32.xlu0 %v3406_v46, %s3610_s20  ;;  %v1872_v46 = vmul.f32 %v4392_v39, %v1856_v5 }
 0xcd2   : > { %v3408_v32 = vpop.eup %3407 }
 0xcd3   : > { %1824 = vrot.lane.b32.xlu1 %v3408_v32, %s3610_s20 }
 0xcd4   : > { %v3410_v34 = vpop.eup %3409 }
 0xcd5   : > { %1828 = vrot.lane.b32.xlu0 %v3410_v34, %s3610_s20 }
 0xcd6   : > { %v3412_v45 = vpop.eup %3411 }
 0xcd7   : > { %1832 = vrot.lane.b32.xlu1 %v3412_v45, %s3610_s20 }
 0xcd8   : > { %v3414_v4 = vpop.eup %3413 }
 0xcd9   : > { %1830 = vrot.lane.b32.xlu0 %v3414_v4, %s3610_s20 }
 0xd3d   : > { %v1827_v2 = vpop.permute.xlu1 %1826 }
 0xd3e   : > { %v1846_v55 = vmul.f32 %v1827_v2, %v1806_v28 }
 0xd3f   : > { %v1819_v62 = vpop.permute.xlu0 %1818 }
 0xd40   : > { %v1842_v12 = vmul.f32 %v1819_v62, %v1802_v19  ;;  %v4457_v32 = vadd.f32 %v1869_v43, %v1846_v55 }
 0xd41   : > { %v1821_v15 = vpop.permute.xlu1 %1820 }
 0xd42   : > { %v4423_v20 = vadd.f32 %v1865_v16, %v1842_v12  ;;  %v1843_v24 = vmul.f32 %v1821_v15, %v1803_v42 }
 0xd43   : > { %v1823_v33 = vpop.permute.xlu0 %1822 }
 0xd44   : > { %v4428_v0 = vadd.f32 %v1866_v17, %v1843_v24  ;;  %v1844_v51 = vmul.f32 %v1823_v33, %v1804_v60  ;;  %v1889_v25 = vrot.slane %v4423_v20, 4  ;;  %v4500_v17 = vld [vmem:[%s3668_s29] sm:$0xff] }
 0xd45   : > { %v1825_v29 = vpop.permute.xlu1 %1824 }
 0xd46   : > { %v1890_v41 = vrot.slane %v4428_v0, 3  ;;  %v4436_v38 = vadd.f32 %v1867_v49, %v1844_v51  ;;  %v1845_v8 = vmul.f32 %v1825_v29, %v1805_v57  ;;  %v4508_v51 = vld [vmem:[%s3668_s29 + $0x10] sm:$0xff] }
 0xd47   : > { %v1829_v23 = vpop.permute.xlu0 %1828 }
 0xd48   : > { %v1891_v27 = vsel %vm575_vm3, %v1890_v41, %v1889_v25  ;;  %v1892_v61 = vrot.slane %v4436_v38, 2  ;;  %v4444_v31 = vadd.f32 %v1868_v3, %v1845_v8  ;;  %v1847_v18 = vmul.f32 %v1829_v23, %v1807_v7  ;;  %v4512_v3 = vld [vmem:[%s3668_s29 + $0x30] sm:$0xff]  ;;  %v4516_v41 = vld [vmem:[%s3668_s29 + $0x20] sm:$0xff] }
 0xd49   : > { %v1833_v35 = vpop.permute.xlu1 %1832 }
 0xd4a   : > { %v1893_v22 = vsel %vm578_vm4, %v1892_v61, %v1891_v27  ;;  %v1894_v37 = vrot.slane %v4444_v31, 1  ;;  %v1849_v53 = vmul.f32 %v1833_v35, %v1809_v6  ;;  %v4454_v26 = vadd.f32 %v1870_v59, %v1847_v18  ;;  %v4524_v6 = vld [vmem:[%s3668_s29 + $0x28] sm:$0xff] }
 0xd4b   : > { %v1831_v40 = vpop.permute.xlu0 %1830 }
 0xd4c   : > { %v1895_v47 = vsel %vm581_vm5, %v1894_v37, %v1893_v22  ;;  %v1848_v54 = vmul.f32 %v1831_v40, %v1808_v30  ;;  %v1897_v9 = vrot.slane %v4454_v26, 7  ;;  %v4462_v34 = vadd.f32 %v1872_v46, %v1849_v53 }
 0xd4d   : > { %v1896_v45 = vsel %vm584_vm6, %v4457_v32, %v1895_v47 }
 0xd4e   : > { %v4466_v4 = vadd.f32 %v1871_v58, %v1848_v54  ;;  %v1898_v39 = vsel %vm587_vm7, %v1897_v9, %v1896_v45  ;;  %v1901_v56 = vrot.slane %v4462_v34, 5 }
 0xd50   : > { %v1899_v2 = vrot.slane %v4466_v4, 6 }
 0xd52   : > { %v1900_v50 = vsel %vm590_vm8, %v1899_v2, %v1898_v39 }
 0xd53   : > { %v1902_v19 = vsel %vm593_vm9, %v1901_v56, %v1900_v50 }
 0xd54   : > { %1903 = vrot.lane.b32.xlu0 %v1902_v19, %s3610_s20 }
 0xdc6   : > { %v1904_v62 = vpop.permute.xlu0 %1903 }
 0xdc7   : > { %3121 = vmatmul.mubr.msk.f32.vlgmr.msra.gmra.mxu1 %vm245_vm2, %v1904_v62 }
 0xdc8   : > { %3135 = vmatpush3.msra.mxu1 %v4186_v21  ;;  %3142 = vmatprep.mubr.msk.f32.mxu1 %vm3607_vm1, %v3606_v10 }
 0xdc9   : > { %3136 = vmatprep.subr.mxu1 %v3606_v10 }
 0xdca   : > { %3137 = vmatpush3.msra.mxu1 %v4195_v11 }
 0xdcb   : > { %3138 = vmatprep.subr.mxu1 %v3606_v10 }
 0xdcc   : > { %3139 = vmatpush3.msra.mxu1 %v4202_v52 }
 0xdcd   : > { %3140 = vmatprep.subr.mxu1 %v3606_v10 }
 0xdce   : > { %3141 = vmatpush3.msra.mxu1 %v4209_v13 }
 0xe87   : > { %v1973_v63 = vpop.f32.mrf.mxu1 }
 0xe88   : > { %v1974_v16 = vadd.f32 %v4216_v14, %v1973_v63  ;;  %v4496_v14 = vld [vmem:[%s3668_s29 + $0x8] sm:$0xff] }
 0xe89   : > { %v3122_v12 = vpop.f32.mrf.mxu1 }
 0xe8a   : > { %v1979_v21 = vrot.slane %v1974_v16, 4  ;;  %v1978_v42 = vrot.slane %v1974_v16, 3  ;;  %v1981_v11 = vrot.slane %v1974_v16, 6  ;;  %v1980_v48 = vrot.slane %v1974_v16, 5 }
 0xe8b   : > { %v1983_v10 = vrot.slane %v1974_v16, 1  ;;  %v1982_v52 = vrot.slane %v1974_v16, 7  ;;  %v1984_v13 = vrot.slane %v1974_v16, 2  ;;  %v1998_v55 = vadd.f32 %v4524_v6, %v1974_v16 }
 0xe8c   : > { %2051 = vrot.lane.b32.xlu0 %v1979_v21, %s3608_s17  ;;  %2049 = vrot.lane.b32.xlu1 %v1978_v42, %s3608_s17  ;;  %v1994_v15 = vadd.f32 %v4496_v14, %v1979_v21  ;;  %v1993_v24 = vadd.f32 %v4500_v17, %v1978_v42  ;;  %v1996_v33 = vadd.f32 %v4504_v1, %v1981_v11 }
 0xe8d   : > { %v1995_v57 = vadd.f32 %v4508_v51, %v1980_v48  ;;  %v1999_v29 = vadd.f32 %v4512_v3, %v1983_v10  ;;  %v1997_v8 = vadd.f32 %v4516_v41, %v1982_v52  ;;  %v2000_v7 = vadd.f32 %v4520_v44, %v1984_v13 }
 0xe8e   : > { %v2989_v60 = vmul.f32 -1.442695, %v1994_v15  ;;  %v2988_v49 = vmul.f32 -1.442695, %v1993_v24  ;;  %v2991_v28 = vmul.f32 -1.442695, %v1996_v33 }
 0xe8f   : > { %v2990_v25 = vmul.f32 -1.442695, %v1995_v57  ;;  %v2994_v36 = vmul.f32 -1.442695, %v1999_v29  ;;  %v2992_v23 = vmul.f32 -1.442695, %v1997_v8 }
 0xe90   : > { %2055 = vrot.lane.b32.xlu0 %v1981_v11, %s3608_s17  ;;  %2053 = vrot.lane.b32.xlu1 %v1980_v48, %s3608_s17  ;;  %3415 = vpow2.f32 %v2989_v60  ;;  %v2995_v27 = vmul.f32 -1.442695, %v2000_v7  ;;  %v2993_v61 = vmul.f32 -1.442695, %v1998_v55 }
 0xe91   : > { %3417 = vpow2.f32 %v2988_v49 }
 0xe92   : > { %3419 = vpow2.f32 %v2991_v28 }
 0xe93   : > { %3421 = vpow2.f32 %v2990_v25 }
 0xe94   : > { %2061 = vrot.lane.b32.xlu0 %v1983_v10, %s3608_s17  ;;  %2057 = vrot.lane.b32.xlu1 %v1982_v52, %s3608_s17  ;;  %3423 = vpow2.f32 %v2994_v36 }
 0xe95   : > { %3425 = vpow2.f32 %v2992_v23 }
 0xe96   : > { %3427 = vpow2.f32 %v2995_v27 }
 0xe97   : > { %3429 = vpow2.f32 %v2993_v61 }
 0xe98   : > { %2063 = vrot.lane.b32.xlu0 %v1984_v13, %s3608_s17  ;;  %2059 = vrot.lane.b32.xlu1 %v1974_v16, %s3608_s17 }
 0xe9d   : > { %v3416_v5 = vpop.eup %3415 }
 0xe9e   : > { %v3418_v43 = vpop.eup %3417  ;;  %v2026_v59 = vadd.f32 1.0, %v3416_v5 }
 0xe9f   : > { %v3420_v18 = vpop.eup %3419  ;;  %v2025_v35 = vadd.f32 1.0, %v3418_v43 }
 0xea0   : > { %v3422_v22 = vpop.eup %3421  ;;  %3431 = vrcp.f32 %v2026_v59  ;;  %v2028_v37 = vadd.f32 1.0, %v3420_v18 }
 0xea1   : > { %v3424_v53 = vpop.eup %3423  ;;  %3433 = vrcp.f32 %v2025_v35  ;;  %v2027_v30 = vadd.f32 1.0, %v3422_v22 }
 0xea2   : > { %v3426_v46 = vpop.eup %3425  ;;  %3435 = vrcp.f32 %v2028_v37  ;;  %v2031_v40 = vadd.f32 1.0, %v3424_v53 }
 0xea3   : > { %v3428_v47 = vpop.eup %3427  ;;  %3437 = vrcp.f32 %v2027_v30  ;;  %v2029_v58 = vadd.f32 1.0, %v3426_v46 }
 0xea4   : > { %v3430_v54 = vpop.eup %3429  ;;  %3439 = vrcp.f32 %v2031_v40  ;;  %v2032_v45 = vadd.f32 1.0, %v3428_v47 }
 0xea5   : > { %3441 = vrcp.f32 %v2029_v58  ;;  %v2030_v2 = vadd.f32 1.0, %v3430_v54 }
 0xea6   : > { %3443 = vrcp.f32 %v2032_v45 }
 0xea7   : > { %3445 = vrcp.f32 %v2030_v2 }
 0xead   : > { %v4527_v39 = vpop.eup %3431 }
 0xeae   : > { %v4529_v56 = vpop.eup %3433 }
 0xeaf   : > { %v4533_v16 = vpop.eup %3435 }
 0xeb0   : > { %v4537_v12 = vpop.eup %3437 }
 0xeb1   : > { %v4541_v10 = vpop.eup %3439 }
 0xeb2   : > { %v4545_v52 = vpop.eup %3441 }
 0xeb3   : > { %v4549_v33 = vpop.eup %3443 }
 0xeb4   : > { %v4553_v49 = vpop.eup %3445 }
 0xefe   : > { %v2052_v50 = vpop.permute.xlu0 %2051  ;;  %v2050_v19 = vpop.permute.xlu1 %2049 }
 0xeff   : > { %v2074_v62 = vmul.f32 %v4527_v39, %v2052_v50  ;;  %v2073_v63 = vmul.f32 %v4529_v56, %v2050_v19  ;;  %v2178_v19 = vrot.slane %v4428_v0, 7  ;;  %v2132_v0 = vsub.f32 1.0, %v4533_v16 }
 0xf01   : > { %2091 = vrot.lane.b32.xlu0 %v2074_v62, %s3608_s17  ;;  %2089 = vrot.lane.b32.xlu1 %v2073_v63, %s3608_s17  ;;  %v2130_v62 = vsub.f32 1.0, %v4527_v39  ;;  %v2177_v63 = vrot.slane %v4423_v20, 7 }
 0xf02   : > { %v2056_v21 = vpop.permute.xlu0 %2055  ;;  %v2054_v42 = vpop.permute.xlu1 %2053 }
 0xf03   : > { %v2076_v11 = vmul.f32 %v4533_v16, %v2056_v21  ;;  %v2075_v48 = vmul.f32 %v4537_v12, %v2054_v42  ;;  %v2129_v42 = vsub.f32 1.0, %v4529_v56 }
 0xf05   : > { %2095 = vrot.lane.b32.xlu0 %v2076_v11, %s3608_s17  ;;  %2093 = vrot.lane.b32.xlu1 %v2075_v48, %s3608_s17  ;;  %v2193_v11 = vmul.f32 %v4527_v39, %v2178_v19 }
 0xf06   : > { %v2062_v13 = vpop.permute.xlu0 %2061  ;;  %v2058_v15 = vpop.permute.xlu1 %2057 }
 0xf07   : > { %v2079_v24 = vmul.f32 %v4541_v10, %v2062_v13  ;;  %v2077_v60 = vmul.f32 %v4545_v52, %v2058_v15  ;;  %v2192_v15 = vmul.f32 %v4529_v56, %v2177_v63 }
 0xf09   : > { %2101 = vrot.lane.b32.xlu0 %v2079_v24, %s3608_s17  ;;  %2097 = vrot.lane.b32.xlu1 %v2077_v60, %s3608_s17  ;;  %v2180_v60 = vrot.slane %v4444_v31, 7 }
 0xf0a   : > { %v2064_v57 = vpop.permute.xlu0 %2063  ;;  %v2060_v28 = vpop.permute.xlu1 %2059 }
 0xf0b   : > { %v2080_v29 = vmul.f32 %v4549_v33, %v2064_v57  ;;  %v2078_v25 = vmul.f32 %v4553_v49, %v2060_v28  ;;  %v2179_v28 = vrot.slane %v4436_v38, 7  ;;  %v2135_v38 = vsub.f32 1.0, %v4541_v10 }
 0xf0d   : > { %2103 = vrot.lane.b32.xlu0 %v2080_v29, %s3608_s17  ;;  %2099 = vrot.lane.b32.xlu1 %v2078_v25, %s3608_s17  ;;  %v2131_v25 = vsub.f32 1.0, %v4537_v12  ;;  %v2194_v31 = vmul.f32 %v4537_v12, %v2179_v28 }
 0xf73   : > { %v2092_v8 = vpop.permute.xlu0 %2091  ;;  %v2090_v36 = vpop.permute.xlu1 %2089 }
 0xf74   : > { %v2114_v7 = vadd.f32 %v4496_v14, %v2092_v8  ;;  %v2113_v23 = vadd.f32 %v4500_v17, %v2090_v36  ;;  %v2195_v8 = vmul.f32 %v4533_v16, %v2180_v60  ;;  %v2133_v16 = vsub.f32 1.0, %v4545_v52 }
 0xf76   : > { %3447 = vtanh.f32 %v2114_v7 }
 0xf77   : > { %3449 = vtanh.f32 %v2113_v23  ;;  %v2096_v55 = vpop.permute.xlu0 %2095  ;;  %v2094_v27 = vpop.permute.xlu1 %2093 }
 0xf78   : > { %v2116_v61 = vadd.f32 %v4504_v1, %v2096_v55  ;;  %v2115_v5 = vadd.f32 %v4508_v51, %v2094_v27  ;;  %v2181_v27 = vrot.slane %v4457_v32, 7  ;;  %v2183_v32 = vrot.slane %v4462_v34, 7 }
 0xf7a   : > { %3451 = vtanh.f32 %v2116_v61 }
 0xf7b   : > { %3453 = vtanh.f32 %v2115_v5  ;;  %v2102_v43 = vpop.permute.xlu0 %2101  ;;  %v2098_v59 = vpop.permute.xlu1 %2097 }
 0xf7c   : > { %v2119_v18 = vadd.f32 %v4512_v3, %v2102_v43  ;;  %v2117_v35 = vadd.f32 %v4516_v41, %v2098_v59  ;;  %v2182_v59 = vrot.slane %v4466_v4, 7 }
 0xf7e   : > { %3455 = vtanh.f32 %v2119_v18 }
 0xf7f   : > { %3457 = vtanh.f32 %v2117_v35  ;;  %v2104_v22 = vpop.permute.xlu0 %2103  ;;  %v2100_v37 = vpop.permute.xlu1 %2099 }
 0xf80   : > { %v2120_v53 = vadd.f32 %v4520_v44, %v2104_v22  ;;  %v2118_v30 = vadd.f32 %v4524_v6, %v2100_v37  ;;  %v2196_v37 = vmul.f32 %v4545_v52, %v2181_v27  ;;  %v2199_v52 = vmul.f32 %v4549_v33, %v2183_v32 }
 0xf82   : > { %3459 = vtanh.f32 %v2120_v53 }
 0xf83   : > { %v3448_v46 = vpop.eup %3447  ;;  %3461 = vtanh.f32 %v2118_v30  ;;  %v2198_v30 = vmul.f32 %v4541_v10, %v2182_v59  ;;  %v2197_v10 = vmul.f32 %v4553_v49, %v1897_v9 }
 0xf84   : > { %v3450_v40 = vpop.eup %3449  ;;  %2147 = vrot.lane.b32.xlu0 %v3448_v46, %s3610_s20  ;;  %v2136_v46 = vsub.f32 1.0, %v4549_v33 }
 0xf85   : > { %2145 = vrot.lane.b32.xlu1 %v3450_v40, %s3610_s20 }
 0xf87   : > { %v3452_v47 = vpop.eup %3451 }
 0xf88   : > { %v3454_v58 = vpop.eup %3453  ;;  %2151 = vrot.lane.b32.xlu0 %v3452_v47, %s3610_s20 }
 0xf89   : > { %2149 = vrot.lane.b32.xlu1 %v3454_v58, %s3610_s20  ;;  %v2134_v58 = vsub.f32 1.0, %v4553_v49 }
 0xf8b   : > { %v3456_v54 = vpop.eup %3455 }
 0xf8c   : > { %v3458_v45 = vpop.eup %3457  ;;  %2157 = vrot.lane.b32.xlu0 %v3456_v54, %s3610_s20 }
 0xf8d   : > { %2153 = vrot.lane.b32.xlu1 %v3458_v45, %s3610_s20 }
 0xf8f   : > { %v3460_v2 = vpop.eup %3459 }
 0xf90   : > { %v3462_v50 = vpop.eup %3461  ;;  %2159 = vrot.lane.b32.xlu0 %v3460_v2, %s3610_s20 }
 0xf91   : > { %2155 = vrot.lane.b32.xlu1 %v3462_v50, %s3610_s20 }
 0xff6   : > { %v2148_v21 = vpop.permute.xlu0 %2147 }
 0xff7   : > { %v2170_v48 = vmul.f32 %v2148_v21, %v2130_v62  ;;  %v2146_v13 = vpop.permute.xlu1 %2145 }
 0xff8   : > { %v2169_v24 = vmul.f32 %v2146_v13, %v2129_v42  ;;  %v4638_v13 = vld [vmem:[%s4883_s2] ss:$0 sm:$0xff] }
 0xff9   : > { %v4582_v57 = vadd.f32 %v2193_v11, %v2170_v48 }
 0xffa   : > { %v4586_v29 = vadd.f32 %v2192_v15, %v2169_v24  ;;  %v2152_v20 = vpop.permute.xlu0 %2151 }
 0xffb   : > { %v2217_v39 = vrot.slane %v4582_v57, 4  ;;  %v2172_v36 = vmul.f32 %v2152_v20, %v2132_v0  ;;  %v2150_v56 = vpop.permute.xlu1 %2149 }
 0xffc   : > { %v2216_v7 = vrot.slane %v4586_v29, 5  ;;  %v2171_v23 = vmul.f32 %v2150_v56, %v2131_v25 }
 0xffd   : > { %v4593_v55 = vadd.f32 %v2195_v8, %v2172_v36 }
 0xffe   : > { %v2218_v61 = vsel %vm575_vm3, %v2217_v39, %v2216_v7  ;;  %v4598_v5 = vadd.f32 %v2194_v31, %v2171_v23  ;;  %v2158_v43 = vpop.permute.xlu0 %2157 }
 0xfff   : > { %v2221_v18 = vrot.slane %v4593_v55, 2  ;;  %v2175_v35 = vmul.f32 %v2158_v43, %v2135_v38  ;;  %v2154_v12 = vpop.permute.xlu1 %2153 }
0x1000   : > { %v2219_v22 = vrot.slane %v4598_v5, 3  ;;  %v2173_v53 = vmul.f32 %v2154_v12, %v2133_v16 }
0x1001   : > { %v4612_v54 = vadd.f32 %v2198_v30, %v2175_v35 }
0x1002   : > { %v2220_v40 = vsel %vm578_vm4, %v2219_v22, %v2218_v61  ;;  %v4609_v47 = vadd.f32 %v2196_v37, %v2173_v53  ;;  %v2160_v4 = vpop.permute.xlu0 %2159 }
0x1003   : > { %v2222_v45 = vsel %vm581_vm5, %v2221_v18, %v2220_v40  ;;  %v2176_v2 = vmul.f32 %v2160_v4, %v2136_v46  ;;  %v2156_v50 = vpop.permute.xlu1 %2155  ;;  %v2226_v42 = vrot.slane %v4612_v54, 7 }
0x1004   : > { %v2223_v34 = vrot.slane %v4609_v47, 1  ;;  %v2174_v19 = vmul.f32 %v2156_v50, %v2134_v58 }
0x1005   : > { %v4620_v62 = vadd.f32 %v2199_v52, %v2176_v2 }
0x1006   : > { %v2224_v63 = vsel %vm584_vm6, %v2223_v34, %v2222_v45  ;;  %v4623_v21 = vadd.f32 %v2197_v10, %v2174_v19 }
0x1007   : > { %v2228_v11 = vrot.slane %v4620_v62, 6 }
0x1008   : > { %v2225_v33 = vsel %vm587_vm7, %v4623_v21, %v2224_v63 }
0x1009   : > { %v2227_v26 = vsel %vm590_vm8, %v2226_v42, %v2225_v33 }
0x100a   : > { %v2229_v9 = vsel %vm593_vm9, %v2228_v11, %v2227_v26 }
0x100b   : > { %2230 = vrot.lane.b32.xlu1 %v2229_v9, %s3610_s20 }
0x107d   : > { %v2231_v49 = vpop.permute.xlu1 %2230 }
0x107e   : > { %3132 = vmatmul.mubr.msk.f32.vlgmr.msra.gmra.mxu0 %vm245_vm2, %v2231_v49 }
0x113e   : > { %v2300_v48 = vpop.f32.mrf.mxu0 }
0x113f   : > { %v2301_v15 = vadd.f32 %v4638_v13, %v2300_v48 }
0x1140   : > { %v3133_v24 = vpop.f32.mrf.mxu0 }
0x1141   : > { %v2306_v60 = vrot.slane %v2301_v15, 3  ;;  %v2305_v0 = vrot.slane %v2301_v15, 2  ;;  %v2308_v28 = vrot.slane %v2301_v15, 5  ;;  %v2307_v20 = vrot.slane %v2301_v15, 4 }
0x1142   : > { %v2310_v25 = vrot.slane %v2301_v15, 7  ;;  %v2309_v39 = vrot.slane %v2301_v15, 6  ;;  %v2311_v8 = vrot.slane %v2301_v15, 1  ;;  %v2326_v12 = vadd.f32 %v4512_v3, %v2301_v15 }
0x1143   : > { %2378 = vrot.lane.b32.xlu1 %v2306_v60, %s3608_s17  ;;  %2376 = vrot.lane.b32.xlu0 %v2305_v0, %s3608_s17  ;;  %v2321_v36 = vadd.f32 %v4496_v14, %v2306_v60  ;;  %v2320_v56 = vadd.f32 %v4500_v17, %v2305_v0  ;;  %v2323_v31 = vadd.f32 %v4504_v1, %v2308_v28 }
0x1144   : > { %v2322_v38 = vadd.f32 %v4508_v51, %v2307_v20  ;;  %v2325_v61 = vadd.f32 %v4524_v6, %v2310_v25  ;;  %v2324_v16 = vadd.f32 %v4516_v41, %v2309_v39  ;;  %v2327_v18 = vadd.f32 %v4520_v44, %v2311_v8 }
0x1145   : > { %v2998_v7 = vmul.f32 -1.442695, %v2321_v36  ;;  %v2997_v23 = vmul.f32 -1.442695, %v2320_v56  ;;  %v3000_v27 = vmul.f32 -1.442695, %v2323_v31 }
0x1146   : > { %v2999_v43 = vmul.f32 -1.442695, %v2322_v38  ;;  %v3002_v59 = vmul.f32 -1.442695, %v2325_v61  ;;  %v3001_v35 = vmul.f32 -1.442695, %v2324_v16 }
0x1147   : > { %2382 = vrot.lane.b32.xlu1 %v2308_v28, %s3608_s17  ;;  %2380 = vrot.lane.b32.xlu0 %v2307_v20, %s3608_s17  ;;  %3463 = vpow2.f32 %v2998_v7  ;;  %v3004_v22 = vmul.f32 -1.442695, %v2327_v18  ;;  %v3003_v37 = vmul.f32 -1.442695, %v2326_v12 }
0x1148   : > { %3465 = vpow2.f32 %v2997_v23 }
0x1149   : > { %3467 = vpow2.f32 %v3000_v27 }
0x114a   : > { %3469 = vpow2.f32 %v2999_v43 }
0x114b   : > { %2386 = vrot.lane.b32.xlu1 %v2310_v25, %s3608_s17  ;;  %2384 = vrot.lane.b32.xlu0 %v2309_v39, %s3608_s17  ;;  %3471 = vpow2.f32 %v3002_v59 }
0x114c   : > { %3473 = vpow2.f32 %v3001_v35 }
0x114d   : > { %3475 = vpow2.f32 %v3004_v22 }
0x114e   : > { %3477 = vpow2.f32 %v3003_v37 }
0x114f   : > { %2388 = vrot.lane.b32.xlu1 %v2301_v15, %s3608_s17  ;;  %2390 = vrot.lane.b32.xlu0 %v2311_v8, %s3608_s17 }
0x1154   : > { %v3464_v53 = vpop.eup %3463 }
0x1155   : > { %v3466_v32 = vpop.eup %3465  ;;  %v2353_v30 = vadd.f32 1.0, %v3464_v53 }
0x1156   : > { %v3468_v46 = vpop.eup %3467  ;;  %v2352_v40 = vadd.f32 1.0, %v3466_v32 }
0x1157   : > { %v3470_v4 = vpop.eup %3469  ;;  %3479 = vrcp.f32 %v2353_v30  ;;  %v2355_v58 = vadd.f32 1.0, %v3468_v46 }
0x1158   : > { %v3472_v45 = vpop.eup %3471  ;;  %3481 = vrcp.f32 %v2352_v40  ;;  %v2354_v52 = vadd.f32 1.0, %v3470_v4 }
0x1159   : > { %v3474_v2 = vpop.eup %3473  ;;  %3483 = vrcp.f32 %v2355_v58  ;;  %v2357_v50 = vadd.f32 1.0, %v3472_v45 }
0x115a   : > { %v3476_v34 = vpop.eup %3475  ;;  %3485 = vrcp.f32 %v2354_v52  ;;  %v2356_v10 = vadd.f32 1.0, %v3474_v2 }
0x115b   : > { %v3478_v19 = vpop.eup %3477  ;;  %3487 = vrcp.f32 %v2357_v50  ;;  %v2359_v63 = vadd.f32 1.0, %v3476_v34 }
0x115c   : > { %3489 = vrcp.f32 %v2356_v10  ;;  %v2358_v11 = vadd.f32 1.0, %v3478_v19 }
0x115d   : > { %3491 = vrcp.f32 %v2359_v63 }
0x115e   : > { %3493 = vrcp.f32 %v2358_v11 }
0x1164   : > { %v4657_v33 = vpop.eup %3479 }
0x1165   : > { %v4659_v26 = vpop.eup %3481 }
0x1166   : > { %v4663_v24 = vpop.eup %3483 }
0x1167   : > { %v4667_v60 = vpop.eup %3485 }
0x1168   : > { %v4671_v39 = vpop.eup %3487 }
0x1169   : > { %v4675_v8 = vpop.eup %3489 }
0x116a   : > { %v4679_v23 = vpop.eup %3491 }
0x116b   : > { %v4683_v38 = vpop.eup %3493 }
0x11b5   : > { %v2379_v9 = vpop.permute.xlu1 %2378  ;;  %v2377_v49 = vpop.permute.xlu0 %2376 }
0x11b6   : > { %v2401_v48 = vmul.f32 %v4657_v33, %v2379_v9  ;;  %v2400_v15 = vmul.f32 %v4659_v26, %v2377_v49 }
0x11b8   : > { %2418 = vrot.lane.b32.xlu1 %v2401_v48, %s3608_s17  ;;  %2416 = vrot.lane.b32.xlu0 %v2400_v15, %s3608_s17  ;;  %v2505_v48 = vrot.slane %v4582_v57, 7  ;;  %v2457_v15 = vsub.f32 1.0, %v4657_v33  ;;  %v2459_v57 = vsub.f32 1.0, %v4663_v24 }
0x11b9   : > { %v2383_v0 = vpop.permute.xlu1 %2382  ;;  %v2381_v28 = vpop.permute.xlu0 %2380 }
0x11ba   : > { %v2403_v20 = vmul.f32 %v4663_v24, %v2383_v0  ;;  %v2402_v25 = vmul.f32 %v4667_v60, %v2381_v28  ;;  %v2504_v0 = vrot.slane %v4586_v29, 7 }
0x11bc   : > { %2422 = vrot.lane.b32.xlu1 %v2403_v20, %s3608_s17  ;;  %2420 = vrot.lane.b32.xlu0 %v2402_v25, %s3608_s17  ;;  %v2456_v20 = vsub.f32 1.0, %v4659_v26  ;;  %v2520_v25 = vmul.f32 %v4657_v33, %v2505_v48 }
0x11bd   : > { %v2387_v36 = vpop.permute.xlu1 %2386  ;;  %v2385_v56 = vpop.permute.xlu0 %2384 }
0x11be   : > { %v2405_v7 = vmul.f32 %v4671_v39, %v2387_v36  ;;  %v2404_v31 = vmul.f32 %v4675_v8, %v2385_v56 }
0x11c0   : > { %2426 = vrot.lane.b32.xlu1 %v2405_v7, %s3608_s17  ;;  %2424 = vrot.lane.b32.xlu0 %v2404_v31, %s3608_s17  ;;  %v2519_v7 = vmul.f32 %v4659_v26, %v2504_v0 }
0x11c1   : > { %v2389_v27 = vpop.permute.xlu1 %2388  ;;  %v2391_v61 = vpop.permute.xlu0 %2390 }
0x11c2   : > { %v2406_v43 = vmul.f32 %v4683_v38, %v2389_v27  ;;  %v2407_v16 = vmul.f32 %v4679_v23, %v2391_v61  ;;  %v2507_v27 = vrot.slane %v4593_v55, 7 }
0x11c4   : > { %2428 = vrot.lane.b32.xlu1 %v2406_v43, %s3608_s17  ;;  %2430 = vrot.lane.b32.xlu0 %v2407_v16, %s3608_s17  ;;  %v2506_v43 = vrot.slane %v4598_v5, 7  ;;  %v2461_v5 = vsub.f32 1.0, %v4671_v39 }
0x11c6   : > { %v2521_v55 = vmul.f32 %v4667_v60, %v2506_v43 }
0x122a   : > { %v2419_v59 = vpop.permute.xlu1 %2418  ;;  %v2417_v18 = vpop.permute.xlu0 %2416 }
0x122b   : > { %v2441_v35 = vadd.f32 %v4496_v14, %v2419_v59  ;;  %v2440_v12 = vadd.f32 %v4500_v17, %v2417_v18  ;;  %v2458_v59 = vsub.f32 1.0, %v4667_v60  ;;  %v2522_v18 = vmul.f32 %v4663_v24, %v2507_v27 }
0x122d   : > { %3495 = vtanh.f32 %v2441_v35 }
0x122e   : > { %3497 = vtanh.f32 %v2440_v12  ;;  %v2423_v22 = vpop.permute.xlu1 %2422  ;;  %v2421_v37 = vpop.permute.xlu0 %2420 }
0x122f   : > { %v2443_v53 = vadd.f32 %v4504_v1, %v2423_v22  ;;  %v2442_v32 = vadd.f32 %v4508_v51, %v2421_v37  ;;  %v2509_v37 = vrot.slane %v4623_v21, 7 }
0x1231   : > { %3499 = vtanh.f32 %v2443_v53  ;;  %v2524_v60 = vmul.f32 %v4671_v39, %v2509_v37  ;;  %v2463_v39 = vsub.f32 1.0, %v4679_v23 }
0x1232   : > { %3501 = vtanh.f32 %v2442_v32  ;;  %v2427_v30 = vpop.permute.xlu1 %2426  ;;  %v2425_v46 = vpop.permute.xlu0 %2424  ;;  %v2508_v32 = vrot.slane %v4609_v47, 7  ;;  %v2462_v47 = vsub.f32 1.0, %v4683_v38 }
0x1233   : > { %v2445_v40 = vadd.f32 %v4524_v6, %v2427_v30  ;;  %v2444_v4 = vadd.f32 %v4516_v41, %v2425_v46 }
0x1235   : > { %3503 = vtanh.f32 %v2445_v40  ;;  %v2460_v40 = vsub.f32 1.0, %v4675_v8 }
0x1236   : > { %3505 = vtanh.f32 %v2444_v4  ;;  %v2429_v58 = vpop.permute.xlu1 %2428  ;;  %v2431_v45 = vpop.permute.xlu0 %2430 }
0x1237   : > { %v2446_v52 = vadd.f32 %v4512_v3, %v2429_v58  ;;  %v2447_v2 = vadd.f32 %v4520_v44, %v2431_v45 }
0x1239   : > { %3507 = vtanh.f32 %v2446_v52  ;;  %v2523_v52 = vmul.f32 %v4675_v8, %v2508_v32  ;;  %v2525_v8 = vmul.f32 %v4683_v38, %v2226_v42 }
0x123a   : > { %v3496_v50 = vpop.eup %3495  ;;  %3509 = vtanh.f32 %v2447_v2 }
0x123b   : > { %v3498_v34 = vpop.eup %3497  ;;  %2474 = vrot.lane.b32.xlu1 %v3496_v50, %s3610_s20 }
0x123c   : > { %2472 = vrot.lane.b32.xlu0 %v3498_v34, %s3610_s20  ;;  %v2510_v34 = vrot.slane %v4620_v62, 7 }
0x123e   : > { %v3500_v10 = vpop.eup %3499  ;;  %v2526_v62 = vmul.f32 %v4679_v23, %v2510_v34 }
0x123f   : > { %v3502_v19 = vpop.eup %3501  ;;  %2478 = vrot.lane.b32.xlu1 %v3500_v10, %s3610_s20 }
0x1240   : > { %2476 = vrot.lane.b32.xlu0 %v3502_v19, %s3610_s20 }
0x1242   : > { %v3504_v63 = vpop.eup %3503 }
0x1243   : > { %v3506_v11 = vpop.eup %3505  ;;  %2482 = vrot.lane.b32.xlu1 %v3504_v63, %s3610_s20 }
0x1244   : > { %2480 = vrot.lane.b32.xlu0 %v3506_v11, %s3610_s20 }
0x1246   : > { %v3508_v9 = vpop.eup %3507 }
0x1247   : > { %v3510_v49 = vpop.eup %3509  ;;  %2484 = vrot.lane.b32.xlu1 %v3508_v9, %s3610_s20 }
0x1248   : > { %2486 = vrot.lane.b32.xlu0 %v3510_v49, %s3610_s20 }
0x12ad   : > { %v2475_v28 = vpop.permute.xlu1 %2474 }
0x12ae   : > { %v2497_v36 = vmul.f32 %v2475_v28, %v2457_v15  ;;  %v2473_v56 = vpop.permute.xlu0 %2472 }
0x12af   : > { %v2496_v31 = vmul.f32 %v2473_v56, %v2456_v20 }
0x12b0   : > { %v4712_v61 = vadd.f32 %v2520_v25, %v2497_v36 }
0x12b1   : > { %v4716_v16 = vadd.f32 %v2519_v7, %v2496_v31  ;;  %v2479_v29 = vpop.permute.xlu1 %2478 }
0x12b2   : > { %v2544_v33 = vrot.slane %v4712_v61, 5  ;;  %v2499_v35 = vmul.f32 %v2479_v29, %v2459_v57  ;;  %v2477_v26 = vpop.permute.xlu0 %2476 }
0x12b3   : > { %v2543_v12 = vrot.slane %v4716_v16, 6  ;;  %v2498_v22 = vmul.f32 %v2477_v26, %v2458_v59 }
0x12b4   : > { %v4724_v53 = vadd.f32 %v2522_v18, %v2499_v35 }
0x12b5   : > { %v2545_v30 = vsel %vm575_vm3, %v2544_v33, %v2543_v12  ;;  %v4729_v46 = vadd.f32 %v2521_v55, %v2498_v22  ;;  %v2483_v24 = vpop.permute.xlu1 %2482 }
0x12b6   : > { %v2548_v4 = vrot.slane %v4724_v53, 3  ;;  %v2501_v58 = vmul.f32 %v2483_v24, %v2461_v5  ;;  %v2481_v45 = vpop.permute.xlu0 %2480 }
0x12b7   : > { %v2546_v21 = vrot.slane %v4729_v46, 4  ;;  %v2500_v2 = vmul.f32 %v2481_v45, %v2460_v40 }
0x12b8   : > { %v4736_v50 = vadd.f32 %v2524_v60, %v2501_v58 }
0x12b9   : > { %v2547_v10 = vsel %vm578_vm4, %v2546_v21, %v2545_v30  ;;  %v4741_v19 = vadd.f32 %v2523_v52, %v2500_v2  ;;  %v2485_v63 = vpop.permute.xlu1 %2484 }
0x12ba   : > { %v2552_v11 = vrot.slane %v4736_v50, 1  ;;  %v2549_v9 = vsel %vm581_vm5, %v2548_v4, %v2547_v10  ;;  %v2502_v49 = vmul.f32 %v2485_v63, %v2462_v47  ;;  %v2487_v48 = vpop.permute.xlu0 %2486 }
0x12bb   : > { %v2550_v15 = vrot.slane %v4741_v19, 2  ;;  %v2503_v0 = vmul.f32 %v2487_v48, %v2463_v39 }
0x12bc   : > { %v4751_v28 = vadd.f32 %v2525_v8, %v2502_v49 }
0x12bd   : > { %v2551_v20 = vsel %vm584_vm6, %v2550_v15, %v2549_v9  ;;  %v4754_v25 = vadd.f32 %v2526_v62, %v2503_v0 }
0x12be   : > { %v2553_v36 = vsel %vm587_vm7, %v2552_v11, %v2551_v20 }
0x12bf   : > { %v2555_v56 = vrot.slane %v4754_v25, 7  ;;  %v2554_v54 = vsel %vm590_vm8, %v4751_v28, %v2553_v36 }
0x12c1   : > { %v2556_v42 = vsel %vm593_vm9, %v2555_v56, %v2554_v54 }
0x12c2   : > { %2557 = vrot.lane.b32.xlu0 %v2556_v42, %s3610_s20 }
0x1334   : > { %v2558_v23 = vpop.permute.xlu0 %2557 }
0x1335   : > { %3143 = vmatmul.mubr.msk.f32.vlgmr.msra.gmra.mxu1 %vm245_vm2, %v2558_v23 }
0x13f5   : > { %v2627_v38 = vpop.f32.mrf.mxu1 }
0x13f6   : > { %v2628_v7 = vadd.f32 %v4638_v13, %v2627_v38 }
0x13f7   : > { %v3144_v31 = vpop.f32.mrf.mxu1 }
0x13f8   : > { %v2634_v27 = vrot.slane %v2628_v7, 3  ;;  %v2633_v57 = vrot.slane %v2628_v7, 2  ;;  %v2636_v43 = vrot.slane %v2628_v7, 5  ;;  %v2635_v29 = vrot.slane %v2628_v7, 4 }
0x13f9   : > { %v2638_v59 = vrot.slane %v2628_v7, 7  ;;  %v2637_v33 = vrot.slane %v2628_v7, 6  ;;  %v2632_v13 = vrot.slane %v2628_v7, 1  ;;  %v2654_v60 = vadd.f32 %v4520_v44, %v2628_v7 }
0x13fa   : > { %2707 = vrot.lane.b32.xlu0 %v2634_v27, %s3608_s17  ;;  %2705 = vrot.lane.b32.xlu1 %v2633_v57, %s3608_s17  ;;  %v2649_v18 = vadd.f32 %v4508_v51, %v2634_v27  ;;  %v2648_v35 = vadd.f32 %v4496_v14, %v2633_v57  ;;  %v2651_v12 = vadd.f32 %v4516_v41, %v2636_v43 }
0x13fb   : > { %v2650_v22 = vadd.f32 %v4504_v1, %v2635_v29  ;;  %v2653_v5 = vadd.f32 %v4512_v3, %v2638_v59  ;;  %v2652_v30 = vadd.f32 %v4524_v6, %v2637_v33  ;;  %v2647_v40 = vadd.f32 %v4500_v17, %v2632_v13 }
0x13fc   : > { %v3008_v26 = vmul.f32 -1.442695, %v2649_v18  ;;  %v3007_v55 = vmul.f32 -1.442695, %v2648_v35  ;;  %v3010_v37 = vmul.f32 -1.442695, %v2651_v12 }
0x13fd   : > { %v3009_v32 = vmul.f32 -1.442695, %v2650_v22  ;;  %v3012_v24 = vmul.f32 -1.442695, %v2653_v5  ;;  %v3011_v4 = vmul.f32 -1.442695, %v2652_v30 }
0x13fe   : > { %2711 = vrot.lane.b32.xlu0 %v2636_v43, %s3608_s17  ;;  %2709 = vrot.lane.b32.xlu1 %v2635_v29, %s3608_s17  ;;  %3511 = vpow2.f32 %v3008_v26  ;;  %v3006_v58 = vmul.f32 -1.442695, %v2647_v40  ;;  %v3013_v45 = vmul.f32 -1.442695, %v2654_v60 }
0x13ff   : > { %3513 = vpow2.f32 %v3007_v55 }
0x1400   : > { %3515 = vpow2.f32 %v3010_v37 }
0x1401   : > { %3517 = vpow2.f32 %v3009_v32 }
0x1402   : > { %2715 = vrot.lane.b32.xlu0 %v2638_v59, %s3608_s17  ;;  %2713 = vrot.lane.b32.xlu1 %v2637_v33, %s3608_s17  ;;  %3519 = vpow2.f32 %v3012_v24 }
0x1403   : > { %3521 = vpow2.f32 %v3011_v4 }
0x1404   : > { %3523 = vpow2.f32 %v3006_v58 }
0x1405   : > { %3525 = vpow2.f32 %v3013_v45 }
0x1406   : > { %2717 = vrot.lane.b32.xlu1 %v2628_v7, %s3608_s17  ;;  %2703 = vrot.lane.b32.xlu0 %v2632_v13, %s3608_s17 }
0x140b   : > { %v3512_v21 = vpop.eup %3511 }
0x140c   : > { %v3514_v52 = vpop.eup %3513  ;;  %v2681_v2 = vadd.f32 1.0, %v3512_v21 }
0x140d   : > { %v3516_v47 = vpop.eup %3515  ;;  %v2680_v34 = vadd.f32 1.0, %v3514_v52 }
0x140e   : > { %v3518_v10 = vpop.eup %3517  ;;  %3527 = vrcp.f32 %v2681_v2  ;;  %v2683_v63 = vadd.f32 1.0, %v3516_v47 }
0x140f   : > { %v3520_v39 = vpop.eup %3519  ;;  %3529 = vrcp.f32 %v2680_v34  ;;  %v2682_v11 = vadd.f32 1.0, %v3518_v10 }
0x1410   : > { %v3522_v9 = vpop.eup %3521  ;;  %3531 = vrcp.f32 %v2683_v63  ;;  %v2685_v8 = vadd.f32 1.0, %v3520_v39 }
0x1411   : > { %v3524_v49 = vpop.eup %3523  ;;  %3533 = vrcp.f32 %v2682_v11  ;;  %v2684_v48 = vadd.f32 1.0, %v3522_v9  ;;  %v2832_v9 = vrot.slane %v4712_v61, 7  ;;  %v2835_v61 = vrot.slane %v4741_v19, 7 }
0x1412   : > { %v3526_v15 = vpop.eup %3525  ;;  %3535 = vrcp.f32 %v2685_v8  ;;  %v2679_v62 = vadd.f32 1.0, %v3524_v49  ;;  %v2833_v49 = vrot.slane %v4729_v46, 7  ;;  %v2837_v19 = vrot.slane %v4751_v28, 7 }
0x1413   : > { %3537 = vrcp.f32 %v2684_v48  ;;  %v2686_v0 = vadd.f32 1.0, %v3526_v15 }
0x1414   : > { %3539 = vrcp.f32 %v2679_v62 }
0x1415   : > { %3541 = vrcp.f32 %v2686_v0 }
0x141b   : > { %v4782_v20 = vpop.eup %3527 }
0x141c   : > { %v4784_v36 = vpop.eup %3529  ;;  %v2785_v15 = vsub.f32 1.0, %v4782_v20 }
0x141d   : > { %v4788_v7 = vpop.eup %3531  ;;  %v2784_v8 = vsub.f32 1.0, %v4784_v36  ;;  %v2847_v62 = vmul.f32 %v4784_v36, %v2832_v9 }
0x141e   : > { %v4792_v31 = vpop.eup %3533  ;;  %v2787_v46 = vsub.f32 1.0, %v4788_v7 }
0x141f   : > { %v4796_v59 = vpop.eup %3535 }
0x1420   : > { %v4800_v33 = vpop.eup %3537 }
0x1421   : > { %v4804_v12 = vpop.eup %3539 }
0x1422   : > { %v4808_v55 = vpop.eup %3541 }
0x1423   : > { %v2790_v28 = vsub.f32 1.0, %v4808_v55 }
0x146c   : > { %v2708_v54 = vpop.permute.xlu0 %2707  ;;  %v2706_v42 = vpop.permute.xlu1 %2705 }
0x146d   : > { %v2729_v23 = vmul.f32 %v4782_v20, %v2708_v54  ;;  %v2728_v38 = vmul.f32 %v4784_v36, %v2706_v42  ;;  %v2848_v42 = vmul.f32 %v4782_v20, %v2833_v49  ;;  %v2850_v20 = vmul.f32 %v4788_v7, %v2835_v61 }
0x146f   : > { %2745 = vrot.lane.b32.xlu1 %v2728_v38, %s3608_s17  ;;  %2747 = vrot.lane.b32.xlu0 %v2729_v23, %s3608_s17  ;;  %v2834_v38 = vrot.slane %v4724_v53, 7  ;;  %v2836_v53 = vrot.slane %v4736_v50, 7 }
0x1470   : > { %v2712_v27 = vpop.permute.xlu0 %2711  ;;  %v2710_v57 = vpop.permute.xlu1 %2709 }
0x1471   : > { %v2731_v43 = vmul.f32 %v4788_v7, %v2712_v27  ;;  %v2730_v29 = vmul.f32 %v4792_v31, %v2710_v57  ;;  %v2786_v57 = vsub.f32 1.0, %v4792_v31 }
0x1473   : > { %2749 = vrot.lane.b32.xlu1 %v2730_v29, %s3608_s17  ;;  %2751 = vrot.lane.b32.xlu0 %v2731_v43, %s3608_s17 }
0x1474   : > { %v2716_v13 = vpop.permute.xlu0 %2715  ;;  %v2714_v18 = vpop.permute.xlu1 %2713 }
0x1475   : > { %v2733_v35 = vmul.f32 %v4796_v59, %v2716_v13  ;;  %v2732_v26 = vmul.f32 %v4800_v33, %v2714_v18  ;;  %v2849_v18 = vmul.f32 %v4792_v31, %v2834_v38 }
0x1477   : > { %2753 = vrot.lane.b32.xlu1 %v2732_v26, %s3608_s17  ;;  %2755 = vrot.lane.b32.xlu0 %v2733_v35, %s3608_s17 }
0x1478   : > { %v2718_v22 = vpop.permute.xlu1 %2717  ;;  %v2704_v37 = vpop.permute.xlu0 %2703 }
0x1479   : > { %v2734_v5 = vmul.f32 %v4808_v55, %v2718_v22  ;;  %v2727_v32 = vmul.f32 %v4804_v12, %v2704_v37 }
0x147b   : > { %2757 = vrot.lane.b32.xlu1 %v2734_v5, %s3608_s17  ;;  %2743 = vrot.lane.b32.xlu0 %v2727_v32, %s3608_s17  ;;  %v2788_v5 = vsub.f32 1.0, %v4800_v33 }
0x14e1   : > { %v2746_v30 = vpop.permute.xlu1 %2745  ;;  %v2748_v24 = vpop.permute.xlu0 %2747 }
0x14e2   : > { %v2768_v40 = vadd.f32 %v4496_v14, %v2746_v30  ;;  %v2769_v4 = vadd.f32 %v4508_v51, %v2748_v24 }
0x14e4   : > { %3543 = vtanh.f32 %v2768_v40  ;;  %v2789_v40 = vsub.f32 1.0, %v4796_v59 }
0x14e5   : > { %3545 = vtanh.f32 %v2769_v4  ;;  %v2750_v60 = vpop.permute.xlu1 %2749  ;;  %v2752_v58 = vpop.permute.xlu0 %2751  ;;  %v2851_v4 = vmul.f32 %v4800_v33, %v2836_v53 }
0x14e6   : > { %v2770_v45 = vadd.f32 %v4504_v1, %v2750_v60  ;;  %v2771_v21 = vadd.f32 %v4516_v41, %v2752_v58 }
0x14e8   : > { %3547 = vtanh.f32 %v2770_v45  ;;  %v2852_v45 = vmul.f32 %v4796_v59, %v2837_v19 }
0x14e9   : > { %3549 = vtanh.f32 %v2771_v21  ;;  %v2754_v52 = vpop.permute.xlu1 %2753  ;;  %v2756_v2 = vpop.permute.xlu0 %2755 }
0x14ea   : > { %v2772_v47 = vadd.f32 %v4524_v6, %v2754_v52  ;;  %v2773_v34 = vadd.f32 %v4512_v3, %v2756_v2  ;;  %v2831_v2 = vrot.slane %v4716_v16, 7 }
0x14ec   : > { %3551 = vtanh.f32 %v2772_v47 }
0x14ed   : > { %3553 = vtanh.f32 %v2773_v34  ;;  %v2758_v14 = vpop.permute.xlu1 %2757  ;;  %v2744_v51 = vpop.permute.xlu0 %2743 }
0x14ee   : > { %v2774_v10 = vadd.f32 %v4520_v44, %v2758_v14  ;;  %v2767_v63 = vadd.f32 %v4500_v17, %v2744_v51  ;;  %v2783_v51 = vsub.f32 1.0, %v4804_v12 }
0x14f0   : > { %3555 = vtanh.f32 %v2774_v10  ;;  %v2853_v10 = vmul.f32 %v4808_v55, %v2555_v56 }
0x14f1   : > { %v3544_v1 = vpop.eup %3543  ;;  %3557 = vtanh.f32 %v2767_v63 }
0x14f2   : > { %v3546_v41 = vpop.eup %3545  ;;  %2801 = vrot.lane.b32.xlu1 %v3544_v1, %s3610_s20 }
0x14f3   : > { %2803 = vrot.lane.b32.xlu0 %v3546_v41, %s3610_s20  ;;  %v2846_v41 = vmul.f32 %v4804_v12, %v2831_v2 }
0x14f5   : > { %v3548_v39 = vpop.eup %3547 }
0x14f6   : > { %v3550_v6 = vpop.eup %3549  ;;  %2805 = vrot.lane.b32.xlu1 %v3548_v39, %s3610_s20 }
0x14f7   : > { %2807 = vrot.lane.b32.xlu0 %v3550_v6, %s3610_s20 }
0x14f9   : > { %v3552_v3 = vpop.eup %3551 }
0x14fa   : > { %v3554_v11 = vpop.eup %3553  ;;  %2809 = vrot.lane.b32.xlu1 %v3552_v3, %s3610_s20 }
0x14fb   : > { %2811 = vrot.lane.b32.xlu0 %v3554_v11, %s3610_s20 }
0x14fd   : > { %v3556_v17 = vpop.eup %3555 }
0x14fe   : > { %v3558_v44 = vpop.eup %3557  ;;  %2813 = vrot.lane.b32.xlu1 %v3556_v17, %s3610_s20 }
0x14ff   : > { %2799 = vrot.lane.b32.xlu0 %v3558_v44, %s3610_s20 }
0x1564   : > { %v2802_v48 = vpop.permute.xlu1 %2801 }
0x1565   : > { %v2824_v0 = vmul.f32 %v2802_v48, %v2784_v8  ;;  %v2804_v54 = vpop.permute.xlu0 %2803 }
0x1566   : > { %v2825_v23 = vmul.f32 %v2804_v54, %v2785_v15 }
0x1567   : > { %v2855_v27 = vadd.f32 %v2847_v62, %v2824_v0 }
0x1568   : > { %v2856_v43 = vadd.f32 %v2848_v42, %v2825_v23  ;;  %v2806_v29 = vpop.permute.xlu1 %2805 }
0x1569   : > { %v2870_v13 = vrot.slane %v2855_v27, 7  ;;  %v2826_v36 = vmul.f32 %v2806_v29, %v2786_v57  ;;  %v2808_v35 = vpop.permute.xlu0 %2807 }
0x156a   : > { %v2871_v26 = vrot.slane %v2856_v43, 6  ;;  %v2827_v22 = vmul.f32 %v2808_v35, %v2787_v46 }
0x156b   : > { %v2857_v37 = vadd.f32 %v2849_v18, %v2826_v36 }
0x156c   : > { %v2872_v32 = vsel %vm575_vm3, %v2871_v26, %v2870_v13  ;;  %v2858_v30 = vadd.f32 %v2850_v20, %v2827_v22  ;;  %v2810_v24 = vpop.permute.xlu1 %2809 }
0x156d   : > { %v2873_v31 = vrot.slane %v2857_v37, 5  ;;  %v2828_v60 = vmul.f32 %v2810_v24, %v2788_v5  ;;  %v2812_v58 = vpop.permute.xlu0 %2811 }
0x156e   : > { %v2875_v7 = vrot.slane %v2858_v30, 4  ;;  %v2829_v50 = vmul.f32 %v2812_v58, %v2789_v40 }
0x156f   : > { %v2874_v21 = vsel %vm578_vm4, %v2873_v31, %v2872_v32  ;;  %v2859_v52 = vadd.f32 %v2851_v4, %v2828_v60 }
0x1570   : > { %v2876_v47 = vsel %vm581_vm5, %v2875_v7, %v2874_v21  ;;  %v2860_v34 = vadd.f32 %v2852_v45, %v2829_v50  ;;  %v2814_v14 = vpop.permute.xlu1 %2813 }
0x1571   : > { %v2877_v33 = vrot.slane %v2859_v52, 3  ;;  %v2830_v59 = vmul.f32 %v2814_v14, %v2790_v28  ;;  %v2800_v63 = vpop.permute.xlu0 %2799 }
0x1572   : > { %v2879_v1 = vrot.slane %v2860_v34, 2  ;;  %v2823_v39 = vmul.f32 %v2800_v63, %v2783_v51 }
0x1573   : > { %v2878_v6 = vsel %vm584_vm6, %v2877_v33, %v2876_v47  ;;  %v2861_v16 = vadd.f32 %v2853_v10, %v2830_v59 }
0x1574   : > { %v2854_v3 = vadd.f32 %v2846_v41, %v2823_v39  ;;  %v2880_v11 = vsel %vm587_vm7, %v2879_v1, %v2878_v6 }
0x1575   : > { %v2881_v17 = vrot.slane %v2861_v16, 1 }
0x1576   : > { %2883 = vrot.lane.b32.xlu1 %v2854_v3, %s3610_s20 }
0x1577   : > { %v2882_v44 = vsel %vm590_vm8, %v2881_v17, %v2880_v11 }
0x1578   : > { %2885 = vrot.lane.b32.xlu0 %v2882_v44, %s3610_s20 }
0x15e7   : > { %2896 = sbr.rel (%p3014_p9) target bundleno = 5614 (0x15ee), region = 78 }
0x15e8   : > { %v2884_v25 = vpop.permute.xlu1 %2883 }
0x15e9   : > { %2890 = vst.msk [vmem:[#allocation2 - $0x7] sm:$0x80] %vm2889_vm10, %v2884_v25 }
0x15ea   : > { %v2886_v56 = vpop.permute.xlu0 %2885 }
0x15eb   : > { %2892 = vst.msk [vmem:[#allocation2 + $0x1] sm:$0x7f] %vm2891_vm11, %v2886_v56 }
0x15ec   : > { %2897 = vst.msk [vmem:[%s4884_s3 - $0x7] sm:$0x80] %vm2889_vm10, %v2884_v25 }
0x15ed   : > { %2898 = vst.msk [vmem:[%s4884_s3 + $0x1] sm:$0x7f] %vm2891_vm11, %v2886_v56 }
0x15ee PF: > { %p10_p10 = scmp.ge.s32.totalorder %s3648_s16, 4   ;;  %s4885_s12 = smov %s3599_s13 }
0x15ef   : > { %s4886_s13 = smov %s3657_s19  ;;  %s4887_s14 = smov %s3648_s16 }
0x15f0   :  { %12 = sbr.rel (!%p10_p10) target bundleno = 2 (0x2), region = 109 }

// kernel: emotion_predictor_forward.5
= control target key start
LH: loop header
LB: loop body
LE: loop exit
PB: predicated region body
PF: predicated region fallthrough
CT: control target
= control target key end

     0   :  { %s3030_s6 = smov 1   ;;  %s3031_s10 = smov 2   ;;  %s3723_s0 = inlined_call_operand.smem [shape: u32[31], index: -1, kind: input, shape index: {}] }
   0x1   :  { %s3075_s5 = sld [smem:[%s3723_s0]]   ;;  %s3032_s14 = smov 3  }
   0x2   :  { %s3080_s9 = sld [smem:[%s3723_s0 + %s3030_s6]]   ;;  %s3033_s18 = smov 4  }
   0x3   :  { %s3085_s13 = sld [smem:[%s3723_s0 + %s3031_s10]]   ;;  %s3034_s22 = smov 5  }
   0x4   :  { %s3090_s17 = sld [smem:[%s3723_s0 + %s3032_s14]]   ;;  %s3035_s26 = smov 6  }
   0x5   :  { %s3095_s21 = sld [smem:[%s3723_s0 + %s3033_s18]]   ;;  %s3036_s30 = smov 7  }
   0x6   :  { %s3100_s25 = sld [smem:[%s3723_s0 + %s3034_s22]]   ;;  %s3037_s4 = smov 8  }
   0x7   :  { %s3105_s29 = sld [smem:[%s3723_s0 + %s3035_s26]]   ;;  %s3038_s10 = smov 9  }
   0x8   :  { %s3110_s3 = sld [smem:[%s3723_s0 + %s3036_s30]]   ;;  %s3039_s15 = smov 10  }
   0x9   :  { %s3115_s8 = sld [smem:[%s3723_s0 + %s3037_s4]]   ;;  %s3040_s20 = smov 11  }
   0xa   :  { %s3120_s14 = sld [smem:[%s3723_s0 + %s3038_s10]]   ;;  %s3041_s26 = smov 12  }
   0xb   :  { %s3125_s19 = sld [smem:[%s3723_s0 + %s3039_s15]]   ;;  %s3042_s1 = smov 13  }
   0xc   :  { %3731 = sst [smem:[#allocation5_spill]] %s3100_s25  ;;  %s3043_s7 = smov 14  }
   0xd   :  { %s3130_s24 = sld [smem:[%s3723_s0 + %s3040_s20]]   ;;  %s3044_s15 = smov 15  }
   0xe   :  { %s3135_s30 = sld [smem:[%s3723_s0 + %s3041_s26]]   ;;  %s3045_s22 = smov 16  }
   0xf   :  { %s3140_s6 = sld [smem:[%s3723_s0 + %s3042_s1]]   ;;  %s3046_s28 = smov 17  }
  0x10   :  { %s3145_s12 = sld [smem:[%s3723_s0 + %s3043_s7]]   ;;  %s3047_s7 = smov 18  }
  0x11   :  { %s3150_s20 = sld [smem:[%s3723_s0 + %s3044_s15]]   ;;  %s3048_s15 = smov 19  }
  0x12   :  { %s3155_s27 = sld [smem:[%s3723_s0 + %s3045_s22]]   ;;  %s3049_s22 = smov 20  }
  0x13   :  { %s3160_s4 = sld [smem:[%s3723_s0 + %s3046_s28]]   ;;  %s3050_s28 = smov 21  }
  0x14   :  { %s3165_s25 = sld [smem:[%s3723_s0 + %s3047_s7]]   ;;  %s3051_s7 = smov 22  }
  0x16   :  { %3732 = sst [smem:[#allocation6_spill]] %s3145_s12 }
  0x17   :  { %3733 = sst [smem:[#allocation7_spill]] %s3150_s20 }
  0x18   :  { %3734 = sst [smem:[#allocation8_spill]] %s3155_s27 }
  0x19   :  { %3735 = sst [smem:[#allocation9_spill]] %s3160_s4 }
  0x1a   :  { %s3170_s12 = sld [smem:[%s3723_s0 + %s3048_s15]]   ;;  %s3052_s15 = smov 23  }
  0x1b   :  { %s3175_s27 = sld [smem:[%s3723_s0 + %s3049_s22]]   ;;  %s3053_s22 = smov 24  }
  0x1c   :  { %s3180_s4 = sld [smem:[%s3723_s0 + %s3050_s28]]   ;;  %s3054_s28 = smov 25  }
  0x1d   :  { %s3185_s20 = sld [smem:[%s3723_s0 + %s3051_s7]]   ;;  %s3055_s7 = smov 26  }
  0x20   :  { %3736 = sst [smem:[#allocation10_spill]] %s3170_s12 }
  0x21   :  { %3737 = sst [smem:[#allocation11_spill]] %s3175_s27 }
  0x22   :  { %3738 = sst [smem:[#allocation12_spill]] %s3180_s4 }
  0x23   :  { %3739 = sst [smem:[#allocation13_spill]] %s3185_s20 }
  0x24   :  { %s3190_s12 = sld [smem:[%s3723_s0 + %s3052_s15]]   ;;  %s3056_s15 = smov 27  }
  0x25   :  { %s3195_s27 = sld [smem:[%s3723_s0 + %s3053_s22]]   ;;  %s3057_s22 = smov 28  }
  0x26   :  { %s3200_s4 = sld [smem:[%s3723_s0 + %s3054_s28]]   ;;  %s3058_s28 = smov 29  }
  0x27   :  { %s3205_s20 = sld [smem:[%s3723_s0 + %s3055_s7]]   ;;  %s3059_s7 = smov 30  }
  0x2a   :  { %3740 = sst [smem:[#allocation14_spill]] %s3190_s12 }
  0x2b   :  { %3741 = sst [smem:[#allocation15_spill]] %s3195_s27 }
  0x2c   :  { %3742 = sst [smem:[#allocation16_spill]] %s3200_s4 }
  0x2d   :  { %3743 = sst [smem:[#allocation17_spill]] %s3205_s20 }
  0x2e   :  { %s3210_s12 = sld [smem:[%s3723_s0 + %s3056_s15]]  }
  0x2f   :  { %s3215_s27 = sld [smem:[%s3723_s0 + %s3057_s22]]  }
  0x30   :  { %s3220_s4 = sld [smem:[%s3723_s0 + %s3058_s28]]  }
  0x31   :  { %s3225_s20 = sld [smem:[%s3723_s0 + %s3059_s7]]  }
  0x32   :  { %v136_v0 = vld [vmem:[%s3110_s3 + $0x18] sm:$0xff]  ;;  %v3060_v2 = vmov 0.0   ;;  %v135_v3 = vld [vmem:[%s3110_s3 + $0x10] sm:$0xff]  ;;  %v134_v5 = vld [vmem:[%s3110_s3 + $0x8] sm:$0xff]  ;;  %vm137_vm0 = vcmask 261120   ;;  %vm3061_vm1 = vmmov 0  }
  0x33   :  { %v131_v1 = vld [vmem:[%s3105_s29 + $0x18] sm:$0xff]  ;;  %2636 = vmatprep.subr.mxu0 %v3060_v2  ;;  %2647 = vmatprep.subr.mxu1 %v3060_v2  ;;  %v130_v4 = vld [vmem:[%s3105_s29 + $0x10] sm:$0xff]  ;;  %v129_v6 = vld [vmem:[%s3105_s29 + $0x8] sm:$0xff] }
  0x34   :  { %2637 = vmatpush3.msra.mxu0 %v136_v0  ;;  %2648 = vmatpush3.msra.mxu1 %v131_v1  ;;  %v133_v7 = vld [vmem:[%s3110_s3] sm:$0xff]  ;;  %v304_v11 = vld [vmem:[%s3125_s19 + $0x18] sm:$0xff] }
  0x35   :  { %2638 = vmatprep.subr.mxu0 %v3060_v2  ;;  %2649 = vmatprep.subr.mxu1 %v3060_v2  ;;  %v128_v8 = vld [vmem:[%s3105_s29] sm:$0xff]  ;;  %v298_v12 = vld [vmem:[%s3120_s14 + $0x18] sm:$0xff] }
  0x36   :  { %2639 = vmatpush3.msra.mxu0 %v135_v3  ;;  %2650 = vmatpush3.msra.mxu1 %v130_v4  ;;  %v132_v9 = vld [vmem:[%s3080_s9] sm:$0x3] }
  0x37   :  { %2640 = vmatprep.subr.mxu0 %v3060_v2  ;;  %2651 = vmatprep.subr.mxu1 %v3060_v2  ;;  %v127_v10 = vld [vmem:[%s3075_s5] sm:$0x3] }
  0x38   :  { %2641 = vmatpush3.msra.mxu0 %v134_v5  ;;  %2652 = vmatpush3.msra.mxu1 %v129_v6 }
  0x39   :  { %2642 = vmatprep.subr.mxu0 %v3060_v2  ;;  %2653 = vmatprep.subr.mxu1 %v3060_v2 }
  0x3a   :  { %2643 = vmatpush3.msra.mxu0 %v133_v7  ;;  %2644 = vmatprep.mubr.msk.f32.mxu0 %vm3061_vm1, %v3060_v2 }
  0x3b   :  { %2654 = vmatpush3.msra.mxu1 %v128_v8  ;;  %2655 = vmatprep.mubr.msk.f32.mxu1 %vm3061_vm1, %v3060_v2 }
  0x3c   :  { %2645 = vmatmul.mubr.msk.f32.vlgmr.msra.gmra.mxu0 %vm137_vm0, %v132_v9  ;;  %2656 = vmatmul.mubr.msk.f32.vlgmr.msra.gmra.mxu1 %vm137_vm0, %v127_v10 }
  0x3d   :  { %66 = vsyncpa [#allocation3], 0  ;;  %2658 = vmatprep.subr.mxu0 %v3060_v2  ;;  %2669 = vmatprep.subr.mxu1 %v3060_v2  ;;  %v303_v13 = vld [vmem:[%s3125_s19 + $0x10] sm:$0xff]  ;;  %v302_v15 = vld [vmem:[%s3125_s19 + $0x8] sm:$0xff]  ;;  %s3744_s0 = sld [smem:[#allocation7_spill]]  ;;  %vm892_vm3 = vcmask 1041409  }
  0x3e   :  { %v297_v14 = vld [vmem:[%s3120_s14 + $0x10] sm:$0xff]  ;;  %2659 = vmatpush3.msra.mxu0 %v304_v11  ;;  %2670 = vmatpush3.msra.mxu1 %v298_v12  ;;  %v296_v16 = vld [vmem:[%s3120_s14 + $0x8] sm:$0xff]  ;;  %v301_v17 = vld [vmem:[%s3125_s19] sm:$0xff]  ;;  %s3745_s5 = sld [smem:[#allocation8_spill]]  ;;  %s3066_s16 = smov [#allocation2]   ;;  %vm2426_vm11 = vcmask 33792  }
  0x3f   :  { %2660 = vmatprep.subr.mxu0 %v3060_v2  ;;  %2671 = vmatprep.subr.mxu1 %v3060_v2  ;;  %v2939_v18 = vld [vmem:[%s3090_s17] sm:$0xff]   ;;  %v463_v21 = vld [vmem:[%s3130_s24 + $0x18] sm:$0xff]  ;;  %v462_v22 = vld [vmem:[%s3130_s24 + $0x10] sm:$0xff]  ;;  %s3746_s9 = sld [smem:[#allocation6_spill]]  ;;  %s2434_s18 = sshll.u32 %s3066_s16, 4  ;;  %s2435_s18 = int_to_ptr.vmem [resolvable:$true] %s2434_s18 }
  0x40   :  { %2661 = vmatpush3.msra.mxu0 %v303_v13  ;;  %2672 = vmatpush3.msra.mxu1 %v297_v14  ;;  %v295_v19 = vld [vmem:[%s3120_s14] sm:$0xff]  ;;  %v461_v23 = vld [vmem:[%s3130_s24 + $0x8] sm:$0xff]  ;;  %v662_v26 = vld [vmem:[%s3165_s25 + $0x18] sm:$0xff]  ;;  %s3747_s17 = sld [smem:[#allocation5_spill]]  ;;  %p3013_p1 = scmp.lt.s32.totalorder %s2435_s18, %s2435_s18 }
  0x41   :  { %2662 = vmatprep.subr.mxu0 %v3060_v2  ;;  %2673 = vmatprep.subr.mxu1 %v3060_v2  ;;  %v2940_v20 = vld [vmem:[%s3085_s13] sm:$0xff]   ;;  %v661_v27 = vld [vmem:[%s3165_s25 + $0x10] sm:$0xff]  ;;  %v660_v28 = vld [vmem:[%s3165_s25 + $0x8] sm:$0xff]  ;;  %s3062_s13 = smov 64   ;;  %s3749_s29 = sld [smem:[#allocation11_spill]] }
  0x42   :  { %2663 = vmatpush3.msra.mxu0 %v302_v15  ;;  %2674 = vmatpush3.msra.mxu1 %v296_v16  ;;  %v460_v24 = vld [vmem:[%s3130_s24] sm:$0xff]  ;;  %v558_v30 = vld [vmem:[%s3140_s6 + $0x18] sm:$0xff]  ;;  %v557_v31 = vld [vmem:[%s3140_s6 + $0x10] sm:$0xff]  ;;  %s3750_s3 = sld [smem:[#allocation10_spill]] }
  0x43   :  { %2664 = vmatprep.subr.mxu0 %v3060_v2  ;;  %2666 = vmatprep.mubr.msk.f32.mxu0 %vm3061_vm1, %v3060_v2  ;;  %v2941_v25 = vld [vmem:[%s3095_s21] sm:$0xff]   ;;  %v556_v32 = vld [vmem:[%s3140_s6 + $0x8] sm:$0xff]  ;;  %v3320_v59 = vld [vmem:[%s3744_s0 + $0x18] sm:$0xff]  ;;  %s3748_s21 = sld [smem:[#allocation9_spill]] }
  0x44   :  { %2665 = vmatpush3.msra.mxu0 %v301_v17  ;;  %2675 = vmatprep.subr.mxu1 %v3060_v2  ;;  %v659_v29 = vld [vmem:[%s3165_s25] sm:$0xff]  ;;  %v3324_v60 = vld [vmem:[%s3744_s0 + $0x10] sm:$0xff]  ;;  %v3331_v61 = vld [vmem:[%s3744_s0 + $0x8] sm:$0xff]  ;;  %s3064_s25 = smov 96   ;;  %s3751_s14 = sld [smem:[#allocation12_spill]] }
  0x45   :  { %2667 = vmatmul.mubr.msk.f32.vlgmr.msra.gmra.mxu0 %vm137_vm0, %v2939_v18  ;;  %2676 = vmatpush3.msra.mxu1 %v295_v19  ;;  %v555_v33 = vld [vmem:[%s3140_s6] sm:$0xff]  ;;  %s3752_s19 = sld [smem:[#allocation13_spill]] }
  0x46   :  { %2677 = vmatprep.mubr.msk.f32.mxu1 %vm3061_vm1, %v3060_v2  ;;  %2680 = vmatprep.subr.mxu0 %v3060_v2  ;;  %v2474_v36 = vld [vmem:[%s3115_s8] ss:$0 sm:$0xff]  ;;  %s3065_s8 = smov 32   ;;  %s3753_s24 = sld [smem:[#allocation15_spill]] }
  0x47   :  { %2678 = vmatmul.mubr.msk.f32.vlgmr.msra.gmra.mxu1 %vm137_vm0, %v2940_v20  ;;  %2681 = vmatpush3.msra.mxu0 %v463_v21  ;;  %v2478_v48 = vld [vmem:[%s3135_s30] ss:$0 sm:$0xff]  ;;  %s3754_s30 = sld [smem:[#allocation17_spill]] }
  0x48   :  { %2682 = vmatprep.subr.mxu0 %v3060_v2  ;;  %2688 = vmatprep.mubr.msk.f32.mxu0 %vm3061_vm1, %v3060_v2  ;;  %v3336_v62 = vld [vmem:[%s3744_s0] sm:$0xff]  ;;  %s3755_s6 = sld [smem:[#allocation14_spill]] }
  0x49   :  { %2683 = vmatpush3.msra.mxu0 %v462_v22  ;;  %2691 = vmatprep.subr.mxu1 %v3060_v2  ;;  %v3348_v4 = vld [vmem:[%s3745_s5] ss:$0 sm:$0xff]  ;;  %s3756_s15 = sld [smem:[#allocation16_spill]] }
  0x4a   :  { %2684 = vmatprep.subr.mxu0 %v3060_v2  ;;  %2699 = vmatprep.mubr.msk.f32.mxu1 %vm3061_vm1, %v3060_v2  ;;  %v2479_v9 = vld [vmem:[%s3746_s9] ss:$0 sm:$0xff] }
  0x4b   :  { %2685 = vmatpush3.msra.mxu0 %v461_v23  ;;  %2692 = vmatpush3.msra.mxu1 %v558_v30  ;;  %v568_v10 = vcombine.low %v2479_v9, %v2479_v9  ;;  %v3063_v30 = vmov 0  }
  0x4c   :  { %2686 = vmatprep.subr.mxu0 %v3060_v2  ;;  %2693 = vmatprep.subr.mxu1 %v3060_v2 }
  0x4d   :  { %2687 = vmatpush3.msra.mxu0 %v460_v24  ;;  %2694 = vmatpush3.msra.mxu1 %v557_v31 }
  0x4e   :  { %2689 = vmatmul.mubr.msk.f32.vlgmr.msra.gmra.mxu0 %vm137_vm0, %v2941_v25  ;;  %2702 = vmatprep.subr.mxu0 %v3060_v2 }
  0x4f   :  { %2710 = vmatprep.mubr.msk.f32.mxu0 %vm3061_vm1, %v3060_v2  ;;  %2703 = vmatpush3.msra.mxu0 %v662_v26 }
  0x50   :  { %2704 = vmatprep.subr.mxu0 %v3060_v2  ;;  %2695 = vmatprep.subr.mxu1 %v3060_v2 }
  0x51   :  { %2705 = vmatpush3.msra.mxu0 %v661_v27  ;;  %2696 = vmatpush3.msra.mxu1 %v556_v32  ;;  %v3369_v32 = vld [vmem:[%s3747_s17] sm:$0x3] }
  0x52   :  { %2706 = vmatprep.subr.mxu0 %v3060_v2  ;;  %2697 = vmatprep.subr.mxu1 %v3060_v2  ;;  %vm876_vm2 = vcmp.gt.s32.totalorder %v3369_v32, 0  ;;  %vm1177_vm5 = vcmp.gt.s32.totalorder %v3369_v32, 1  ;;  %vm1479_vm7 = vcmp.gt.s32.totalorder %v3369_v32, 2  ;;  %vm1781_vm9 = vcmp.gt.s32.totalorder %v3369_v32, 3  ;;  %v2019_v32 = vld [vmem:[%s3752_s19 + $0x10] sm:$0xff] }
  0x53   :  { %2707 = vmatpush3.msra.mxu0 %v660_v28  ;;  %2698 = vmatpush3.msra.mxu1 %v555_v33  ;;  %v3373_v33 = vld [vmem:[%s3748_s21 + $0x18] sm:$0xff] }
  0x54   :  { %2708 = vmatprep.subr.mxu0 %v3060_v2  ;;  %2713 = vmatprep.subr.mxu1 %v3060_v2 }
  0x55   :  { %2709 = vmatpush3.msra.mxu0 %v659_v29  ;;  %2937 = vset.pattern.permute.xlu0 %v3063_v30 }
  0x56   :  { %2724 = vmatprep.subr.mxu0 %v3060_v2  ;;  %2938 = vset.pattern.permute.xlu1 %v3063_v30 }
  0xfc   :  { %v207_v34 = vpop.f32.mrf.mxu0  ;;  %v280_v35 = vpop.f32.mrf.mxu1 }
  0xfd   :  { %v281_v37 = vadd.f32 %v280_v35, %v207_v34  ;;  %v3376_v34 = vld [vmem:[%s3748_s21 + $0x10] sm:$0xff] }
  0xfe   :  { %v2646_v38 = vpop.f32.mrf.mxu0  ;;  %v2657_v39 = vpop.f32.mrf.mxu1 }
  0xff   :  { %v3310_v40 = vadd.f32 %v2474_v36, %v281_v37  ;;  %v3382_v36 = vld [vmem:[%s3748_s21 + $0x8] sm:$0xff]  ;;  %v877_v37 = vsel %vm876_vm2, 1, %v3063_v30  ;;  %v3391_v39 = vld [vmem:[%s3748_s21] sm:$0xff] }
 0x101   :  { %v292_v41 = vmax.f32 %v3310_v40, 0.0 }
 0x103   :  { %2711 = vmatmul.mubr.msk.f32.vlgmr.msra.gmra.mxu0 %vm137_vm0, %v292_v41 }
 0x104   :  { %2732 = vmatprep.mubr.msk.f32.mxu0 %vm3061_vm1, %v3060_v2  ;;  %2725 = vmatpush3.msra.mxu0 %v3373_v33 }
 0x105   :  { %v376_v42 = vpop.f32.mrf.mxu0  ;;  %2726 = vmatprep.subr.mxu0 %v3060_v2 }
 0x106   :  { %2727 = vmatpush3.msra.mxu0 %v3376_v34 }
 0x107   :  { %v451_v43 = vpop.f32.mrf.mxu1  ;;  %v2668_v44 = vpop.f32.mrf.mxu0  ;;  %2728 = vmatprep.subr.mxu0 %v3060_v2 }
 0x108   :  { %v452_v46 = vadd.f32 %v451_v43, %v376_v42  ;;  %2729 = vmatpush3.msra.mxu0 %v3382_v36  ;;  %v884_v42 = vlaneseq }
 0x109   :  { %v2679_v45 = vpop.f32.mrf.mxu1  ;;  %2730 = vmatprep.subr.mxu0 %v3060_v2 }
 0x10a   :  { %v456_v49 = vcombine.high %v452_v46, %v452_v46  ;;  %2731 = vmatpush3.msra.mxu0 %v3391_v39  ;;  %v3397_v45 = vshrl.u32 %v884_v42, 7 }
 0x10b   :  { %2746 = vmatprep.subr.mxu0 %v3060_v2 }
 0x10e   :  { %v535_v47 = vpop.f32.mrf.mxu0 }
 0x10f   :  { %v540_v50 = vcombine.high %v535_v47, %v535_v47  ;;  %v542_v51 = vadd.f32 %v535_v47, %v452_v46 }
 0x110   :  { %v2690_v52 = vpop.f32.mrf.mxu0 }
 0x111   :  { %v543_v53 = vadd.f32 %v540_v50, %v456_v49  ;;  %v551_v54 = vadd.f32 %v2478_v48, %v542_v51  ;;  %v886_v50 = vsub.s32 0, %v3397_v45 }
 0x113   :  { %v552_v55 = vadd.f32 %v2478_v48, %v543_v53  ;;  %v553_v56 = vmax.f32 %v551_v54, 0.0 }
 0x115   :  { %v554_v57 = vmax.f32 %v552_v55, 0.0 }
 0x117   :  { %v567_v58 = vcombine.low %v553_v56, %v554_v57 }
 0x119   :  { %2700 = vmatmul.mubr.msk.f32.vlgmr.msra.gmra.mxu1 %vm137_vm0, %v567_v58 }
 0x11a   :  { %2714 = vmatpush3.msra.mxu1 %v3320_v59  ;;  %2721 = vmatprep.mubr.msk.f32.mxu1 %vm3061_vm1, %v3060_v2 }
 0x11b   :  { %2715 = vmatprep.subr.mxu1 %v3060_v2 }
 0x11c   :  { %2716 = vmatpush3.msra.mxu1 %v3324_v60 }
 0x11d   :  { %2717 = vmatprep.subr.mxu1 %v3060_v2 }
 0x11e   :  { %2718 = vmatpush3.msra.mxu1 %v3331_v61 }
 0x11f   :  { %2719 = vmatprep.subr.mxu1 %v3060_v2 }
 0x120   :  { %2720 = vmatpush3.msra.mxu1 %v3336_v62 }
 0x121   :  { %2722 = vmatmul.mubr.f32.vlgmr.msra.gmra.mxu1 %v3060_v2  ;;  %2735 = vmatprep.subr.mxu1 %v3060_v2 }
 0x122   :  { %2743 = vmatprep.mubr.msk.f32.mxu1 %vm3061_vm1, %v3060_v2 }
 0x1c3   :  { %v3345_v63 = vpop.f32.mrf.mxu0 }
 0x1c5   :  { %v2712_v0 = vpop.f32.mrf.mxu0 }
 0x1d9   :  { %v638_v1 = vpop.f32.mrf.mxu1 }
 0x1da   :  { %v3354_v11 = vadd.f32 %v638_v1, %v568_v10 }
 0x1db   :  { %v2701_v3 = vpop.f32.mrf.mxu1 }
 0x1dc   :  { %v3359_v13 = vcombine.high %v3354_v11, %v3354_v11  ;;  %v3421_v3 = vld [vmem:[%s3749_s29 + $0x18] sm:$0xff] }
 0x1dd   :  { %2736 = vmatpush3.msra.mxu1 %v3421_v3 }
 0x1de   :  { %2737 = vmatprep.subr.mxu1 %v3060_v2 }
 0x1e1   :  { %v818_v5 = vpop.f32.mrf.mxu1 }
 0x1e2   :  { %v819_v6 = vadd.f32 %v3348_v4, %v818_v5  ;;  %v3427_v5 = vld [vmem:[%s3749_s29 + $0x10] sm:$0xff] }
 0x1e3   :  { %v2723_v7 = vpop.f32.mrf.mxu1  ;;  %2738 = vmatpush3.msra.mxu1 %v3427_v5 }
 0x1e4   :  { %840 = vrot.lane.b32.xlu0 %v819_v6, %s3062_s13  ;;  %v823_v8 = vrot.slane %v819_v6, 1  ;;  %v826_v12 = vadd.f32 %v819_v6, %v3354_v11  ;;  %2739 = vmatprep.subr.mxu1 %v3060_v2  ;;  %v3434_v6 = vld [vmem:[%s3749_s29 + $0x8] sm:$0xff]  ;;  %v3441_v7 = vld [vmem:[%s3749_s29] sm:$0xff] }
 0x1e5   :  { %2740 = vmatpush3.msra.mxu1 %v3434_v6 }
 0x1e6   :  { %v2484_v14 = vmul.f32 -1.442695, %v826_v12  ;;  %v827_v15 = vadd.f32 %v823_v8, %v3359_v13  ;;  %2741 = vmatprep.subr.mxu1 %v3060_v2 }
 0x1e7   :  { %2742 = vmatpush3.msra.mxu1 %v3441_v7 }
 0x1e8   :  { %842 = vrot.lane.b32.xlu0 %v823_v8, %s3062_s13  ;;  %2942 = vpow2.f32 %v2484_v14  ;;  %v2485_v16 = vmul.f32 -1.442695, %v827_v15  ;;  %2757 = vmatprep.subr.mxu1 %v3060_v2  ;;  %v2481_v8 = vld [vmem:[%s3750_s3] ss:$0 sm:$0xff] }
 0x1e9   :  { %v3450_v9 = vadd.f32 %v2481_v8, %v3345_v63 }
 0x1ea   :  { %2944 = vpow2.f32 %v2485_v16 }
 0x1f5   :  { %v2943_v17 = vpop.eup %2942 }
 0x1f6   :  { %v834_v18 = vadd.f32 1.0, %v2943_v17 }
 0x1f7   :  { %v2945_v19 = vpop.eup %2944 }
 0x1f8   :  { %2946 = vrcp.f32 %v834_v18  ;;  %v835_v20 = vadd.f32 1.0, %v2945_v19 }
 0x1fa   :  { %2948 = vrcp.f32 %v835_v20 }
 0x205   :  { %v2947_v21 = vpop.eup %2946 }
 0x206   :  { %v860_v43 = vsub.f32 1.0, %v2947_v21  ;;  %v872_v47 = vmul.f32 0.0, %v2947_v21 }
 0x207   :  { %v2949_v24 = vpop.eup %2948 }
 0x208   :  { %v861_v48 = vsub.f32 1.0, %v2949_v24  ;;  %v873_v52 = vmul.f32 0.0, %v2949_v24 }
 0x256   :  { %v841_v22 = vpop.permute.xlu0 %840 }
 0x257   :  { %v846_v23 = vmul.f32 %v2947_v21, %v841_v22 }
 0x259   :  { %850 = vrot.lane.b32.xlu1 %v846_v23, %s3062_s13 }
 0x25a   :  { %v843_v25 = vpop.permute.xlu0 %842 }
 0x25b   :  { %v847_v26 = vmul.f32 %v2949_v24, %v843_v25 }
 0x25d   :  { %852 = vrot.lane.b32.xlu1 %v847_v26, %s3062_s13 }
 0x2cb   :  { %v851_v27 = vpop.permute.xlu1 %850 }
 0x2cc   :  { %v856_v28 = vadd.f32 %v851_v27, %v3354_v11 }
 0x2ce   :  { %2950 = vtanh.f32 %v856_v28 }
 0x2cf   :  { %v853_v29 = vpop.permute.xlu1 %852 }
 0x2d0   :  { %v857_v31 = vadd.f32 %v853_v29, %v3359_v13 }
 0x2d2   :  { %2952 = vtanh.f32 %v857_v31 }
 0x2db   :  { %v2951_v35 = vpop.eup %2950 }
 0x2dc   :  { %864 = vrot.lane.b32.xlu0 %v2951_v35, %s3064_s25 }
 0x2df   :  { %v2953_v38 = vpop.eup %2952 }
 0x2e0   :  { %866 = vrot.lane.b32.xlu1 %v2953_v38, %s3064_s25  ;;  %879 = vperm.xlu0 %2937, %v877_v37  }
 0x34e   :  { %v865_v44 = vpop.permute.xlu0 %864 }
 0x34f   :  { %v870_v46 = vmul.f32 %v865_v44, %v860_v43 }
 0x351   :  { %v874_v51 = vadd.f32 %v872_v47, %v870_v46 }
 0x352   :  { %v867_v49 = vpop.permute.xlu1 %866 }
 0x353   :  { %v871_v53 = vmul.f32 %v867_v49, %v861_v48  ;;  %v887_v55 = vrot.slane %v874_v51, %v886_v50  ;;  %v1178_v51 = vsel %vm1177_vm5, 1, %v3063_v30 }
 0x355   :  { %v875_v54 = vadd.f32 %v873_v52, %v871_v53 }
 0x357   :  { %v891_v56 = vrot.slane %v875_v54, %v886_v50 }
 0x359   :  { %v893_v57 = vsel %vm892_vm3, %v891_v56, %v887_v55 }
 0x35a   :  { %894 = vrot.lane.b32.xlu1 %v893_v57, %s3064_s25 }
 0x35b   :  { %v880_v58 = vpop.permute.xlu0 %879 }
 0x35c   :  { %vm881_vm4 = vcmp.eq.s32.totalorder %v880_v58, 1 }
 0x3cc   :  { %v895_v0 = vpop.permute.xlu1 %894 }
 0x3cd   :  { %v3402_v1 = vsel %vm881_vm4, %v895_v0, 0.0 }
 0x3ce   :  { %2733 = vmatmul.mubr.msk.f32.vlgmr.msra.gmra.mxu0 %vm137_vm0, %v3402_v1  ;;  %v1166_v50 = vrot.slane %v3402_v1, 7 }
 0x3cf   :  { %2747 = vmatpush3.msra.mxu0 %v3320_v59  ;;  %2754 = vmatprep.mubr.msk.f32.mxu0 %vm3061_vm1, %v3060_v2 }
 0x3d0   :  { %2748 = vmatprep.subr.mxu0 %v3060_v2 }
 0x3d1   :  { %2749 = vmatpush3.msra.mxu0 %v3324_v60 }
 0x3d2   :  { %2750 = vmatprep.subr.mxu0 %v3060_v2 }
 0x3d3   :  { %2751 = vmatpush3.msra.mxu0 %v3331_v61 }
 0x3d4   :  { %2752 = vmatprep.subr.mxu0 %v3060_v2 }
 0x3d5   :  { %2753 = vmatpush3.msra.mxu0 %v3336_v62 }
 0x3d6   :  { %2755 = vmatmul.mubr.msk.f32.vlgmr.msra.gmra.mxu0 %vm137_vm0, %v3402_v1  ;;  %2768 = vmatprep.subr.mxu0 %v3060_v2 }
 0x3d7   :  { %2776 = vmatprep.mubr.msk.f32.mxu0 %vm3061_vm1, %v3060_v2  ;;  %2769 = vmatpush3.msra.mxu0 %v3421_v3 }
 0x3d8   :  { %2770 = vmatprep.subr.mxu0 %v3060_v2 }
 0x3d9   :  { %2771 = vmatpush3.msra.mxu0 %v3427_v5 }
 0x3da   :  { %2772 = vmatprep.subr.mxu0 %v3060_v2 }
 0x3db   :  { %2773 = vmatpush3.msra.mxu0 %v3434_v6 }
 0x3dc   :  { %2774 = vmatprep.subr.mxu0 %v3060_v2 }
 0x3dd   :  { %2775 = vmatpush3.msra.mxu0 %v3441_v7 }
 0x3de   :  { %2790 = vmatprep.subr.mxu0 %v3060_v2 }
 0x48e   :  { %v967_v10 = vpop.f32.mrf.mxu0 }
 0x48f   :  { %v968_v12 = vadd.f32 %v967_v10, %v3450_v9  ;;  %v1187_v10 = vsub.s32 1, %v3397_v45 }
 0x490   :  { %v2734_v14 = vpop.f32.mrf.mxu0 }
 0x491   :  { %2954 = vtanh.f32 %v968_v12 }
 0x496   :  { %v1112_v15 = vpop.f32.mrf.mxu0 }
 0x497   :  { %v1113_v16 = vadd.f32 %v3348_v4, %v1112_v15 }
 0x498   :  { %v2756_v17 = vpop.f32.mrf.mxu0 }
 0x499   :  { %1136 = vrot.lane.b32.xlu0 %v1113_v16, %s3062_s13  ;;  %v1117_v18 = vrot.slane %v1113_v16, 7  ;;  %v1121_v63 = vadd.f32 %v1113_v16, %v3359_v13 }
 0x49b   :  { %1134 = vrot.lane.b32.xlu1 %v1117_v18, %s3062_s13  ;;  %v1120_v20 = vadd.f32 %v1117_v18, %v3354_v11  ;;  %v2490_v21 = vmul.f32 -1.442695, %v1121_v63 }
 0x49d   :  { %v2489_v22 = vmul.f32 -1.442695, %v1120_v20  ;;  %2956 = vpow2.f32 %v2490_v21 }
 0x49e   :  { %v2955_v19 = vpop.eup %2954 }
 0x49f   :  { %2744 = vmatmul.mubr.msk.f32.vlgmr.msra.gmra.mxu1 %vm137_vm0, %v2955_v19  ;;  %2958 = vpow2.f32 %v2489_v22 }
 0x4a0   :  { %2758 = vmatpush3.msra.mxu1 %v3373_v33  ;;  %2765 = vmatprep.mubr.msk.f32.mxu1 %vm3061_vm1, %v3060_v2 }
 0x4a1   :  { %2759 = vmatprep.subr.mxu1 %v3060_v2 }
 0x4a2   :  { %2760 = vmatpush3.msra.mxu1 %v3376_v34 }
 0x4a3   :  { %2761 = vmatprep.subr.mxu1 %v3060_v2 }
 0x4a4   :  { %2762 = vmatpush3.msra.mxu1 %v3382_v36 }
 0x4a5   :  { %2763 = vmatprep.subr.mxu1 %v3060_v2 }
 0x4a6   :  { %2764 = vmatpush3.msra.mxu1 %v3391_v39 }
 0x4a7   :  { %2779 = vmatprep.subr.mxu1 %v3060_v2 }
 0x4aa   :  { %v2957_v23 = vpop.eup %2956 }
 0x4ab   :  { %v1129_v25 = vadd.f32 1.0, %v2957_v23 }
 0x4ac   :  { %v2959_v24 = vpop.eup %2958 }
 0x4ad   :  { %v1128_v26 = vadd.f32 1.0, %v2959_v24  ;;  %2960 = vrcp.f32 %v1129_v25 }
 0x4af   :  { %2962 = vrcp.f32 %v1128_v26 }
 0x4ba   :  { %v2961_v27 = vpop.eup %2960 }
 0x4bb   :  { %v1155_v54 = vsub.f32 1.0, %v2961_v27 }
 0x4bc   :  { %v2963_v31 = vpop.eup %2962 }
 0x4bd   :  { %v1154_v57 = vsub.f32 1.0, %v2963_v31 }
 0x50b   :  { %v1137_v28 = vpop.permute.xlu0 %1136 }
 0x50c   :  { %v1141_v29 = vmul.f32 %v2961_v27, %v1137_v28 }
 0x50d   :  { %v1135_v35 = vpop.permute.xlu1 %1134 }
 0x50e   :  { %v1140_v37 = vmul.f32 %v2963_v31, %v1135_v35  ;;  %1146 = vrot.lane.b32.xlu0 %v1141_v29, %s3062_s13 }
 0x510   :  { %1144 = vrot.lane.b32.xlu1 %v1140_v37, %s3062_s13 }
 0x55f   :  { %v3471_v38 = vpop.f32.mrf.mxu1 }
 0x561   :  { %v2745_v42 = vpop.f32.mrf.mxu1 }
 0x580   :  { %v1147_v43 = vpop.permute.xlu0 %1146 }
 0x581   :  { %v1151_v44 = vadd.f32 %v1147_v43, %v3359_v13 }
 0x582   :  { %v1145_v46 = vpop.permute.xlu1 %1144 }
 0x583   :  { %2964 = vtanh.f32 %v1151_v44  ;;  %v1150_v47 = vadd.f32 %v1145_v46, %v3354_v11 }
 0x585   :  { %2966 = vtanh.f32 %v1150_v47 }
 0x590   :  { %v2965_v48 = vpop.eup %2964 }
 0x591   :  { %1160 = vrot.lane.b32.xlu0 %v2965_v48, %s3064_s25 }
 0x592   :  { %v2967_v49 = vpop.eup %2966 }
 0x593   :  { %1158 = vrot.lane.b32.xlu1 %v2967_v49, %s3064_s25 }
 0x595   :  { %1169 = vrot.lane.b32.xlu0 %v3402_v1, %s3065_s8 }
 0x597   :  { %1167 = vrot.lane.b32.xlu1 %v1166_v50, %s3065_s8 }
 0x59b   :  { %1180 = vperm.xlu1 %2938, %v1178_v51  }
 0x603   :  { %v1161_v52 = vpop.permute.xlu0 %1160 }
 0x604   :  { %v1165_v56 = vmul.f32 %v1161_v52, %v1155_v54 }
 0x605   :  { %v1159_v53 = vpop.permute.xlu1 %1158 }
 0x606   :  { %v1164_v8 = vmul.f32 %v1159_v53, %v1154_v57 }
 0x607   :  { %v1170_v55 = vpop.permute.xlu0 %1169 }
 0x608   :  { %v1174_v58 = vmul.f32 %v2961_v27, %v1170_v55  ;;  %v3537_v55 = vsel %vm876_vm2, %v3471_v38, -1e+30 }
 0x609   :  { %v1168_v0 = vpop.permute.xlu1 %1167 }
 0x60a   :  { %v1176_v12 = vadd.f32 %v1174_v58, %v1165_v56  ;;  %v1173_v14 = vmul.f32 %v2963_v31, %v1168_v0 }
 0x60c   :  { %v1175_v15 = vadd.f32 %v1173_v14, %v1164_v8  ;;  %v1192_v16 = vrot.slane %v1176_v12, %v1187_v10 }
 0x60e   :  { %v1188_v17 = vrot.slane %v1175_v15, %v1187_v10 }
 0x610   :  { %v1193_v18 = vsel %vm892_vm3, %v1192_v16, %v1188_v17  ;;  %v1480_v17 = vsel %vm1479_vm7, 1, %v3063_v30 }
 0x611   :  { %1194 = vrot.lane.b32.xlu0 %v1193_v18, %s3064_s25 }
 0x616   :  { %v1181_v19 = vpop.permute.xlu1 %1180 }
 0x617   :  { %vm1182_vm6 = vcmp.eq.s32.totalorder %v1181_v19, 1 }
 0x683   :  { %v1195_v63 = vpop.permute.xlu0 %1194 }
 0x684   :  { %v3489_v20 = vsel %vm1182_vm6, %v1195_v63, %v3402_v1 }
 0x685   :  { %2766 = vmatmul.mubr.msk.f32.vlgmr.msra.gmra.mxu1 %vm137_vm0, %v3489_v20  ;;  %v1468_v38 = vrot.slane %v3489_v20, 7  ;;  %v1467_v16 = vrot.slane %v3489_v20, 6 }
 0x686   :  { %2780 = vmatpush3.msra.mxu1 %v3320_v59  ;;  %2787 = vmatprep.mubr.msk.f32.mxu1 %vm3061_vm1, %v3060_v2 }
 0x687   :  { %2781 = vmatprep.subr.mxu1 %v3060_v2 }
 0x688   :  { %2782 = vmatpush3.msra.mxu1 %v3324_v60 }
 0x689   :  { %2783 = vmatprep.subr.mxu1 %v3060_v2 }
 0x68a   :  { %2784 = vmatpush3.msra.mxu1 %v3331_v61 }
 0x68b   :  { %2785 = vmatprep.subr.mxu1 %v3060_v2 }
 0x68c   :  { %2786 = vmatpush3.msra.mxu1 %v3336_v62 }
 0x68d   :  { %2788 = vmatmul.mubr.msk.f32.vlgmr.msra.gmra.mxu1 %vm137_vm0, %v3489_v20  ;;  %2801 = vmatprep.subr.mxu1 %v3060_v2 }
 0x68e   :  { %2802 = vmatpush3.msra.mxu1 %v3421_v3  ;;  %2809 = vmatprep.mubr.msk.f32.mxu1 %vm3061_vm1, %v3060_v2 }
 0x68f   :  { %2803 = vmatprep.subr.mxu1 %v3060_v2 }
 0x690   :  { %2804 = vmatpush3.msra.mxu1 %v3427_v5 }
 0x691   :  { %2805 = vmatprep.subr.mxu1 %v3060_v2 }
 0x692   :  { %2806 = vmatpush3.msra.mxu1 %v3434_v6 }
 0x693   :  { %2807 = vmatprep.subr.mxu1 %v3060_v2 }
 0x694   :  { %2808 = vmatpush3.msra.mxu1 %v3441_v7 }
 0x695   :  { %2823 = vmatprep.subr.mxu1 %v3060_v2 }
 0x745   :  { %v1267_v21 = vpop.f32.mrf.mxu1 }
 0x746   :  { %v1268_v22 = vadd.f32 %v1267_v21, %v3450_v9 }
 0x747   :  { %v2767_v23 = vpop.f32.mrf.mxu1 }
 0x748   :  { %2968 = vtanh.f32 %v1268_v22 }
 0x74d   :  { %v1412_v24 = vpop.f32.mrf.mxu1 }
 0x74e   :  { %v1413_v25 = vadd.f32 %v3348_v4, %v1412_v24  ;;  %v1489_v24 = vsub.s32 2, %v3397_v45 }
 0x74f   :  { %v2789_v26 = vpop.f32.mrf.mxu1 }
 0x750   :  { %v1417_v27 = vrot.slane %v1413_v25, 6  ;;  %v1418_v28 = vrot.slane %v1413_v25, 7 }
 0x752   :  { %1437 = vrot.lane.b32.xlu0 %v1418_v28, %s3062_s13  ;;  %1435 = vrot.lane.b32.xlu1 %v1417_v27, %s3062_s13  ;;  %v1421_v31 = vadd.f32 %v1417_v27, %v3354_v11  ;;  %v1422_v35 = vadd.f32 %v1418_v28, %v3359_v13 }
 0x754   :  { %v2494_v37 = vmul.f32 -1.442695, %v1421_v31  ;;  %v2495_v42 = vmul.f32 -1.442695, %v1422_v35 }
 0x755   :  { %v2969_v29 = vpop.eup %2968 }
 0x756   :  { %2777 = vmatmul.mubr.msk.f32.vlgmr.msra.gmra.mxu0 %vm137_vm0, %v2969_v29  ;;  %2970 = vpow2.f32 %v2494_v37 }
 0x757   :  { %2791 = vmatpush3.msra.mxu0 %v3373_v33  ;;  %2798 = vmatprep.mubr.msk.f32.mxu0 %vm3061_vm1, %v3060_v2  ;;  %2972 = vpow2.f32 %v2495_v42 }
 0x758   :  { %2792 = vmatprep.subr.mxu0 %v3060_v2 }
 0x759   :  { %2793 = vmatpush3.msra.mxu0 %v3376_v34 }
 0x75a   :  { %2794 = vmatprep.subr.mxu0 %v3060_v2 }
 0x75b   :  { %2795 = vmatpush3.msra.mxu0 %v3382_v36 }
 0x75c   :  { %2796 = vmatprep.subr.mxu0 %v3060_v2 }
 0x75d   :  { %2797 = vmatpush3.msra.mxu0 %v3391_v39 }
 0x75e   :  { %2812 = vmatprep.subr.mxu0 %v3060_v2 }
 0x763   :  { %v2971_v43 = vpop.eup %2970 }
 0x764   :  { %v2973_v44 = vpop.eup %2972  ;;  %v1429_v46 = vadd.f32 1.0, %v2971_v43 }
 0x765   :  { %v1430_v47 = vadd.f32 1.0, %v2973_v44 }
 0x766   :  { %2974 = vrcp.f32 %v1429_v46 }
 0x767   :  { %2976 = vrcp.f32 %v1430_v47 }
 0x773   :  { %v2975_v48 = vpop.eup %2974 }
 0x774   :  { %v2977_v49 = vpop.eup %2976  ;;  %v1455_v21 = vsub.f32 1.0, %v2975_v48 }
 0x775   :  { %v1456_v63 = vsub.f32 1.0, %v2977_v49 }
 0x7c4   :  { %v1438_v50 = vpop.permute.xlu0 %1437  ;;  %v1436_v51 = vpop.permute.xlu1 %1435 }
 0x7c5   :  { %v1442_v52 = vmul.f32 %v2977_v49, %v1438_v50  ;;  %v1441_v53 = vmul.f32 %v2975_v48, %v1436_v51 }
 0x7c7   :  { %1447 = vrot.lane.b32.xlu0 %v1442_v52, %s3062_s13  ;;  %1445 = vrot.lane.b32.xlu1 %v1441_v53, %s3062_s13 }
 0x816   :  { %v1341_v54 = vpop.f32.mrf.mxu0 }
 0x817   :  { %v3541_v56 = vsel %vm1177_vm5, %v1341_v54, -1e+30 }
 0x818   :  { %v1950_v57 = vmax.f32 %v3537_v55, %v3541_v56  ;;  %v2778_v58 = vpop.f32.mrf.mxu0 }
 0x839   :  { %v1448_v0 = vpop.permute.xlu0 %1447  ;;  %v1446_v8 = vpop.permute.xlu1 %1445 }
 0x83a   :  { %v1452_v10 = vadd.f32 %v1448_v0, %v3359_v13  ;;  %v1451_v12 = vadd.f32 %v1446_v8, %v3354_v11 }
 0x83c   :  { %2978 = vtanh.f32 %v1452_v10 }
 0x83d   :  { %2980 = vtanh.f32 %v1451_v12 }
 0x849   :  { %v2979_v14 = vpop.eup %2978 }
 0x84a   :  { %v2981_v15 = vpop.eup %2980  ;;  %1461 = vrot.lane.b32.xlu0 %v2979_v14, %s3064_s25 }
 0x84b   :  { %1459 = vrot.lane.b32.xlu1 %v2981_v15, %s3064_s25 }
 0x84e   :  { %1471 = vrot.lane.b32.xlu0 %v1468_v38, %s3065_s8 }
 0x84f   :  { %1469 = vrot.lane.b32.xlu1 %v1467_v16, %s3065_s8 }
 0x853   :  { %1482 = vperm.xlu1 %2938, %v1480_v17  }
 0x8bc   :  { %v1462_v18 = vpop.permute.xlu0 %1461 }
 0x8bd   :  { %v1460_v19 = vpop.permute.xlu1 %1459  ;;  %v1466_v23 = vmul.f32 %v1462_v18, %v1456_v63 }
 0x8be   :  { %v1465_v27 = vmul.f32 %v1460_v19, %v1455_v21 }
 0x8c0   :  { %v1472_v22 = vpop.permute.xlu0 %1471 }
 0x8c1   :  { %v1476_v25 = vmul.f32 %v2977_v49, %v1472_v22  ;;  %v1470_v26 = vpop.permute.xlu1 %1469 }
 0x8c2   :  { %v1475_v28 = vmul.f32 %v2975_v48, %v1470_v26  ;;  %v1791_v26 = vsub.s32 3, %v3397_v45 }
 0x8c3   :  { %v1478_v29 = vadd.f32 %v1476_v25, %v1466_v23 }
 0x8c4   :  { %v1477_v31 = vadd.f32 %v1475_v28, %v1465_v27 }
 0x8c5   :  { %v1494_v35 = vrot.slane %v1478_v29, %v1489_v24 }
 0x8c6   :  { %v1490_v37 = vrot.slane %v1477_v31, %v1489_v24 }
 0x8c8   :  { %v1495_v42 = vsel %vm892_vm3, %v1494_v35, %v1490_v37 }
 0x8c9   :  { %1496 = vrot.lane.b32.xlu0 %v1495_v42, %s3064_s25 }
 0x8ce   :  { %v1483_v43 = vpop.permute.xlu1 %1482 }
 0x8cf   :  { %vm1484_vm8 = vcmp.eq.s32.totalorder %v1483_v43, 1 }
 0x93b   :  { %v1497_v44 = vpop.permute.xlu0 %1496 }
 0x93c   :  { %v3561_v46 = vsel %vm1484_vm8, %v1497_v44, %v3489_v20 }
 0x93d   :  { %2799 = vmatmul.mubr.msk.f32.vlgmr.msra.gmra.mxu0 %vm137_vm0, %v3561_v46  ;;  %v1770_v63 = vrot.slane %v3561_v46, 6 }
 0x93e   :  { %2813 = vmatpush3.msra.mxu0 %v3320_v59  ;;  %2820 = vmatprep.mubr.msk.f32.mxu0 %vm3061_vm1, %v3060_v2 }
 0x93f   :  { %2814 = vmatprep.subr.mxu0 %v3060_v2 }
 0x940   :  { %2815 = vmatpush3.msra.mxu0 %v3324_v60 }
 0x941   :  { %2816 = vmatprep.subr.mxu0 %v3060_v2 }
 0x942   :  { %2817 = vmatpush3.msra.mxu0 %v3331_v61 }
 0x943   :  { %2818 = vmatprep.subr.mxu0 %v3060_v2 }
 0x944   :  { %2819 = vmatpush3.msra.mxu0 %v3336_v62 }
 0x945   :  { %2821 = vmatmul.mubr.msk.f32.vlgmr.msra.gmra.mxu0 %vm137_vm0, %v3561_v46  ;;  %2834 = vmatprep.subr.mxu0 %v3060_v2 }
 0x946   :  { %2835 = vmatpush3.msra.mxu0 %v3421_v3  ;;  %2842 = vmatprep.mubr.msk.f32.mxu0 %vm3061_vm1, %v3060_v2 }
 0x947   :  { %2836 = vmatprep.subr.mxu0 %v3060_v2 }
 0x948   :  { %2837 = vmatpush3.msra.mxu0 %v3427_v5 }
 0x949   :  { %2838 = vmatprep.subr.mxu0 %v3060_v2 }
 0x94a   :  { %2839 = vmatpush3.msra.mxu0 %v3434_v6 }
 0x94b   :  { %2840 = vmatprep.subr.mxu0 %v3060_v2 }
 0x94c   :  { %2841 = vmatpush3.msra.mxu0 %v3441_v7 }
 0x94d   :  { %2856 = vmatprep.subr.mxu0 %v3060_v2 }
 0x9fd   :  { %v1569_v59 = vpop.f32.mrf.mxu0 }
 0x9fe   :  { %v1570_v60 = vadd.f32 %v1569_v59, %v3450_v9 }
 0x9ff   :  { %v2800_v61 = vpop.f32.mrf.mxu0 }
 0xa00   :  { %2982 = vtanh.f32 %v1570_v60 }
 0xa05   :  { %v1714_v62 = vpop.f32.mrf.mxu0 }
 0xa06   :  { %v1715_v3 = vadd.f32 %v3348_v4, %v1714_v62 }
 0xa07   :  { %v2822_v47 = vpop.f32.mrf.mxu0 }
 0xa08   :  { %v1719_v5 = vrot.slane %v1715_v3, 5  ;;  %v1720_v48 = vrot.slane %v1715_v3, 6  ;;  %v2016_v3 = vld [vmem:[%s3751_s14 + $0x18] sm:$0xff] }
 0xa0a   :  { %1739 = vrot.lane.b32.xlu0 %v1720_v48, %s3062_s13  ;;  %1737 = vrot.lane.b32.xlu1 %v1719_v5, %s3062_s13  ;;  %v1723_v4 = vadd.f32 %v1719_v5, %v3354_v11  ;;  %v2015_v5 = vld [vmem:[%s3751_s14 + $0x10] sm:$0xff] }
 0xa0c   :  { %v2499_v7 = vmul.f32 -1.442695, %v1723_v4 }
 0xa0d   :  { %v2983_v6 = vpop.eup %2982 }
 0xa0e   :  { %2810 = vmatmul.mubr.msk.f32.vlgmr.msra.gmra.mxu1 %vm137_vm0, %v2983_v6  ;;  %2984 = vpow2.f32 %v2499_v7  ;;  %v2013_v6 = vld [vmem:[%s3751_s14] sm:$0xff] }
 0xa0f   :  { %2824 = vmatpush3.msra.mxu1 %v3373_v33  ;;  %2831 = vmatprep.mubr.msk.f32.mxu1 %vm3061_vm1, %v3060_v2  ;;  %v1724_v33 = vadd.f32 %v1720_v48, %v3359_v13  ;;  %v2014_v48 = vld [vmem:[%s3751_s14 + $0x8] sm:$0xff] }
 0xa10   :  { %2825 = vmatprep.subr.mxu1 %v3060_v2 }
 0xa11   :  { %2826 = vmatpush3.msra.mxu1 %v3376_v34  ;;  %v2500_v49 = vmul.f32 -1.442695, %v1724_v33 }
 0xa12   :  { %2827 = vmatprep.subr.mxu1 %v3060_v2 }
 0xa13   :  { %2828 = vmatpush3.msra.mxu1 %v3382_v36  ;;  %2986 = vpow2.f32 %v2500_v49 }
 0xa14   :  { %2829 = vmatprep.subr.mxu1 %v3060_v2 }
 0xa15   :  { %2830 = vmatpush3.msra.mxu1 %v3391_v39 }
 0xa16   :  { %2845 = vmatprep.subr.mxu1 %v3060_v2 }
 0xa1b   :  { %v2985_v50 = vpop.eup %2984 }
 0xa1c   :  { %v1731_v51 = vadd.f32 1.0, %v2985_v50 }
 0xa1e   :  { %2988 = vrcp.f32 %v1731_v51 }
 0xa20   :  { %v2987_v34 = vpop.eup %2986 }
 0xa21   :  { %v1732_v52 = vadd.f32 1.0, %v2987_v34 }
 0xa23   :  { %2990 = vrcp.f32 %v1732_v52 }
 0xa2b   :  { %v2989_v36 = vpop.eup %2988 }
 0xa2c   :  { %v1757_v23 = vsub.f32 1.0, %v2989_v36 }
 0xa30   :  { %v2991_v53 = vpop.eup %2990 }
 0xa31   :  { %v1758_v22 = vsub.f32 1.0, %v2991_v53 }
 0xa7c   :  { %v1740_v54 = vpop.permute.xlu0 %1739  ;;  %v1738_v39 = vpop.permute.xlu1 %1737 }
 0xa7d   :  { %v1744_v58 = vmul.f32 %v2991_v53, %v1740_v54  ;;  %v1743_v0 = vmul.f32 %v2989_v36, %v1738_v39 }
 0xa7f   :  { %1749 = vrot.lane.b32.xlu0 %v1744_v58, %s3062_s13  ;;  %1747 = vrot.lane.b32.xlu1 %v1743_v0, %s3062_s13 }
 0xace   :  { %v1643_v8 = vpop.f32.mrf.mxu1 }
 0xacf   :  { %v3608_v10 = vsel %vm1479_vm7, %v1643_v8, -1e+30  ;;  %v2505_v8 = vsel %vm1479_vm7, 1.0, %v3060_v2 }
 0xad0   :  { %v3614_v12 = vmax.f32 %v1950_v57, %v3608_v10  ;;  %v2811_v14 = vpop.f32.mrf.mxu1  ;;  %v1769_v57 = vrot.slane %v3561_v46, 5 }
 0xaf1   :  { %v1750_v15 = vpop.permute.xlu0 %1749  ;;  %v1748_v38 = vpop.permute.xlu1 %1747 }
 0xaf2   :  { %v1754_v16 = vadd.f32 %v1750_v15, %v3359_v13  ;;  %v1753_v17 = vadd.f32 %v1748_v38, %v3354_v11  ;;  %v1782_v11 = vsel %vm1781_vm9, 1, %v3063_v30  ;;  %v2506_v15 = vsel %vm1781_vm9, 1.0, %v3060_v2 }
 0xaf4   :  { %2992 = vtanh.f32 %v1754_v16 }
 0xaf5   :  { %2994 = vtanh.f32 %v1753_v17 }
 0xb01   :  { %v2993_v18 = vpop.eup %2992 }
 0xb02   :  { %v2995_v19 = vpop.eup %2994  ;;  %1763 = vrot.lane.b32.xlu0 %v2993_v18, %s3064_s25 }
 0xb03   :  { %1761 = vrot.lane.b32.xlu1 %v2995_v19, %s3064_s25 }
 0xb06   :  { %1773 = vrot.lane.b32.xlu0 %v1770_v63, %s3065_s8 }
 0xb07   :  { %1771 = vrot.lane.b32.xlu1 %v1769_v57, %s3065_s8  ;;  %v2020_v57 = vld [vmem:[%s3752_s19 + $0x18] sm:$0xff] }
 0xb0b   :  { %1784 = vperm.xlu1 %2938, %v1782_v11   ;;  %v2018_v11 = vld [vmem:[%s3752_s19 + $0x8] sm:$0xff] }
 0xb74   :  { %v1764_v13 = vpop.permute.xlu0 %1763 }
 0xb75   :  { %v1762_v21 = vpop.permute.xlu1 %1761  ;;  %v1768_v25 = vmul.f32 %v1764_v13, %v1758_v22  ;;  %v2017_v13 = vld [vmem:[%s3752_s19] sm:$0xff] }
 0xb76   :  { %v1767_v29 = vmul.f32 %v1762_v21, %v1757_v23 }
 0xb78   :  { %v1774_v24 = vpop.permute.xlu0 %1773 }
 0xb79   :  { %v1778_v27 = vmul.f32 %v2991_v53, %v1774_v24  ;;  %v1772_v28 = vpop.permute.xlu1 %1771 }
 0xb7a   :  { %v1777_v31 = vmul.f32 %v2989_v36, %v1772_v28 }
 0xb7b   :  { %v1780_v35 = vadd.f32 %v1778_v27, %v1768_v25 }
 0xb7c   :  { %v1779_v37 = vadd.f32 %v1777_v31, %v1767_v29 }
 0xb7d   :  { %v1796_v42 = vrot.slane %v1780_v35, %v1791_v26 }
 0xb7e   :  { %v1792_v43 = vrot.slane %v1779_v37, %v1791_v26 }
 0xb80   :  { %v1797_v30 = vsel %vm892_vm3, %v1796_v42, %v1792_v43 }
 0xb81   :  { %1798 = vrot.lane.b32.xlu0 %v1797_v30, %s3064_s25  ;;  %v2175_v30 = vld [vmem:[%s3753_s24 + $0x18] sm:$0xff] }
 0xb86   :  { %v1785_v44 = vpop.permute.xlu1 %1784 }
 0xb87   :  { %vm1786_vm10 = vcmp.eq.s32.totalorder %v1785_v44, 1  ;;  %v2260_v44 = vld [vmem:[%s3754_s30 + $0x18] sm:$0xff] }
 0xbf3   :  { %v1799_v59 = vpop.permute.xlu0 %1798 }
 0xbf4   :  { %v3632_v45 = vsel %vm1786_vm10, %v1799_v59, %v3561_v46 }
 0xbf5   :  { %2832 = vmatmul.mubr.msk.f32.vlgmr.msra.gmra.mxu1 %vm137_vm0, %v3632_v45 }
 0xbf6   :  { %2853 = vmatprep.mubr.msk.f32.mxu1 %vm3061_vm1, %v3060_v2  ;;  %2846 = vmatpush3.msra.mxu1 %v2020_v57 }
 0xbf7   :  { %2847 = vmatprep.subr.mxu1 %v3060_v2 }
 0xbf8   :  { %2848 = vmatpush3.msra.mxu1 %v2019_v32 }
 0xbf9   :  { %2849 = vmatprep.subr.mxu1 %v3060_v2 }
 0xbfa   :  { %2850 = vmatpush3.msra.mxu1 %v2018_v11 }
 0xbfb   :  { %2851 = vmatprep.subr.mxu1 %v3060_v2 }
 0xbfc   :  { %2852 = vmatpush3.msra.mxu1 %v2017_v13 }
 0xbfd   :  { %2867 = vmatprep.subr.mxu1 %v3060_v2 }
 0xcb5   :  { %v1871_v60 = vpop.f32.mrf.mxu1 }
 0xcb6   :  { %v1872_v61 = vadd.f32 %v1871_v60, %v3450_v9 }
 0xcb7   :  { %v2833_v62 = vpop.f32.mrf.mxu1 }
 0xcb8   :  { %2996 = vtanh.f32 %v1872_v61 }
 0xcc5   :  { %v2997_v47 = vpop.eup %2996 }
 0xcc6   :  { %2843 = vmatmul.mubr.msk.f32.vlgmr.msra.gmra.mxu0 %vm137_vm0, %v2997_v47  ;;  %v2258_v47 = vld [vmem:[%s3754_s30 + $0x8] sm:$0xff] }
 0xcc7   :  { %2857 = vmatpush3.msra.mxu0 %v2016_v3  ;;  %2864 = vmatprep.mubr.msk.f32.mxu0 %vm3061_vm1, %v3060_v2  ;;  %v2259_v3 = vld [vmem:[%s3754_s30 + $0x10] sm:$0xff] }
 0xcc8   :  { %2858 = vmatprep.subr.mxu0 %v3060_v2 }
 0xcc9   :  { %2859 = vmatpush3.msra.mxu0 %v2015_v5  ;;  %v2257_v5 = vld [vmem:[%s3754_s30] sm:$0xff] }
 0xcca   :  { %2860 = vmatprep.subr.mxu0 %v3060_v2 }
 0xccb   :  { %2861 = vmatpush3.msra.mxu0 %v2014_v48  ;;  %v2345_v48 = vld [vmem:[%s3215_s27 + $0x18] sm:$0xff] }
 0xccc   :  { %2862 = vmatprep.subr.mxu0 %v3060_v2 }
 0xccd   :  { %2863 = vmatpush3.msra.mxu0 %v2013_v6  ;;  %v2510_v6 = vld [vmem:[%s3756_s15] ss:$0 sm:$0xff] }
 0xcce   :  { %2865 = vmatmul.mubr.msk.f32.vlgmr.msra.gmra.mxu0 %vm137_vm0, %v292_v41  ;;  %2878 = vmatprep.subr.mxu0 %v3060_v2 }
 0xccf   :  { %2886 = vmatprep.mubr.msk.f32.mxu0 %vm3061_vm1, %v3060_v2  ;;  %2879 = vmatpush3.msra.mxu0 %v2260_v44 }
 0xcd0   :  { %2880 = vmatprep.subr.mxu0 %v3060_v2 }
 0xcd1   :  { %2881 = vmatpush3.msra.mxu0 %v2259_v3 }
 0xcd2   :  { %2882 = vmatprep.subr.mxu0 %v3060_v2 }
 0xcd3   :  { %2883 = vmatpush3.msra.mxu0 %v2258_v47 }
 0xcd4   :  { %2884 = vmatprep.subr.mxu0 %v3060_v2 }
 0xcd5   :  { %2885 = vmatpush3.msra.mxu0 %v2257_v5 }
 0xd86   :  { %v1945_v9 = vpop.f32.mrf.mxu0 }
 0xd87   :  { %v1949_v4 = vsel %vm1781_vm9, %v1945_v9, -1e+30 }
 0xd88   :  { %v1952_v33 = vmax.f32 %v3614_v12, %v1949_v4  ;;  %v2844_v7 = vpop.f32.mrf.mxu0 }
 0xd8a   :  { %v1954_v49 = vsub.f32 %v3537_v55, %v1952_v33  ;;  %v1967_v50 = vsub.f32 %v3541_v56, %v1952_v33  ;;  %v1980_v40 = vsub.f32 %v3608_v10, %v1952_v33  ;;  %v1993_v34 = vsub.f32 %v1949_v4, %v1952_v33 }
 0xd8b   :  { %v2503_v55 = vsel %vm876_vm2, 1.0, %v3060_v2  ;;  %v2504_v56 = vsel %vm1177_vm5, 1.0, %v3060_v2 }
 0xd8c   :  { %v1955_v41 = vmul.f32 1.442695, %v1954_v49  ;;  %v1968_v51 = vmul.f32 1.442695, %v1967_v50  ;;  %v1981_v52 = vmul.f32 1.442695, %v1980_v40 }
 0xd8d   :  { %v1994_v36 = vmul.f32 1.442695, %v1993_v34  ;;  %v2344_v49 = vld [vmem:[%s3215_s27 + $0x10] sm:$0xff]  ;;  %v2343_v50 = vld [vmem:[%s3215_s27 + $0x8] sm:$0xff]  ;;  %v2342_v40 = vld [vmem:[%s3215_s27] sm:$0xff]  ;;  %s3008_s27 = scalar_lea.vmem %s2435_s18, 32 }
 0xd8e   :  { %2998 = vpow2.f32 %v1955_v41  ;;  %v3661_v53 = vpop.f32.mrf.mxu0  ;;  %v2512_v34 = vld [vmem:[%s3210_s12] ss:$0 sm:$0xff]  ;;  %p3009_p0 = scmp.ne.s32.totalorder %s2435_s18, %s3008_s27  ;;  %p3014_p2 = scmp.lt.s32.totalorder %s3008_s27, %s3008_s27 }
 0xd8f   :  { %3000 = vpow2.f32 %v1968_v51 }
 0xd90   :  { %3002 = vpow2.f32 %v1981_v52  ;;  %v2866_v54 = vpop.f32.mrf.mxu0  ;;  %p3015_p3 = por %p3014_p2, %p3013_p1 }
 0xd91   :  { %3004 = vpow2.f32 %v1994_v36 }
 0xd92   :  { %p3016_p4 = pnand %p3015_p3, %p3009_p0 }
 0xd9b   :  { %v2999_v39 = vpop.eup %2998 }
 0xd9c   :  { %v3001_v58 = vpop.eup %3000  ;;  %v1957_v0 = vmul.f32 %v2999_v39, %v2503_v55 }
 0xd9d   :  { %v3003_v10 = vpop.eup %3002  ;;  %v1970_v12 = vmul.f32 %v3001_v58, %v2504_v56 }
 0xd9e   :  { %v3005_v14 = vpop.eup %3004  ;;  %1961 = vperm.xlu0 %2937, %v1957_v0   ;;  %v1983_v16 = vmul.f32 %v3003_v10, %v2505_v8 }
 0xd9f   :  { %v1971_v38 = vadd.f32 %v1970_v12, %v1957_v0  ;;  %v1996_v18 = vmul.f32 %v3005_v14, %v2506_v15 }
 0xda1   :  { %v1984_v17 = vadd.f32 %v1983_v16, %v1971_v38 }
 0xda2   :  { %1987 = vperm.xlu0 %2937, %v1983_v16  }
 0xda3   :  { %v1997_v19 = vadd.f32 %v1996_v18, %v1984_v17 }
 0xda5   :  { %v2005_v63 = vadd.f32 1e-09, %v1997_v19 }
 0xda7   :  { %2008 = vperm.xlu1 %2938, %v2005_v63  }
 0xdab   :  { %1974 = vperm.xlu1 %2938, %v1970_v12  }
 0xdaf   :  { %2000 = vperm.xlu1 %2938, %v1996_v18  }
 0xe19   :  { %v1962_v21 = vpop.permute.xlu0 %1961 }
 0xe1a   :  { %v1964_v25 = vmul.f32 %v1962_v21, %v3402_v1  ;;  %v2174_v1 = vld [vmem:[%s3753_s24 + $0x10] sm:$0xff] }
 0xe1d   :  { %v1988_v23 = vpop.permute.xlu0 %1987 }
 0xe1e   :  { %v1990_v27 = vmul.f32 %v1988_v23, %v3561_v46  ;;  %v2172_v46 = vld [vmem:[%s3753_s24] sm:$0xff] }
 0xe22   :  { %v2009_v22 = vpop.permute.xlu1 %2008 }
 0xe23   :  { %3006 = vrcp.f32 %v2009_v22 }
 0xe26   :  { %v1975_v24 = vpop.permute.xlu1 %1974 }
 0xe27   :  { %v1977_v26 = vmul.f32 %v1975_v24, %v3489_v20  ;;  %v2173_v20 = vld [vmem:[%s3753_s24 + $0x8] sm:$0xff] }
 0xe29   :  { %v1978_v28 = vadd.f32 %v1977_v26, %v1964_v25 }
 0xe2a   :  { %v2001_v29 = vpop.permute.xlu1 %2000 }
 0xe2b   :  { %v1991_v31 = vadd.f32 %v1990_v27, %v1978_v28  ;;  %v2003_v35 = vmul.f32 %v2001_v29, %v3632_v45  ;;  %v2509_v45 = vld [vmem:[%s3755_s6] ss:$0 sm:$0xff] }
 0xe2d   :  { %v2004_v37 = vadd.f32 %v2003_v35, %v1991_v31 }
 0xe30   :  { %v3007_v42 = vpop.eup %3006 }
 0xe31   :  { %v2012_v43 = vmul.f32 %v3007_v42, %v2004_v37 }
 0xe33   :  { %2854 = vmatmul.mubr.msk.f32.vlgmr.msra.gmra.mxu1 %vm137_vm0, %v2012_v43 }
 0xe34   :  { %2868 = vmatpush3.msra.mxu1 %v2175_v30  ;;  %2875 = vmatprep.mubr.msk.f32.mxu1 %vm3061_vm1, %v3060_v2 }
 0xe35   :  { %2869 = vmatprep.subr.mxu1 %v3060_v2 }
 0xe36   :  { %2870 = vmatpush3.msra.mxu1 %v2174_v1 }
 0xe37   :  { %2871 = vmatprep.subr.mxu1 %v3060_v2 }
 0xe38   :  { %2872 = vmatpush3.msra.mxu1 %v2173_v20 }
 0xe39   :  { %2873 = vmatprep.subr.mxu1 %v3060_v2 }
 0xe3a   :  { %2874 = vmatpush3.msra.mxu1 %v2172_v46 }
 0xe3b   :  { %2889 = vmatprep.subr.mxu1 %v3060_v2 }
 0xef3   :  { %v2090_v59 = vpop.f32.mrf.mxu1 }
 0xef4   :  { %v2161_v60 = vadd.f32 %v3661_v53, %v2090_v59  ;;  %v2514_v53 = vld [vmem:[%s3220_s4] ss:$0 sm:$0xff] }
 0xef5   :  { %v2855_v61 = vpop.f32.mrf.mxu1 }
 0xef6   :  { %v2171_v62 = vadd.f32 %v2509_v45, %v2161_v60 }
 0xef8   :  { %2876 = vmatmul.mubr.msk.f32.vlgmr.msra.gmra.mxu1 %vm137_vm0, %v2171_v62 }
 0xef9   :  { %2897 = vmatprep.mubr.msk.f32.mxu1 %vm3061_vm1, %v3060_v2  ;;  %2890 = vmatpush3.msra.mxu1 %v2345_v48 }
 0xefa   :  { %2891 = vmatprep.subr.mxu1 %v3060_v2 }
 0xefb   :  { %2892 = vmatpush3.msra.mxu1 %v2344_v49 }
 0xefc   :  { %2893 = vmatprep.subr.mxu1 %v3060_v2 }
 0xefd   :  { %2894 = vmatpush3.msra.mxu1 %v2343_v50 }
 0xefe   :  { %2895 = vmatprep.subr.mxu1 %v3060_v2 }
 0xeff   :  { %2896 = vmatpush3.msra.mxu1 %v2342_v40 }
 0xfb8   :  { %v2252_v9 = vpop.f32.mrf.mxu1 }
 0xfb9   :  { %v2253_v4 = vadd.f32 %v2510_v6, %v2252_v9 }
 0xfba   :  { %v2877_v33 = vpop.f32.mrf.mxu1 }
 0xfbb   :  { %v2256_v7 = vmax.f32 %v2253_v4, 0.0 }
 0xfbd   :  { %2887 = vmatmul.mubr.msk.f32.vlgmr.msra.gmra.mxu0 %vm137_vm0, %v2256_v7 }
0x107d   :  { %v2337_v41 = vpop.f32.mrf.mxu0 }
0x107e   :  { %v2338_v51 = vadd.f32 %v2512_v34, %v2337_v41 }
0x107f   :  { %v2888_v52 = vpop.f32.mrf.mxu0 }
0x1080   :  { %v2341_v36 = vmax.f32 %v2338_v51, 0.0 }
0x1082   :  { %2898 = vmatmul.mubr.msk.f32.vlgmr.msra.gmra.mxu1 %vm137_vm0, %v2341_v36 }
0x1142   :  { %v2422_v54 = vpop.f32.mrf.mxu1 }
0x1143   :  { %v2423_v55 = vadd.f32 %v2514_v53, %v2422_v54 }
0x1144   :  { %v2899_v56 = vpop.f32.mrf.mxu1 }
0x1145   :  { %2427 = vst.msk [vmem:[#allocation2] sm:$0x3] %vm2426_vm11, %v2423_v55 }
0x1146   :  { %3019 = shalt.err (!%p3016_p4)
}
0x1147   :  { %2437 = dma.vmem_to_hbm [thread:$0]  %s2435_s18, 32, %s3225_s20, [#allocation3]  }
0x1148   :  { %3028 = dma.done.wait [#allocation3], 32  }
0x1149   :  { %3029 = vsyncadd [#allocation3], 4294967264 }
0x114a   :  { %2441 = vsyncpa [#allocation3], 1 }

</bundles_post_ra>
